<compile_context>
chip_gen: v5e
topology: v5e:2x2
jax: 0.10.0
libtpu: 0.0.40
codegen_flags: <defaults>
</compile_context>

<pallas_src>
import functools
import math

import jax
import jax.numpy as jnp
from jax import lax
from jax.experimental import pallas as pl
from jax.experimental.pallas import tpu as pltpu

LANE = 128      # lane width (last dim)
SUBLANE = 8     # sublane width (second-to-last dim, f32)
MXU_DTYPE = jnp.bfloat16   # dtype fed to the MXU (accumulation stays f32)


def _round_up(x, m):
    return (x + m - 1) // m * m


def _cdiv(a, b):
    return (a + b - 1) // b


def _vmem_capacity_bytes():
    try:
        return int(pltpu.get_tpu_info().vmem_capacity_bytes)
    except Exception:
        return 64 * 1024 * 1024   # conservative fallback: v7x per-TensorCore VMEM


def _unroll_for(Tt, Bp):
    # Each unrolled step keeps ~10 [Bp, *]-sized temporaries live; shrink the
    # unroll factor as the padded batch grows so live values stay under 64 vregs.
    return max(1, min(Tt, 64 // max(Bp, SUBLANE)))


def _plan(T, Bp, Dp, Hp, Op, L):
    """Group layers by resident-weight footprint and size the time tile."""
    cap = _vmem_capacity_bytes()

    def layer_w_bytes(l):        # bf16 weights, x2 for pipeline double-buffering
        din = Dp if l == 0 else Hp
        return 2 * 2 * 3 * Hp * (din + Hp)

    weight_budget = int(0.45 * cap)
    groups, cur, cur_b = [], [], 0
    for l in range(L):
        wb = layer_w_bytes(l)
        if cur and cur_b + wb > weight_budget:
            groups.append(cur)
            cur, cur_b = [], 0
        cur.append(l)
        cur_b += wb
    groups.append(cur)

    max_w = max(sum(layer_w_bytes(l) for l in g) for g in groups)
    max_gL = max(len(g) for g in groups)
    proj_b = 2 * 2 * Hp * Op + 2 * 4 * Op
    fixed = max_w + proj_b + 4 * max_gL * Bp * Hp + (2 << 20)   # weights + h state + slack

    din_max = max(Dp, Hp)
    per_t = Bp * (2 * 2 * din_max      # x tile (bf16, double-buffered)
                  + 2 * 2 * Hp         # hidden-seq out tile (bf16, double-buffered)
                  + 4 * 3 * Hp         # hoisted-gate scratch (f32)
                  + 4 * Hp)            # intra-group hidden tile (f32)
    tile_budget = max(int(0.85 * cap) - fixed, per_t)
    Tt = max(1, min(T, tile_budget // per_t))
    nt = _cdiv(T, Tt)
    Tt = _cdiv(T, nt)                  # re-balance so total time padding < nt
    est = fixed + per_t * Tt
    vmem_limit = int(min(0.9 * cap, max(32 << 20, est + (8 << 20))))
    return groups, Tt, nt, vmem_limit


# ---------------------------------------------------------------------------
# Kernels
# ---------------------------------------------------------------------------
def _layer_recurrence(x_in, wih, whh, bgi, bhn, h0, gi_scr, store_fn,
                      *, Bp, Hp, Tt, T_real, unroll):
    """One GRU layer over one time tile.

    x_in: [Tt*Bp, Din]  time-major rows (row = t*Bp + b)
    wih:  [Din, 3Hp]    gate-concatenated (r|z|n) W_ih^T, bf16
    whh:  [Hp, 3Hp]     gate-concatenated W_hh^T, bf16
    bgi:  [1, 3Hp]      b_ih + [b_hh_r | b_hh_z | 0]   (folded), f32
    bhn:  [1, Hp]       b_hh_n (stays inside r*(.)), f32
    h0:   [Bp, Hp]      carried hidden state, f32
    gi_scr: [Tt*Bp, 3Hp] f32 scratch holding the hoisted input GEMM
    Returns the hidden state after the last valid step of this tile.
    """
    # Phase 1: input GEMM hoisted out of the recurrence — ONE wide MXU dot for
    # the whole tile, biases folded in.
    gi_scr[...] = (jnp.dot(x_in.astype(MXU_DTYPE), wih,
                           preferred_element_type=jnp.float32) + bgi)

    pad_tail = (T_real % Tt) != 0
    t0 = pl.program_id(0) * Tt if pad_tail else 0

    # Phase 2: sequential recurrence — one small wide dot + gate math per step.
    def step(t, h_prev):
        row = pl.multiple_of(t * Bp, Bp)
        gh = jnp.dot(h_prev.astype(MXU_DTYPE), whh,
                     preferred_element_type=jnp.float32)          # [Bp, 3Hp]
        gi = gi_scr[pl.ds(row, Bp), :]                            # [Bp, 3Hp]
        rz = jax.nn.sigmoid(gi[:, :2 * Hp] + gh[:, :2 * Hp])      # 128-aligned slices
        r, z = rz[:, :Hp], rz[:, Hp:]
        n = jnp.tanh(gi[:, 2 * Hp:] + r * (gh[:, 2 * Hp:] + bhn))
        h_new = (1.0 - z) * n + z * h_prev
        if pad_tail:   # padded trailing steps: carry hidden state unchanged
            h_new = jnp.where(t0 + t < T_real, h_new, h_prev)
        store_fn(row, h_new)
        return h_new

    return lax.fori_loop(0, Tt, step, h0, unroll=unroll)


def _run_group(x_ref, wih0_ref, wihr_ref, whh_ref, bgi_ref, bhn_ref,
               h_scr, gi_scr, mid_scr, last_store,
               *, Bp, Hp, Tt, T_real, L, unroll):
    """Run L stacked GRU layers of one group over the current time tile."""
    @pl.when(pl.program_id(0) == 0)
    def _init():
        h_scr[...] = jnp.zeros_like(h_scr)

    def mid_store(row, h):   # per-step f32 store into the intra-group tile
        mid_scr[pl.ds(row, Bp), :] = h

    for l in range(L):
        x_in = x_ref[...] if l == 0 else mid_scr[...]
        wih = wih0_ref[...] if l == 0 else wihr_ref[l - 1]
        store = last_store if (l == L - 1 and last_store is not None) else mid_store
        h_scr[l] = _layer_recurrence(
            x_in, wih, whh_ref[l], bgi_ref[l], bhn_ref[l], h_scr[l], gi_scr,
            store, Bp=Bp, Hp=Hp, Tt=Tt, T_real=T_real, unroll=unroll)


def _group_seq_kernel(x_ref, wih0_ref, wihr_ref, whh_ref, bgi_ref, bhn_ref,
                      out_ref, h_scr, gi_scr, mid_scr,
                      *, Bp, Hp, Tt, T_real, L, unroll):
    """Non-final layer group: emits the group's last-layer hidden sequence (bf16)."""
    _run_group(x_ref, wih0_ref, wihr_ref, whh_ref, bgi_ref, bhn_ref,
               h_scr, gi_scr, mid_scr, None,
               Bp=Bp, Hp=Hp, Tt=Tt, T_real=T_real, L=L, unroll=unroll)
    # Single full-block bf16 store per tile (lane-dense, unmasked).
    out_ref[...] = mid_scr[...].astype(out_ref.dtype)


def _group_proj_kernel(x_ref, wih0_ref, wihr_ref, whh_ref, bgi_ref, bhn_ref,
                       wp_ref, bp_ref, out_ref, h_scr, gi_scr, mid_scr,
                       *, Bp, Hp, Tt, T_real, L, unroll):
    """Final layer group fused with the Linear projection (last time tile only)."""
    @pl.when(pl.program_id(0) == 0)
    def _zero_out():   # keep the resident output block well-defined on every step
        out_ref[...] = jnp.zeros_like(out_ref)

    def last_store(row, h):   # the last layer's hidden sequence never leaves VMEM
        del row, h

    _run_group(x_ref, wih0_ref, wihr_ref, whh_ref, bgi_ref, bhn_ref,
               h_scr, gi_scr, mid_scr, last_store,
               Bp=Bp, Hp=Hp, Tt=Tt, T_real=T_real, L=L, unroll=unroll)

    @pl.when(pl.program_id(0) == pl.num_programs(0) - 1)
    def _proj():
        hb = h_scr[L - 1].astype(MXU_DTYPE)
        out_ref[...] = (jnp.dot(hb, wp_ref[...], preferred_element_type=jnp.float32)
                        + bp_ref[...]).astype(out_ref.dtype)


# ---------------------------------------------------------------------------
# Wrappers
# ---------------------------------------------------------------------------
def _call_group(slab, lyrs, *, Bp, Hp, Tt, nt, T_real, vmem_limit, proj=None):
    gL = len(lyrs)
    Din = lyrs[0]["wih"].shape[0]
    wih0 = lyrs[0]["wih"]
    wihr = (jnp.stack([l["wih"] for l in lyrs[1:]]) if gL > 1
            else jnp.zeros((1, Hp, 3 * Hp), MXU_DTYPE))   # dummy, never read
    whh = jnp.stack([l["whh"] for l in lyrs])
    bgi = jnp.stack([l["bgi"] for l in lyrs])
    bhn = jnp.stack([l["bhn"] for l in lyrs])
    n_rest = max(gL - 1, 1)

    # TODO(synk): constant-index weight BlockSpecs could use
    # pipeline_mode=pl.Buffered(1) to halve their resident footprint; left at the
    # default for lowering robustness across jax versions.
    in_specs = [
        pl.BlockSpec((Tt * Bp, Din), lambda t: (t, 0)),          # streamed x tile
        pl.BlockSpec((Din, 3 * Hp), lambda t: (0, 0)),           # resident weights
        pl.BlockSpec((n_rest, Hp, 3 * Hp), lambda t: (0, 0, 0)),
        pl.BlockSpec((gL, Hp, 3 * Hp), lambda t: (0, 0, 0)),
        pl.BlockSpec((gL, 1, 3 * Hp), lambda t: (0, 0, 0)),
        pl.BlockSpec((gL, 1, Hp), lambda t: (0, 0, 0)),
    ]
    scratch = [
        pltpu.VMEM((gL, Bp, Hp), jnp.float32),        # per-layer recurrent state
        pltpu.VMEM((Tt * Bp, 3 * Hp), jnp.float32),   # hoisted gate pre-activations
        pltpu.VMEM((Tt * Bp, Hp), jnp.float32),       # intra-group hidden tile
    ]
    cparams = pltpu.CompilerParams(
        dimension_semantics=("arbitrary",),           # the recurrence is sequential
        vmem_limit_bytes=vmem_limit,
    )
    # TODO(synk): on v7x a leading "parallel" batch-block grid axis (or a layer
    # wavefront across the two TensorCores) would engage the second core; omitted
    # here since typical Bp for this model is a single sublane block.

    common = dict(Bp=Bp, Hp=Hp, Tt=Tt, T_real=T_real, L=gL,
                  unroll=_unroll_for(Tt, Bp))

    if proj is None:
        return pl.pallas_call(
            functools.partial(_group_seq_kernel, **common),
            out_shape=jax.ShapeDtypeStruct((nt * Tt * Bp, Hp), MXU_DTYPE),
            grid_spec=pltpu.PrefetchScalarGridSpec(
                num_scalar_prefetch=0, grid=(nt,),
                in_specs=in_specs,
                out_specs=pl.BlockSpec((Tt * Bp, Hp), lambda t: (t, 0)),
                scratch_shapes=scratch),
            compiler_params=cparams,
        )(slab, wih0, wihr, whh, bgi, bhn)

    wp, bp = proj
    Op = wp.shape[-1]
    return pl.pallas_call(
        functools.partial(_group_proj_kernel, **common),
        out_shape=jax.ShapeDtypeStruct((Bp, Op), jnp.float32),
        grid_spec=pltpu.PrefetchScalarGridSpec(
            num_scalar_prefetch=0, grid=(nt,),
            in_specs=in_specs + [
                pl.BlockSpec((Hp, Op), lambda t: (0, 0)),
                pl.BlockSpec((1, Op), lambda t: (0, 0)),
            ],
            out_specs=pl.BlockSpec((Bp, Op), lambda t: (0, 0)),
            scratch_shapes=scratch),
        compiler_params=cparams,
    )(slab, wih0, wihr, whh, bgi, bhn, wp, bp)


def model_forward(x_enc, x_dec, params):
    """Mirrors Model.forward: concat along seq dim, multi-layer GRU, last hidden,
    fused Linear projection."""
    x = jnp.concatenate([x_enc, x_dec], axis=1)      # [B, T, D] (batch_first)
    B, T, D = x.shape
    Bp = _round_up(B, SUBLANE)
    Dp = _round_up(D, LANE)
    Hp, Op = params["Hp"], params["Op"]
    layers = params["gru_layers"]
    L = len(layers)

    groups, Tt, nt, vmem_limit = _plan(T, Bp, Dp, Hp, Op, L)
    Tp = nt * Tt

    # Pad batch/time/features, relayout once to a lane-dense time-major slab
    # [Tp*Bp, Dp], cast to bf16 (the dtype the MXU consumes anyway).
    x = jnp.pad(x, ((0, Bp - B), (0, Tp - T), (0, Dp - D)))
    slab = jnp.transpose(x, (1, 0, 2)).reshape(Tp * Bp, Dp).astype(MXU_DTYPE)

    out = None
    for gidx, grp in enumerate(groups):
        lyrs = [layers[l] for l in grp]
        if gidx == len(groups) - 1:
            out = _call_group(slab, lyrs, Bp=Bp, Hp=Hp, Tt=Tt, nt=nt, T_real=T,
                              vmem_limit=vmem_limit, proj=params["proj"])
        else:
            slab = _call_group(slab, lyrs, Bp=Bp, Hp=Hp, Tt=Tt, nt=nt, T_real=T,
                               vmem_limit=vmem_limit, proj=None)
    return out[:B, :params["output_size"]]


# ---------------------------------------------------------------------------
# Parameters: PyTorch layout -> gate-concatenated, padded, bf16 kernel layout
# ---------------------------------------------------------------------------
def init_params(key, input_size, hidden_size, num_layers, output_size):
    """PyTorch-shaped GRU/Linear params, uniform(-1/sqrt(H), 1/sqrt(H))."""
    k = 1.0 / math.sqrt(hidden_size)
    layers = []
    for layer in range(num_layers):
        d_in = input_size if layer == 0 else hidden_size
        key, k1, k2, k3, k4 = jax.random.split(key, 5)
        layers.append({
            "w_ih": jax.random.uniform(k1, (3 * hidden_size, d_in), jnp.float32, -k, k),
            "w_hh": jax.random.uniform(k2, (3 * hidden_size, hidden_size), jnp.float32, -k, k),
            "b_ih": jax.random.uniform(k3, (3 * hidden_size,), jnp.float32, -k, k),
            "b_hh": jax.random.uniform(k4, (3 * hidden_size,), jnp.float32, -k, k),
        })
    key, k5, k6 = jax.random.split(key, 3)
    w_proj = jax.random.uniform(k5, (output_size, hidden_size), jnp.float32, -k, k)
    b_proj = jax.random.uniform(k6, (output_size,), jnp.float32, -k, k)
    return {"gru_layers": layers, "proj": {"w": w_proj, "b": b_proj}}


def prepare_params(raw):
    """Split gates, transpose to [in, out], concatenate gates along the lane axis,
    zero-pad to lane/sublane tiles, fold the r/z hidden biases, pre-cast to bf16."""
    layers = []
    for lyr in raw["gru_layers"]:
        w_ih, w_hh = lyr["w_ih"], lyr["w_hh"]          # [3H, D_in], [3H, H]
        b_ih, b_hh = lyr["b_ih"], lyr["b_hh"]
        H = w_hh.shape[1]
        d_in = w_ih.shape[1]
        Hp = _round_up(H, LANE)
        Dp = _round_up(d_in, LANE)

        def cat_pad(w, din, dpad, H=H, Hp=Hp):
            # [3H, din] -> [dpad, 3Hp] with gate-contiguous column blocks (r|z|n)
            # so column slices [g*Hp:(g+1)*Hp] are 128-aligned.
            w3 = jnp.transpose(w.reshape(3, H, din), (0, 2, 1))          # [3, din, H]
            w3 = jnp.pad(w3, ((0, 0), (0, dpad - din), (0, Hp - H)))     # [3, dpad, Hp]
            return jnp.transpose(w3, (1, 0, 2)).reshape(dpad, 3 * Hp).astype(MXU_DTYPE)

        b_ih3 = b_ih.reshape(3, H)
        b_hh3 = b_hh.reshape(3, H)
        # Fold b_hh[r], b_hh[z] into the hoisted input-GEMM bias; b_hh[n] stays
        # separate (multiplied by the reset gate inside the step).
        folded = b_ih3 + jnp.concatenate(
            [b_hh3[:2], jnp.zeros((1, H), b_hh3.dtype)], axis=0)
        layers.append({
            "wih": cat_pad(w_ih, d_in, Dp),                               # [Dp, 3Hp]
            "whh": cat_pad(w_hh, H, Hp),                                  # [Hp, 3Hp]
            "bgi": jnp.pad(folded, ((0, 0), (0, Hp - H))).reshape(1, 3 * Hp),
            "bhn": jnp.pad(b_hh3[2], (0, Hp - H)).reshape(1, Hp),
        })

    w_p, b_p = raw["proj"]["w"], raw["proj"]["b"]       # [O, H], [O]
    O, H = w_p.shape
    Hp = _round_up(H, LANE)
    Op = _round_up(O, LANE)
    wp_k = jnp.pad(w_p.T, ((0, Hp - H), (0, Op - O))).astype(MXU_DTYPE)
    bp_k = jnp.pad(b_p.reshape(1, O), ((0, 0), (0, Op - O)))
    return {"gru_layers": layers, "proj": (wp_k, bp_k),
            "output_size": O, "Hp": Hp, "Op": Op}


# ---------------------------------------------------------------------------
# Pure-JAX reference (PyTorch GRU semantics); dot_dtype can mirror the kernel's
# bf16-at-MXU precision for a tight correctness check.
# ---------------------------------------------------------------------------
def reference_forward(x_enc, x_dec, raw, dot_dtype=jnp.float32):
    def dot(a, b):
        return jnp.dot(a.astype(dot_dtype), b.astype(dot_dtype),
                       preferred_element_type=jnp.float32)

    x = jnp.concatenate([x_enc, x_dec], axis=1)       # [B, T, D]
    h_seq = jnp.transpose(x, (1, 0, 2))               # [T, B, D]
    for lyr in raw["gru_layers"]:
        w_ih, w_hh = lyr["w_ih"], lyr["w_hh"]
        b_ih, b_hh = lyr["b_ih"], lyr["b_hh"]
        H = w_hh.shape[1]
        B = h_seq.shape[1]

        def step(h_prev, x_t, w_ih=w_ih, w_hh=w_hh, b_ih=b_ih, b_hh=b_hh, H=H):
            gi = dot(x_t, w_ih.T) + b_ih
            gh = dot(h_prev, w_hh.T) + b_hh
            i_r, i_z, i_n = gi[:, :H], gi[:, H:2 * H], gi[:, 2 * H:]
            h_r, h_z, h_n = gh[:, :H], gh[:, H:2 * H], gh[:, 2 * H:]
            r = jax.nn.sigmoid(i_r + h_r)
            z = jax.nn.sigmoid(i_z + h_z)
            n = jnp.tanh(i_n + r * h_n)
            h_new = (1.0 - z) * n + z * h_prev
            return h_new, h_new

        h0 = jnp.zeros((B, H), jnp.float32)
        _, h_seq = lax.scan(step, h0, h_seq)
    last = h_seq[-1]
    return dot(last, raw["proj"]["w"].T) + raw["proj"]["b"]


if __name__ == "__main__":
    # Small shapes consistent with the module's forward:
    #   x_enc: [B, T_enc, input_size], x_dec: [B, T_dec, input_size]
    B, T_enc, T_dec = 2, 5, 3
    input_size, hidden_size, num_layers, output_size = 8, 32, 2, 4

    key = jax.random.PRNGKey(0)
    key, kx1, kx2, kp = jax.random.split(key, 4)
    x_enc = jax.random.normal(kx1, (B, T_enc, input_size), jnp.float32)
    x_dec = jax.random.normal(kx2, (B, T_dec, input_size), jnp.float32)

    raw = init_params(kp, input_size, hidden_size, num_layers, output_size)
    params = prepare_params(raw)

    fwd = jax.jit(lambda xe, xd: model_forward(xe, xd, params))
    out = jax.block_until_ready(fwd(x_enc, x_dec))
    assert out.shape == (B, output_size), out.shape

    # Tight check against a reference mirroring the kernel's bf16-at-MXU precision.
    ref_mirror = jax.block_until_ready(
        reference_forward(x_enc, x_dec, raw, dot_dtype=MXU_DTYPE))
    assert jnp.allclose(out, ref_mirror, atol=2e-3, rtol=2e-3), (out, ref_mirror)

    # Semantic check against the full-f32 PyTorch-equivalent reference.
    ref_f32 = jax.block_until_ready(reference_forward(x_enc, x_dec, raw))
    assert jnp.allclose(out, ref_f32, atol=5e-2, rtol=5e-2), (out, ref_f32)

    print("KERNEL_OK")
</pallas_src>

<mosaic_0001>
module attributes {stable_mosaic.version = 11 : i64} {
  func.func @_group_proj_kernel(%arg0: i32, %arg1: memref<64x128xbf16, #tpu.memory_space<vmem>>, %arg2: memref<128x384xbf16, #tpu.memory_space<vmem>>, %arg3: memref<1x128x384xbf16, #tpu.memory_space<vmem>>, %arg4: memref<2x128x384xbf16, #tpu.memory_space<vmem>>, %arg5: memref<2x1x384xf32, #tpu.memory_space<vmem>>, %arg6: memref<2x1x128xf32, #tpu.memory_space<vmem>>, %arg7: memref<128x128xbf16, #tpu.memory_space<vmem>>, %arg8: memref<1x128xf32, #tpu.memory_space<vmem>>, %arg9: memref<8x128xf32, #tpu.memory_space<vmem>>, %arg10: memref<2x8x128xf32, #tpu.memory_space<vmem>>, %arg11: memref<64x384xf32, #tpu.memory_space<vmem>>, %arg12: memref<64x128xf32, #tpu.memory_space<vmem>>) attributes {dimension_semantics = [#tpu.dimension_semantics<arbitrary>], iteration_bounds = array<i64: 1>, scalar_prefetch = 0 : i64, scratch_operands = 3 : i64, tpu.core_type = #tpu.core_type<tc>, window_params = [{transform_indices = @transform_0, window_bounds = array<i64: 64, 128>}, {pipeline_mode = #tpu.pipeline_mode<synchronous>, transform_indices = @transform_1, window_bounds = array<i64: 128, 384>}, {pipeline_mode = #tpu.pipeline_mode<synchronous>, transform_indices = @transform_2, window_bounds = array<i64: 1, 128, 384>}, {pipeline_mode = #tpu.pipeline_mode<synchronous>, transform_indices = @transform_3, window_bounds = array<i64: 2, 128, 384>}, {pipeline_mode = #tpu.pipeline_mode<synchronous>, transform_indices = @transform_4, window_bounds = array<i64: 2, 1, 384>}, {pipeline_mode = #tpu.pipeline_mode<synchronous>, transform_indices = @transform_5, window_bounds = array<i64: 2, 1, 128>}, {pipeline_mode = #tpu.pipeline_mode<synchronous>, transform_indices = @transform_6, window_bounds = array<i64: 128, 128>}, {pipeline_mode = #tpu.pipeline_mode<synchronous>, transform_indices = @transform_7, window_bounds = array<i64: 1, 128>}, {pipeline_mode = #tpu.pipeline_mode<synchronous>, transform_indices = @transform_8, window_bounds = array<i64: 8, 128>}]} {
    %c0_i32 = arith.constant 0 : i32
    %0 = arith.cmpi eq, %arg0, %c0_i32 : i32
    %1 = arith.extui %0 : i1 to i32
    %c0_i32_0 = arith.constant 0 : i32
    %2 = arith.cmpi ne, %1, %c0_i32_0 : i32
    scf.if %2 {
      %cst_145 = arith.constant 0.000000e+00 : f32
      %509 = vector.broadcast %cst_145 : f32 to vector<8x128xf32>
      %c0_146 = arith.constant 0 : index
      %c0_147 = arith.constant 0 : index
      %510 = vector.load %arg9[%c0_146, %c0_147] : memref<8x128xf32, #tpu.memory_space<vmem>>, vector<8x128xf32>
      tpu.vector_store %arg9[%c0_146, %c0_147], %509 {strides = array<i32>} : memref<8x128xf32, #tpu.memory_space<vmem>>, vector<8x128xf32>,
    } else {
    }
    %c0_i32_1 = arith.constant 0 : i32
    %3 = arith.cmpi eq, %arg0, %c0_i32_1 : i32
    %4 = arith.extui %3 : i1 to i32
    %c0_i32_2 = arith.constant 0 : i32
    %5 = arith.cmpi ne, %4, %c0_i32_2 : i32
    scf.if %5 {
      %cst_145 = arith.constant 0.000000e+00 : f32
      %509 = vector.broadcast %cst_145 : f32 to vector<2x8x128xf32>
      %c0_146 = arith.constant 0 : index
      %c0_147 = arith.constant 0 : index
      %c0_148 = arith.constant 0 : index
      %510 = vector.load %arg10[%c0_146, %c0_147, %c0_148] : memref<2x8x128xf32, #tpu.memory_space<vmem>>, vector<2x8x128xf32>
      tpu.vector_store %arg10[%c0_146, %c0_147, %c0_148], %509 {strides = array<i32>} : memref<2x8x128xf32, #tpu.memory_space<vmem>>, vector<2x8x128xf32>,
    } else {
    }
    %c0 = arith.constant 0 : index
    %c0_3 = arith.constant 0 : index
    %6 = vector.load %arg1[%c0, %c0_3] : memref<64x128xbf16, #tpu.memory_space<vmem>>, vector<64x128xbf16>
    %c0_4 = arith.constant 0 : index
    %c0_5 = arith.constant 0 : index
    %7 = vector.load %arg2[%c0_4, %c0_5] : memref<128x384xbf16, #tpu.memory_space<vmem>>, vector<128x384xbf16>
    %c0_6 = arith.constant 0 : index
    %c0_7 = arith.constant 0 : index
    %c0_8 = arith.constant 0 : index
    %8 = vector.load %arg4[%c0_6, %c0_7, %c0_8] : memref<2x128x384xbf16, #tpu.memory_space<vmem>>, vector<1x128x384xbf16>
    %9 = vector.shape_cast %8 : vector<1x128x384xbf16> to vector<128x384xbf16>
    %c0_9 = arith.constant 0 : index
    %c0_10 = arith.constant 0 : index
    %c0_11 = arith.constant 0 : index
    %10 = vector.load %arg5[%c0_9, %c0_10, %c0_11] : memref<2x1x384xf32, #tpu.memory_space<vmem>>, vector<1x1x384xf32>
    %11 = vector.shape_cast %10 : vector<1x1x384xf32> to vector<1x384xf32>
    %c0_12 = arith.constant 0 : index
    %c0_13 = arith.constant 0 : index
    %c0_14 = arith.constant 0 : index
    %12 = vector.load %arg6[%c0_12, %c0_13, %c0_14] : memref<2x1x128xf32, #tpu.memory_space<vmem>>, vector<1x1x128xf32>
    %13 = vector.shape_cast %12 : vector<1x1x128xf32> to vector<1x128xf32>
    %c0_15 = arith.constant 0 : index
    %c0_16 = arith.constant 0 : index
    %c0_17 = arith.constant 0 : index
    %14 = vector.load %arg10[%c0_15, %c0_16, %c0_17] : memref<2x8x128xf32, #tpu.memory_space<vmem>>, vector<1x8x128xf32>
    %15 = vector.shape_cast %14 : vector<1x8x128xf32> to vector<8x128xf32>
    %cst = arith.constant dense<0.000000e+00> : vector<64x384xf32>
    %16 = tpu.matmul %6, %7, %cst {dimension_numbers = #tpu.dot_dimension_numbers<[1], [0], [0], [1], [0, 0, 1, 1], [], []>} : vector<64x128xbf16>, vector<128x384xbf16>, vector<64x384xf32> -> vector<64x384xf32>
    %17 = vector.broadcast %11 : vector<1x384xf32> to vector<64x384xf32>
    %18 = arith.addf %16, %17 : vector<64x384xf32>
    %c0_18 = arith.constant 0 : index
    %c0_19 = arith.constant 0 : index
    %19 = vector.load %arg11[%c0_18, %c0_19] : memref<64x384xf32, #tpu.memory_space<vmem>>, vector<64x384xf32>
    tpu.vector_store %arg11[%c0_18, %c0_19], %18 {strides = array<i32>} : memref<64x384xf32, #tpu.memory_space<vmem>>, vector<64x384xf32>,
    %c0_i32_20 = arith.constant 0 : i32
    %c8_i32 = arith.constant 8 : i32
    %20 = arith.muli %c0_i32_20, %c8_i32 : i32
    %21 = tpu.assume_multiple %20, 8 : i32
    %22 = arith.truncf %15 : vector<8x128xf32> to vector<8x128xbf16>
    %cst_21 = arith.constant dense<0.000000e+00> : vector<8x384xf32>
    %23 = tpu.matmul %22, %9, %cst_21 {dimension_numbers = #tpu.dot_dimension_numbers<[1], [0], [0], [1], [0, 0, 1, 1], [], []>} : vector<8x128xbf16>, vector<128x384xbf16>, vector<8x384xf32> -> vector<8x384xf32>
    %24 = arith.index_cast %21 : i32 to index
    %c0_22 = arith.constant 0 : index
    %25 = vector.load %arg11[%24, %c0_22] : memref<64x384xf32, #tpu.memory_space<vmem>>, vector<8x384xf32>
    %26 = vector.extract_strided_slice %25 {offsets = [0, 0], sizes = [8, 256], strides = [1, 1]} : vector<8x384xf32> to vector<8x256xf32>
    %27 = vector.extract_strided_slice %23 {offsets = [0, 0], sizes = [8, 256], strides = [1, 1]} : vector<8x384xf32> to vector<8x256xf32>
    %28 = arith.addf %26, %27 : vector<8x256xf32>
    %29 = arith.negf %28 : vector<8x256xf32>
    %30 = math.exp %29 : vector<8x256xf32>
    %cst_23 = arith.constant 1.000000e+00 : f32
    %31 = vector.broadcast %cst_23 : f32 to vector<8x256xf32>
    %32 = arith.addf %31, %30 : vector<8x256xf32>
    %33 = arith.divf %31, %32 : vector<8x256xf32>
    %34 = vector.extract_strided_slice %33 {offsets = [0, 0], sizes = [8, 128], strides = [1, 1]} : vector<8x256xf32> to vector<8x128xf32>
    %35 = vector.extract_strided_slice %33 {offsets = [0, 128], sizes = [8, 128], strides = [1, 1]} : vector<8x256xf32> to vector<8x128xf32>
    %36 = vector.extract_strided_slice %25 {offsets = [0, 256], sizes = [8, 128], strides = [1, 1]} : vector<8x384xf32> to vector<8x128xf32>
    %37 = vector.extract_strided_slice %23 {offsets = [0, 256], sizes = [8, 128], strides = [1, 1]} : vector<8x384xf32> to vector<8x128xf32>
    %38 = vector.broadcast %13 : vector<1x128xf32> to vector<8x128xf32>
    %39 = arith.addf %37, %38 : vector<8x128xf32>
    %40 = arith.mulf %34, %39 : vector<8x128xf32>
    %41 = arith.addf %36, %40 : vector<8x128xf32>
    %42 = math.tanh %41 : vector<8x128xf32>
    %cst_24 = arith.constant 1.000000e+00 : f32
    %43 = vector.broadcast %cst_24 : f32 to vector<8x128xf32>
    %44 = arith.subf %43, %35 : vector<8x128xf32>
    %45 = arith.mulf %44, %42 : vector<8x128xf32>
    %46 = arith.mulf %35, %15 : vector<8x128xf32>
    %47 = arith.addf %45, %46 : vector<8x128xf32>
    %48 = arith.index_cast %21 : i32 to index
    %c0_25 = arith.constant 0 : index
    %49 = vector.load %arg12[%48, %c0_25] : memref<64x128xf32, #tpu.memory_space<vmem>>, vector<8x128xf32>
    tpu.vector_store %arg12[%48, %c0_25], %47 {strides = array<i32>} : memref<64x128xf32, #tpu.memory_space<vmem>>, vector<8x128xf32>,
    %c1_i32 = arith.constant 1 : i32
    %c8_i32_26 = arith.constant 8 : i32
    %50 = arith.muli %c1_i32, %c8_i32_26 : i32
    %51 = tpu.assume_multiple %50, 8 : i32
    %52 = arith.truncf %47 : vector<8x128xf32> to vector<8x128xbf16>
    %cst_27 = arith.constant dense<0.000000e+00> : vector<8x384xf32>
    %53 = tpu.matmul %52, %9, %cst_27 {dimension_numbers = #tpu.dot_dimension_numbers<[1], [0], [0], [1], [0, 0, 1, 1], [], []>} : vector<8x128xbf16>, vector<128x384xbf16>, vector<8x384xf32> -> vector<8x384xf32>
    %54 = arith.index_cast %51 : i32 to index
    %c0_28 = arith.constant 0 : index
    %55 = vector.load %arg11[%54, %c0_28] : memref<64x384xf32, #tpu.memory_space<vmem>>, vector<8x384xf32>
    %56 = vector.extract_strided_slice %55 {offsets = [0, 0], sizes = [8, 256], strides = [1, 1]} : vector<8x384xf32> to vector<8x256xf32>
    %57 = vector.extract_strided_slice %53 {offsets = [0, 0], sizes = [8, 256], strides = [1, 1]} : vector<8x384xf32> to vector<8x256xf32>
    %58 = arith.addf %56, %57 : vector<8x256xf32>
    %59 = arith.negf %58 : vector<8x256xf32>
    %60 = math.exp %59 : vector<8x256xf32>
    %cst_29 = arith.constant 1.000000e+00 : f32
    %61 = vector.broadcast %cst_29 : f32 to vector<8x256xf32>
    %62 = arith.addf %61, %60 : vector<8x256xf32>
    %63 = arith.divf %61, %62 : vector<8x256xf32>
    %64 = vector.extract_strided_slice %63 {offsets = [0, 0], sizes = [8, 128], strides = [1, 1]} : vector<8x256xf32> to vector<8x128xf32>
    %65 = vector.extract_strided_slice %63 {offsets = [0, 128], sizes = [8, 128], strides = [1, 1]} : vector<8x256xf32> to vector<8x128xf32>
    %66 = vector.extract_strided_slice %55 {offsets = [0, 256], sizes = [8, 128], strides = [1, 1]} : vector<8x384xf32> to vector<8x128xf32>
    %67 = vector.extract_strided_slice %53 {offsets = [0, 256], sizes = [8, 128], strides = [1, 1]} : vector<8x384xf32> to vector<8x128xf32>
    %68 = vector.broadcast %13 : vector<1x128xf32> to vector<8x128xf32>
    %69 = arith.addf %67, %68 : vector<8x128xf32>
    %70 = arith.mulf %64, %69 : vector<8x128xf32>
    %71 = arith.addf %66, %70 : vector<8x128xf32>
    %72 = math.tanh %71 : vector<8x128xf32>
    %cst_30 = arith.constant 1.000000e+00 : f32
    %73 = vector.broadcast %cst_30 : f32 to vector<8x128xf32>
    %74 = arith.subf %73, %65 : vector<8x128xf32>
    %75 = arith.mulf %74, %72 : vector<8x128xf32>
    %76 = arith.mulf %65, %47 : vector<8x128xf32>
    %77 = arith.addf %75, %76 : vector<8x128xf32>
    %78 = arith.index_cast %51 : i32 to index
    %c0_31 = arith.constant 0 : index
    %79 = vector.load %arg12[%78, %c0_31] : memref<64x128xf32, #tpu.memory_space<vmem>>, vector<8x128xf32>
    tpu.vector_store %arg12[%78, %c0_31], %77 {strides = array<i32>} : memref<64x128xf32, #tpu.memory_space<vmem>>, vector<8x128xf32>,
    %c2_i32 = arith.constant 2 : i32
    %c8_i32_32 = arith.constant 8 : i32
    %80 = arith.muli %c2_i32, %c8_i32_32 : i32
    %81 = tpu.assume_multiple %80, 8 : i32
    %82 = arith.truncf %77 : vector<8x128xf32> to vector<8x128xbf16>
    %cst_33 = arith.constant dense<0.000000e+00> : vector<8x384xf32>
    %83 = tpu.matmul %82, %9, %cst_33 {dimension_numbers = #tpu.dot_dimension_numbers<[1], [0], [0], [1], [0, 0, 1, 1], [], []>} : vector<8x128xbf16>, vector<128x384xbf16>, vector<8x384xf32> -> vector<8x384xf32>
    %84 = arith.index_cast %81 : i32 to index
    %c0_34 = arith.constant 0 : index
    %85 = vector.load %arg11[%84, %c0_34] : memref<64x384xf32, #tpu.memory_space<vmem>>, vector<8x384xf32>
    %86 = vector.extract_strided_slice %85 {offsets = [0, 0], sizes = [8, 256], strides = [1, 1]} : vector<8x384xf32> to vector<8x256xf32>
    %87 = vector.extract_strided_slice %83 {offsets = [0, 0], sizes = [8, 256], strides = [1, 1]} : vector<8x384xf32> to vector<8x256xf32>
    %88 = arith.addf %86, %87 : vector<8x256xf32>
    %89 = arith.negf %88 : vector<8x256xf32>
    %90 = math.exp %89 : vector<8x256xf32>
    %cst_35 = arith.constant 1.000000e+00 : f32
    %91 = vector.broadcast %cst_35 : f32 to vector<8x256xf32>
    %92 = arith.addf %91, %90 : vector<8x256xf32>
    %93 = arith.divf %91, %92 : vector<8x256xf32>
    %94 = vector.extract_strided_slice %93 {offsets = [0, 0], sizes = [8, 128], strides = [1, 1]} : vector<8x256xf32> to vector<8x128xf32>
    %95 = vector.extract_strided_slice %93 {offsets = [0, 128], sizes = [8, 128], strides = [1, 1]} : vector<8x256xf32> to vector<8x128xf32>
    %96 = vector.extract_strided_slice %85 {offsets = [0, 256], sizes = [8, 128], strides = [1, 1]} : vector<8x384xf32> to vector<8x128xf32>
    %97 = vector.extract_strided_slice %83 {offsets = [0, 256], sizes = [8, 128], strides = [1, 1]} : vector<8x384xf32> to vector<8x128xf32>
    %98 = vector.broadcast %13 : vector<1x128xf32> to vector<8x128xf32>
    %99 = arith.addf %97, %98 : vector<8x128xf32>
    %100 = arith.mulf %94, %99 : vector<8x128xf32>
    %101 = arith.addf %96, %100 : vector<8x128xf32>
    %102 = math.tanh %101 : vector<8x128xf32>
    %cst_36 = arith.constant 1.000000e+00 : f32
    %103 = vector.broadcast %cst_36 : f32 to vector<8x128xf32>
    %104 = arith.subf %103, %95 : vector<8x128xf32>
    %105 = arith.mulf %104, %102 : vector<8x128xf32>
    %106 = arith.mulf %95, %77 : vector<8x128xf32>
    %107 = arith.addf %105, %106 : vector<8x128xf32>
    %108 = arith.index_cast %81 : i32 to index
    %c0_37 = arith.constant 0 : index
    %109 = vector.load %arg12[%108, %c0_37] : memref<64x128xf32, #tpu.memory_space<vmem>>, vector<8x128xf32>
    tpu.vector_store %arg12[%108, %c0_37], %107 {strides = array<i32>} : memref<64x128xf32, #tpu.memory_space<vmem>>, vector<8x128xf32>,
    %c3_i32 = arith.constant 3 : i32
    %c8_i32_38 = arith.constant 8 : i32
    %110 = arith.muli %c3_i32, %c8_i32_38 : i32
    %111 = tpu.assume_multiple %110, 8 : i32
    %112 = arith.truncf %107 : vector<8x128xf32> to vector<8x128xbf16>
    %cst_39 = arith.constant dense<0.000000e+00> : vector<8x384xf32>
    %113 = tpu.matmul %112, %9, %cst_39 {dimension_numbers = #tpu.dot_dimension_numbers<[1], [0], [0], [1], [0, 0, 1, 1], [], []>} : vector<8x128xbf16>, vector<128x384xbf16>, vector<8x384xf32> -> vector<8x384xf32>
    %114 = arith.index_cast %111 : i32 to index
    %c0_40 = arith.constant 0 : index
    %115 = vector.load %arg11[%114, %c0_40] : memref<64x384xf32, #tpu.memory_space<vmem>>, vector<8x384xf32>
    %116 = vector.extract_strided_slice %115 {offsets = [0, 0], sizes = [8, 256], strides = [1, 1]} : vector<8x384xf32> to vector<8x256xf32>
    %117 = vector.extract_strided_slice %113 {offsets = [0, 0], sizes = [8, 256], strides = [1, 1]} : vector<8x384xf32> to vector<8x256xf32>
    %118 = arith.addf %116, %117 : vector<8x256xf32>
    %119 = arith.negf %118 : vector<8x256xf32>
    %120 = math.exp %119 : vector<8x256xf32>
    %cst_41 = arith.constant 1.000000e+00 : f32
    %121 = vector.broadcast %cst_41 : f32 to vector<8x256xf32>
    %122 = arith.addf %121, %120 : vector<8x256xf32>
    %123 = arith.divf %121, %122 : vector<8x256xf32>
    %124 = vector.extract_strided_slice %123 {offsets = [0, 0], sizes = [8, 128], strides = [1, 1]} : vector<8x256xf32> to vector<8x128xf32>
    %125 = vector.extract_strided_slice %123 {offsets = [0, 128], sizes = [8, 128], strides = [1, 1]} : vector<8x256xf32> to vector<8x128xf32>
    %126 = vector.extract_strided_slice %115 {offsets = [0, 256], sizes = [8, 128], strides = [1, 1]} : vector<8x384xf32> to vector<8x128xf32>
    %127 = vector.extract_strided_slice %113 {offsets = [0, 256], sizes = [8, 128], strides = [1, 1]} : vector<8x384xf32> to vector<8x128xf32>
    %128 = vector.broadcast %13 : vector<1x128xf32> to vector<8x128xf32>
    %129 = arith.addf %127, %128 : vector<8x128xf32>
    %130 = arith.mulf %124, %129 : vector<8x128xf32>
    %131 = arith.addf %126, %130 : vector<8x128xf32>
    %132 = math.tanh %131 : vector<8x128xf32>
    %cst_42 = arith.constant 1.000000e+00 : f32
    %133 = vector.broadcast %cst_42 : f32 to vector<8x128xf32>
    %134 = arith.subf %133, %125 : vector<8x128xf32>
    %135 = arith.mulf %134, %132 : vector<8x128xf32>
    %136 = arith.mulf %125, %107 : vector<8x128xf32>
    %137 = arith.addf %135, %136 : vector<8x128xf32>
    %138 = arith.index_cast %111 : i32 to index
    %c0_43 = arith.constant 0 : index
    %139 = vector.load %arg12[%138, %c0_43] : memref<64x128xf32, #tpu.memory_space<vmem>>, vector<8x128xf32>
    tpu.vector_store %arg12[%138, %c0_43], %137 {strides = array<i32>} : memref<64x128xf32, #tpu.memory_space<vmem>>, vector<8x128xf32>,
    %c4_i32 = arith.constant 4 : i32
    %c8_i32_44 = arith.constant 8 : i32
    %140 = arith.muli %c4_i32, %c8_i32_44 : i32
    %141 = tpu.assume_multiple %140, 8 : i32
    %142 = arith.truncf %137 : vector<8x128xf32> to vector<8x128xbf16>
    %cst_45 = arith.constant dense<0.000000e+00> : vector<8x384xf32>
    %143 = tpu.matmul %142, %9, %cst_45 {dimension_numbers = #tpu.dot_dimension_numbers<[1], [0], [0], [1], [0, 0, 1, 1], [], []>} : vector<8x128xbf16>, vector<128x384xbf16>, vector<8x384xf32> -> vector<8x384xf32>
    %144 = arith.index_cast %141 : i32 to index
    %c0_46 = arith.constant 0 : index
    %145 = vector.load %arg11[%144, %c0_46] : memref<64x384xf32, #tpu.memory_space<vmem>>, vector<8x384xf32>
    %146 = vector.extract_strided_slice %145 {offsets = [0, 0], sizes = [8, 256], strides = [1, 1]} : vector<8x384xf32> to vector<8x256xf32>
    %147 = vector.extract_strided_slice %143 {offsets = [0, 0], sizes = [8, 256], strides = [1, 1]} : vector<8x384xf32> to vector<8x256xf32>
    %148 = arith.addf %146, %147 : vector<8x256xf32>
    %149 = arith.negf %148 : vector<8x256xf32>
    %150 = math.exp %149 : vector<8x256xf32>
    %cst_47 = arith.constant 1.000000e+00 : f32
    %151 = vector.broadcast %cst_47 : f32 to vector<8x256xf32>
    %152 = arith.addf %151, %150 : vector<8x256xf32>
    %153 = arith.divf %151, %152 : vector<8x256xf32>
    %154 = vector.extract_strided_slice %153 {offsets = [0, 0], sizes = [8, 128], strides = [1, 1]} : vector<8x256xf32> to vector<8x128xf32>
    %155 = vector.extract_strided_slice %153 {offsets = [0, 128], sizes = [8, 128], strides = [1, 1]} : vector<8x256xf32> to vector<8x128xf32>
    %156 = vector.extract_strided_slice %145 {offsets = [0, 256], sizes = [8, 128], strides = [1, 1]} : vector<8x384xf32> to vector<8x128xf32>
    %157 = vector.extract_strided_slice %143 {offsets = [0, 256], sizes = [8, 128], strides = [1, 1]} : vector<8x384xf32> to vector<8x128xf32>
    %158 = vector.broadcast %13 : vector<1x128xf32> to vector<8x128xf32>
    %159 = arith.addf %157, %158 : vector<8x128xf32>
    %160 = arith.mulf %154, %159 : vector<8x128xf32>
    %161 = arith.addf %156, %160 : vector<8x128xf32>
    %162 = math.tanh %161 : vector<8x128xf32>
    %cst_48 = arith.constant 1.000000e+00 : f32
    %163 = vector.broadcast %cst_48 : f32 to vector<8x128xf32>
    %164 = arith.subf %163, %155 : vector<8x128xf32>
    %165 = arith.mulf %164, %162 : vector<8x128xf32>
    %166 = arith.mulf %155, %137 : vector<8x128xf32>
    %167 = arith.addf %165, %166 : vector<8x128xf32>
    %168 = arith.index_cast %141 : i32 to index
    %c0_49 = arith.constant 0 : index
    %169 = vector.load %arg12[%168, %c0_49] : memref<64x128xf32, #tpu.memory_space<vmem>>, vector<8x128xf32>
    tpu.vector_store %arg12[%168, %c0_49], %167 {strides = array<i32>} : memref<64x128xf32, #tpu.memory_space<vmem>>, vector<8x128xf32>,
    %c5_i32 = arith.constant 5 : i32
    %c8_i32_50 = arith.constant 8 : i32
    %170 = arith.muli %c5_i32, %c8_i32_50 : i32
    %171 = tpu.assume_multiple %170, 8 : i32
    %172 = arith.truncf %167 : vector<8x128xf32> to vector<8x128xbf16>
    %cst_51 = arith.constant dense<0.000000e+00> : vector<8x384xf32>
    %173 = tpu.matmul %172, %9, %cst_51 {dimension_numbers = #tpu.dot_dimension_numbers<[1], [0], [0], [1], [0, 0, 1, 1], [], []>} : vector<8x128xbf16>, vector<128x384xbf16>, vector<8x384xf32> -> vector<8x384xf32>
    %174 = arith.index_cast %171 : i32 to index
    %c0_52 = arith.constant 0 : index
    %175 = vector.load %arg11[%174, %c0_52] : memref<64x384xf32, #tpu.memory_space<vmem>>, vector<8x384xf32>
    %176 = vector.extract_strided_slice %175 {offsets = [0, 0], sizes = [8, 256], strides = [1, 1]} : vector<8x384xf32> to vector<8x256xf32>
    %177 = vector.extract_strided_slice %173 {offsets = [0, 0], sizes = [8, 256], strides = [1, 1]} : vector<8x384xf32> to vector<8x256xf32>
    %178 = arith.addf %176, %177 : vector<8x256xf32>
    %179 = arith.negf %178 : vector<8x256xf32>
    %180 = math.exp %179 : vector<8x256xf32>
    %cst_53 = arith.constant 1.000000e+00 : f32
    %181 = vector.broadcast %cst_53 : f32 to vector<8x256xf32>
    %182 = arith.addf %181, %180 : vector<8x256xf32>
    %183 = arith.divf %181, %182 : vector<8x256xf32>
    %184 = vector.extract_strided_slice %183 {offsets = [0, 0], sizes = [8, 128], strides = [1, 1]} : vector<8x256xf32> to vector<8x128xf32>
    %185 = vector.extract_strided_slice %183 {offsets = [0, 128], sizes = [8, 128], strides = [1, 1]} : vector<8x256xf32> to vector<8x128xf32>
    %186 = vector.extract_strided_slice %175 {offsets = [0, 256], sizes = [8, 128], strides = [1, 1]} : vector<8x384xf32> to vector<8x128xf32>
    %187 = vector.extract_strided_slice %173 {offsets = [0, 256], sizes = [8, 128], strides = [1, 1]} : vector<8x384xf32> to vector<8x128xf32>
    %188 = vector.broadcast %13 : vector<1x128xf32> to vector<8x128xf32>
    %189 = arith.addf %187, %188 : vector<8x128xf32>
    %190 = arith.mulf %184, %189 : vector<8x128xf32>
    %191 = arith.addf %186, %190 : vector<8x128xf32>
    %192 = math.tanh %191 : vector<8x128xf32>
    %cst_54 = arith.constant 1.000000e+00 : f32
    %193 = vector.broadcast %cst_54 : f32 to vector<8x128xf32>
    %194 = arith.subf %193, %185 : vector<8x128xf32>
    %195 = arith.mulf %194, %192 : vector<8x128xf32>
    %196 = arith.mulf %185, %167 : vector<8x128xf32>
    %197 = arith.addf %195, %196 : vector<8x128xf32>
    %198 = arith.index_cast %171 : i32 to index
    %c0_55 = arith.constant 0 : index
    %199 = vector.load %arg12[%198, %c0_55] : memref<64x128xf32, #tpu.memory_space<vmem>>, vector<8x128xf32>
    tpu.vector_store %arg12[%198, %c0_55], %197 {strides = array<i32>} : memref<64x128xf32, #tpu.memory_space<vmem>>, vector<8x128xf32>,
    %c6_i32 = arith.constant 6 : i32
    %c8_i32_56 = arith.constant 8 : i32
    %200 = arith.muli %c6_i32, %c8_i32_56 : i32
    %201 = tpu.assume_multiple %200, 8 : i32
    %202 = arith.truncf %197 : vector<8x128xf32> to vector<8x128xbf16>
    %cst_57 = arith.constant dense<0.000000e+00> : vector<8x384xf32>
    %203 = tpu.matmul %202, %9, %cst_57 {dimension_numbers = #tpu.dot_dimension_numbers<[1], [0], [0], [1], [0, 0, 1, 1], [], []>} : vector<8x128xbf16>, vector<128x384xbf16>, vector<8x384xf32> -> vector<8x384xf32>
    %204 = arith.index_cast %201 : i32 to index
    %c0_58 = arith.constant 0 : index
    %205 = vector.load %arg11[%204, %c0_58] : memref<64x384xf32, #tpu.memory_space<vmem>>, vector<8x384xf32>
    %206 = vector.extract_strided_slice %205 {offsets = [0, 0], sizes = [8, 256], strides = [1, 1]} : vector<8x384xf32> to vector<8x256xf32>
    %207 = vector.extract_strided_slice %203 {offsets = [0, 0], sizes = [8, 256], strides = [1, 1]} : vector<8x384xf32> to vector<8x256xf32>
    %208 = arith.addf %206, %207 : vector<8x256xf32>
    %209 = arith.negf %208 : vector<8x256xf32>
    %210 = math.exp %209 : vector<8x256xf32>
    %cst_59 = arith.constant 1.000000e+00 : f32
    %211 = vector.broadcast %cst_59 : f32 to vector<8x256xf32>
    %212 = arith.addf %211, %210 : vector<8x256xf32>
    %213 = arith.divf %211, %212 : vector<8x256xf32>
    %214 = vector.extract_strided_slice %213 {offsets = [0, 0], sizes = [8, 128], strides = [1, 1]} : vector<8x256xf32> to vector<8x128xf32>
    %215 = vector.extract_strided_slice %213 {offsets = [0, 128], sizes = [8, 128], strides = [1, 1]} : vector<8x256xf32> to vector<8x128xf32>
    %216 = vector.extract_strided_slice %205 {offsets = [0, 256], sizes = [8, 128], strides = [1, 1]} : vector<8x384xf32> to vector<8x128xf32>
    %217 = vector.extract_strided_slice %203 {offsets = [0, 256], sizes = [8, 128], strides = [1, 1]} : vector<8x384xf32> to vector<8x128xf32>
    %218 = vector.broadcast %13 : vector<1x128xf32> to vector<8x128xf32>
    %219 = arith.addf %217, %218 : vector<8x128xf32>
    %220 = arith.mulf %214, %219 : vector<8x128xf32>
    %221 = arith.addf %216, %220 : vector<8x128xf32>
    %222 = math.tanh %221 : vector<8x128xf32>
    %cst_60 = arith.constant 1.000000e+00 : f32
    %223 = vector.broadcast %cst_60 : f32 to vector<8x128xf32>
    %224 = arith.subf %223, %215 : vector<8x128xf32>
    %225 = arith.mulf %224, %222 : vector<8x128xf32>
    %226 = arith.mulf %215, %197 : vector<8x128xf32>
    %227 = arith.addf %225, %226 : vector<8x128xf32>
    %228 = arith.index_cast %201 : i32 to index
    %c0_61 = arith.constant 0 : index
    %229 = vector.load %arg12[%228, %c0_61] : memref<64x128xf32, #tpu.memory_space<vmem>>, vector<8x128xf32>
    tpu.vector_store %arg12[%228, %c0_61], %227 {strides = array<i32>} : memref<64x128xf32, #tpu.memory_space<vmem>>, vector<8x128xf32>,
    %c7_i32 = arith.constant 7 : i32
    %c8_i32_62 = arith.constant 8 : i32
    %230 = arith.muli %c7_i32, %c8_i32_62 : i32
    %231 = tpu.assume_multiple %230, 8 : i32
    %232 = arith.truncf %227 : vector<8x128xf32> to vector<8x128xbf16>
    %cst_63 = arith.constant dense<0.000000e+00> : vector<8x384xf32>
    %233 = tpu.matmul %232, %9, %cst_63 {dimension_numbers = #tpu.dot_dimension_numbers<[1], [0], [0], [1], [0, 0, 1, 1], [], []>} : vector<8x128xbf16>, vector<128x384xbf16>, vector<8x384xf32> -> vector<8x384xf32>
    %234 = arith.index_cast %231 : i32 to index
    %c0_64 = arith.constant 0 : index
    %235 = vector.load %arg11[%234, %c0_64] : memref<64x384xf32, #tpu.memory_space<vmem>>, vector<8x384xf32>
    %236 = vector.extract_strided_slice %235 {offsets = [0, 0], sizes = [8, 256], strides = [1, 1]} : vector<8x384xf32> to vector<8x256xf32>
    %237 = vector.extract_strided_slice %233 {offsets = [0, 0], sizes = [8, 256], strides = [1, 1]} : vector<8x384xf32> to vector<8x256xf32>
    %238 = arith.addf %236, %237 : vector<8x256xf32>
    %239 = arith.negf %238 : vector<8x256xf32>
    %240 = math.exp %239 : vector<8x256xf32>
    %cst_65 = arith.constant 1.000000e+00 : f32
    %241 = vector.broadcast %cst_65 : f32 to vector<8x256xf32>
    %242 = arith.addf %241, %240 : vector<8x256xf32>
    %243 = arith.divf %241, %242 : vector<8x256xf32>
    %244 = vector.extract_strided_slice %243 {offsets = [0, 0], sizes = [8, 128], strides = [1, 1]} : vector<8x256xf32> to vector<8x128xf32>
    %245 = vector.extract_strided_slice %243 {offsets = [0, 128], sizes = [8, 128], strides = [1, 1]} : vector<8x256xf32> to vector<8x128xf32>
    %246 = vector.extract_strided_slice %235 {offsets = [0, 256], sizes = [8, 128], strides = [1, 1]} : vector<8x384xf32> to vector<8x128xf32>
    %247 = vector.extract_strided_slice %233 {offsets = [0, 256], sizes = [8, 128], strides = [1, 1]} : vector<8x384xf32> to vector<8x128xf32>
    %248 = vector.broadcast %13 : vector<1x128xf32> to vector<8x128xf32>
    %249 = arith.addf %247, %248 : vector<8x128xf32>
    %250 = arith.mulf %244, %249 : vector<8x128xf32>
    %251 = arith.addf %246, %250 : vector<8x128xf32>
    %252 = math.tanh %251 : vector<8x128xf32>
    %cst_66 = arith.constant 1.000000e+00 : f32
    %253 = vector.broadcast %cst_66 : f32 to vector<8x128xf32>
    %254 = arith.subf %253, %245 : vector<8x128xf32>
    %255 = arith.mulf %254, %252 : vector<8x128xf32>
    %256 = arith.mulf %245, %227 : vector<8x128xf32>
    %257 = arith.addf %255, %256 : vector<8x128xf32>
    %258 = arith.index_cast %231 : i32 to index
    %c0_67 = arith.constant 0 : index
    %259 = vector.load %arg12[%258, %c0_67] : memref<64x128xf32, #tpu.memory_space<vmem>>, vector<8x128xf32>
    tpu.vector_store %arg12[%258, %c0_67], %257 {strides = array<i32>} : memref<64x128xf32, #tpu.memory_space<vmem>>, vector<8x128xf32>,
    %c8_i32_68 = arith.constant 8 : i32
    %c0_69 = arith.constant 0 : index
    %c0_70 = arith.constant 0 : index
    %c0_71 = arith.constant 0 : index
    %260 = vector.load %arg10[%c0_69, %c0_70, %c0_71] : memref<2x8x128xf32, #tpu.memory_space<vmem>>, vector<1x8x128xf32>
    %261 = vector.shape_cast %260 : vector<1x8x128xf32> to vector<8x128xf32>
    %262 = vector.shape_cast %257 : vector<8x128xf32> to vector<1x8x128xf32>
    tpu.vector_store %arg10[%c0_69, %c0_70, %c0_71], %262 {strides = array<i32>} : memref<2x8x128xf32, #tpu.memory_space<vmem>>, vector<1x8x128xf32>,
    %c0_72 = arith.constant 0 : index
    %c0_73 = arith.constant 0 : index
    %263 = vector.load %arg12[%c0_72, %c0_73] : memref<64x128xf32, #tpu.memory_space<vmem>>, vector<64x128xf32>
    %c0_74 = arith.constant 0 : index
    %c0_75 = arith.constant 0 : index
    %c0_76 = arith.constant 0 : index
    %264 = vector.load %arg3[%c0_74, %c0_75, %c0_76] : memref<1x128x384xbf16, #tpu.memory_space<vmem>>, vector<1x128x384xbf16>
    %265 = vector.shape_cast %264 : vector<1x128x384xbf16> to vector<128x384xbf16>
    %c1 = arith.constant 1 : index
    %c0_77 = arith.constant 0 : index
    %c0_78 = arith.constant 0 : index
    %266 = vector.load %arg4[%c1, %c0_77, %c0_78] : memref<2x128x384xbf16, #tpu.memory_space<vmem>>, vector<1x128x384xbf16>
    %267 = vector.shape_cast %266 : vector<1x128x384xbf16> to vector<128x384xbf16>
    %c1_79 = arith.constant 1 : index
    %c0_80 = arith.constant 0 : index
    %c0_81 = arith.constant 0 : index
    %268 = vector.load %arg5[%c1_79, %c0_80, %c0_81] : memref<2x1x384xf32, #tpu.memory_space<vmem>>, vector<1x1x384xf32>
    %269 = vector.shape_cast %268 : vector<1x1x384xf32> to vector<1x384xf32>
    %c1_82 = arith.constant 1 : index
    %c0_83 = arith.constant 0 : index
    %c0_84 = arith.constant 0 : index
    %270 = vector.load %arg6[%c1_82, %c0_83, %c0_84] : memref<2x1x128xf32, #tpu.memory_space<vmem>>, vector<1x1x128xf32>
    %271 = vector.shape_cast %270 : vector<1x1x128xf32> to vector<1x128xf32>
    %c1_85 = arith.constant 1 : index
    %c0_86 = arith.constant 0 : index
    %c0_87 = arith.constant 0 : index
    %272 = vector.load %arg10[%c1_85, %c0_86, %c0_87] : memref<2x8x128xf32, #tpu.memory_space<vmem>>, vector<1x8x128xf32>
    %273 = vector.shape_cast %272 : vector<1x8x128xf32> to vector<8x128xf32>
    %274 = arith.truncf %263 : vector<64x128xf32> to vector<64x128xbf16>
    %cst_88 = arith.constant dense<0.000000e+00> : vector<64x384xf32>
    %275 = tpu.matmul %274, %265, %cst_88 {dimension_numbers = #tpu.dot_dimension_numbers<[1], [0], [0], [1], [0, 0, 1, 1], [], []>} : vector<64x128xbf16>, vector<128x384xbf16>, vector<64x384xf32> -> vector<64x384xf32>
    %276 = vector.broadcast %269 : vector<1x384xf32> to vector<64x384xf32>
    %277 = arith.addf %275, %276 : vector<64x384xf32>
    %c0_89 = arith.constant 0 : index
    %c0_90 = arith.constant 0 : index
    %278 = vector.load %arg11[%c0_89, %c0_90] : memref<64x384xf32, #tpu.memory_space<vmem>>, vector<64x384xf32>
    tpu.vector_store %arg11[%c0_89, %c0_90], %277 {strides = array<i32>} : memref<64x384xf32, #tpu.memory_space<vmem>>, vector<64x384xf32>,
    %c0_i32_91 = arith.constant 0 : i32
    %c8_i32_92 = arith.constant 8 : i32
    %279 = arith.muli %c0_i32_91, %c8_i32_92 : i32
    %280 = tpu.assume_multiple %279, 8 : i32
    %281 = arith.truncf %273 : vector<8x128xf32> to vector<8x128xbf16>
    %cst_93 = arith.constant dense<0.000000e+00> : vector<8x384xf32>
    %282 = tpu.matmul %281, %267, %cst_93 {dimension_numbers = #tpu.dot_dimension_numbers<[1], [0], [0], [1], [0, 0, 1, 1], [], []>} : vector<8x128xbf16>, vector<128x384xbf16>, vector<8x384xf32> -> vector<8x384xf32>
    %283 = arith.index_cast %280 : i32 to index
    %c0_94 = arith.constant 0 : index
    %284 = vector.load %arg11[%283, %c0_94] : memref<64x384xf32, #tpu.memory_space<vmem>>, vector<8x384xf32>
    %285 = vector.extract_strided_slice %284 {offsets = [0, 0], sizes = [8, 256], strides = [1, 1]} : vector<8x384xf32> to vector<8x256xf32>
    %286 = vector.extract_strided_slice %282 {offsets = [0, 0], sizes = [8, 256], strides = [1, 1]} : vector<8x384xf32> to vector<8x256xf32>
    %287 = arith.addf %285, %286 : vector<8x256xf32>
    %288 = arith.negf %287 : vector<8x256xf32>
    %289 = math.exp %288 : vector<8x256xf32>
    %cst_95 = arith.constant 1.000000e+00 : f32
    %290 = vector.broadcast %cst_95 : f32 to vector<8x256xf32>
    %291 = arith.addf %290, %289 : vector<8x256xf32>
    %292 = arith.divf %290, %291 : vector<8x256xf32>
    %293 = vector.extract_strided_slice %292 {offsets = [0, 0], sizes = [8, 128], strides = [1, 1]} : vector<8x256xf32> to vector<8x128xf32>
    %294 = vector.extract_strided_slice %292 {offsets = [0, 128], sizes = [8, 128], strides = [1, 1]} : vector<8x256xf32> to vector<8x128xf32>
    %295 = vector.extract_strided_slice %284 {offsets = [0, 256], sizes = [8, 128], strides = [1, 1]} : vector<8x384xf32> to vector<8x128xf32>
    %296 = vector.extract_strided_slice %282 {offsets = [0, 256], sizes = [8, 128], strides = [1, 1]} : vector<8x384xf32> to vector<8x128xf32>
    %297 = vector.broadcast %271 : vector<1x128xf32> to vector<8x128xf32>
    %298 = arith.addf %296, %297 : vector<8x128xf32>
    %299 = arith.mulf %293, %298 : vector<8x128xf32>
    %300 = arith.addf %295, %299 : vector<8x128xf32>
    %301 = math.tanh %300 : vector<8x128xf32>
    %cst_96 = arith.constant 1.000000e+00 : f32
    %302 = vector.broadcast %cst_96 : f32 to vector<8x128xf32>
    %303 = arith.subf %302, %294 : vector<8x128xf32>
    %304 = arith.mulf %303, %301 : vector<8x128xf32>
    %305 = arith.mulf %294, %273 : vector<8x128xf32>
    %306 = arith.addf %304, %305 : vector<8x128xf32>
    %c1_i32_97 = arith.constant 1 : i32
    %c8_i32_98 = arith.constant 8 : i32
    %307 = arith.muli %c1_i32_97, %c8_i32_98 : i32
    %308 = tpu.assume_multiple %307, 8 : i32
    %309 = arith.truncf %306 : vector<8x128xf32> to vector<8x128xbf16>
    %cst_99 = arith.constant dense<0.000000e+00> : vector<8x384xf32>
    %310 = tpu.matmul %309, %267, %cst_99 {dimension_numbers = #tpu.dot_dimension_numbers<[1], [0], [0], [1], [0, 0, 1, 1], [], []>} : vector<8x128xbf16>, vector<128x384xbf16>, vector<8x384xf32> -> vector<8x384xf32>
    %311 = arith.index_cast %308 : i32 to index
    %c0_100 = arith.constant 0 : index
    %312 = vector.load %arg11[%311, %c0_100] : memref<64x384xf32, #tpu.memory_space<vmem>>, vector<8x384xf32>
    %313 = vector.extract_strided_slice %312 {offsets = [0, 0], sizes = [8, 256], strides = [1, 1]} : vector<8x384xf32> to vector<8x256xf32>
    %314 = vector.extract_strided_slice %310 {offsets = [0, 0], sizes = [8, 256], strides = [1, 1]} : vector<8x384xf32> to vector<8x256xf32>
    %315 = arith.addf %313, %314 : vector<8x256xf32>
    %316 = arith.negf %315 : vector<8x256xf32>
    %317 = math.exp %316 : vector<8x256xf32>
    %cst_101 = arith.constant 1.000000e+00 : f32
    %318 = vector.broadcast %cst_101 : f32 to vector<8x256xf32>
    %319 = arith.addf %318, %317 : vector<8x256xf32>
    %320 = arith.divf %318, %319 : vector<8x256xf32>
    %321 = vector.extract_strided_slice %320 {offsets = [0, 0], sizes = [8, 128], strides = [1, 1]} : vector<8x256xf32> to vector<8x128xf32>
    %322 = vector.extract_strided_slice %320 {offsets = [0, 128], sizes = [8, 128], strides = [1, 1]} : vector<8x256xf32> to vector<8x128xf32>
    %323 = vector.extract_strided_slice %312 {offsets = [0, 256], sizes = [8, 128], strides = [1, 1]} : vector<8x384xf32> to vector<8x128xf32>
    %324 = vector.extract_strided_slice %310 {offsets = [0, 256], sizes = [8, 128], strides = [1, 1]} : vector<8x384xf32> to vector<8x128xf32>
    %325 = vector.broadcast %271 : vector<1x128xf32> to vector<8x128xf32>
    %326 = arith.addf %324, %325 : vector<8x128xf32>
    %327 = arith.mulf %321, %326 : vector<8x128xf32>
    %328 = arith.addf %323, %327 : vector<8x128xf32>
    %329 = math.tanh %328 : vector<8x128xf32>
    %cst_102 = arith.constant 1.000000e+00 : f32
    %330 = vector.broadcast %cst_102 : f32 to vector<8x128xf32>
    %331 = arith.subf %330, %322 : vector<8x128xf32>
    %332 = arith.mulf %331, %329 : vector<8x128xf32>
    %333 = arith.mulf %322, %306 : vector<8x128xf32>
    %334 = arith.addf %332, %333 : vector<8x128xf32>
    %c2_i32_103 = arith.constant 2 : i32
    %c8_i32_104 = arith.constant 8 : i32
    %335 = arith.muli %c2_i32_103, %c8_i32_104 : i32
    %336 = tpu.assume_multiple %335, 8 : i32
    %337 = arith.truncf %334 : vector<8x128xf32> to vector<8x128xbf16>
    %cst_105 = arith.constant dense<0.000000e+00> : vector<8x384xf32>
    %338 = tpu.matmul %337, %267, %cst_105 {dimension_numbers = #tpu.dot_dimension_numbers<[1], [0], [0], [1], [0, 0, 1, 1], [], []>} : vector<8x128xbf16>, vector<128x384xbf16>, vector<8x384xf32> -> vector<8x384xf32>
    %339 = arith.index_cast %336 : i32 to index
    %c0_106 = arith.constant 0 : index
    %340 = vector.load %arg11[%339, %c0_106] : memref<64x384xf32, #tpu.memory_space<vmem>>, vector<8x384xf32>
    %341 = vector.extract_strided_slice %340 {offsets = [0, 0], sizes = [8, 256], strides = [1, 1]} : vector<8x384xf32> to vector<8x256xf32>
    %342 = vector.extract_strided_slice %338 {offsets = [0, 0], sizes = [8, 256], strides = [1, 1]} : vector<8x384xf32> to vector<8x256xf32>
    %343 = arith.addf %341, %342 : vector<8x256xf32>
    %344 = arith.negf %343 : vector<8x256xf32>
    %345 = math.exp %344 : vector<8x256xf32>
    %cst_107 = arith.constant 1.000000e+00 : f32
    %346 = vector.broadcast %cst_107 : f32 to vector<8x256xf32>
    %347 = arith.addf %346, %345 : vector<8x256xf32>
    %348 = arith.divf %346, %347 : vector<8x256xf32>
    %349 = vector.extract_strided_slice %348 {offsets = [0, 0], sizes = [8, 128], strides = [1, 1]} : vector<8x256xf32> to vector<8x128xf32>
    %350 = vector.extract_strided_slice %348 {offsets = [0, 128], sizes = [8, 128], strides = [1, 1]} : vector<8x256xf32> to vector<8x128xf32>
    %351 = vector.extract_strided_slice %340 {offsets = [0, 256], sizes = [8, 128], strides = [1, 1]} : vector<8x384xf32> to vector<8x128xf32>
    %352 = vector.extract_strided_slice %338 {offsets = [0, 256], sizes = [8, 128], strides = [1, 1]} : vector<8x384xf32> to vector<8x128xf32>
    %353 = vector.broadcast %271 : vector<1x128xf32> to vector<8x128xf32>
    %354 = arith.addf %352, %353 : vector<8x128xf32>
    %355 = arith.mulf %349, %354 : vector<8x128xf32>
    %356 = arith.addf %351, %355 : vector<8x128xf32>
    %357 = math.tanh %356 : vector<8x128xf32>
    %cst_108 = arith.constant 1.000000e+00 : f32
    %358 = vector.broadcast %cst_108 : f32 to vector<8x128xf32>
    %359 = arith.subf %358, %350 : vector<8x128xf32>
    %360 = arith.mulf %359, %357 : vector<8x128xf32>
    %361 = arith.mulf %350, %334 : vector<8x128xf32>
    %362 = arith.addf %360, %361 : vector<8x128xf32>
    %c3_i32_109 = arith.constant 3 : i32
    %c8_i32_110 = arith.constant 8 : i32
    %363 = arith.muli %c3_i32_109, %c8_i32_110 : i32
    %364 = tpu.assume_multiple %363, 8 : i32
    %365 = arith.truncf %362 : vector<8x128xf32> to vector<8x128xbf16>
    %cst_111 = arith.constant dense<0.000000e+00> : vector<8x384xf32>
    %366 = tpu.matmul %365, %267, %cst_111 {dimension_numbers = #tpu.dot_dimension_numbers<[1], [0], [0], [1], [0, 0, 1, 1], [], []>} : vector<8x128xbf16>, vector<128x384xbf16>, vector<8x384xf32> -> vector<8x384xf32>
    %367 = arith.index_cast %364 : i32 to index
    %c0_112 = arith.constant 0 : index
    %368 = vector.load %arg11[%367, %c0_112] : memref<64x384xf32, #tpu.memory_space<vmem>>, vector<8x384xf32>
    %369 = vector.extract_strided_slice %368 {offsets = [0, 0], sizes = [8, 256], strides = [1, 1]} : vector<8x384xf32> to vector<8x256xf32>
    %370 = vector.extract_strided_slice %366 {offsets = [0, 0], sizes = [8, 256], strides = [1, 1]} : vector<8x384xf32> to vector<8x256xf32>
    %371 = arith.addf %369, %370 : vector<8x256xf32>
    %372 = arith.negf %371 : vector<8x256xf32>
    %373 = math.exp %372 : vector<8x256xf32>
    %cst_113 = arith.constant 1.000000e+00 : f32
    %374 = vector.broadcast %cst_113 : f32 to vector<8x256xf32>
    %375 = arith.addf %374, %373 : vector<8x256xf32>
    %376 = arith.divf %374, %375 : vector<8x256xf32>
    %377 = vector.extract_strided_slice %376 {offsets = [0, 0], sizes = [8, 128], strides = [1, 1]} : vector<8x256xf32> to vector<8x128xf32>
    %378 = vector.extract_strided_slice %376 {offsets = [0, 128], sizes = [8, 128], strides = [1, 1]} : vector<8x256xf32> to vector<8x128xf32>
    %379 = vector.extract_strided_slice %368 {offsets = [0, 256], sizes = [8, 128], strides = [1, 1]} : vector<8x384xf32> to vector<8x128xf32>
    %380 = vector.extract_strided_slice %366 {offsets = [0, 256], sizes = [8, 128], strides = [1, 1]} : vector<8x384xf32> to vector<8x128xf32>
    %381 = vector.broadcast %271 : vector<1x128xf32> to vector<8x128xf32>
    %382 = arith.addf %380, %381 : vector<8x128xf32>
    %383 = arith.mulf %377, %382 : vector<8x128xf32>
    %384 = arith.addf %379, %383 : vector<8x128xf32>
    %385 = math.tanh %384 : vector<8x128xf32>
    %cst_114 = arith.constant 1.000000e+00 : f32
    %386 = vector.broadcast %cst_114 : f32 to vector<8x128xf32>
    %387 = arith.subf %386, %378 : vector<8x128xf32>
    %388 = arith.mulf %387, %385 : vector<8x128xf32>
    %389 = arith.mulf %378, %362 : vector<8x128xf32>
    %390 = arith.addf %388, %389 : vector<8x128xf32>
    %c4_i32_115 = arith.constant 4 : i32
    %c8_i32_116 = arith.constant 8 : i32
    %391 = arith.muli %c4_i32_115, %c8_i32_116 : i32
    %392 = tpu.assume_multiple %391, 8 : i32
    %393 = arith.truncf %390 : vector<8x128xf32> to vector<8x128xbf16>
    %cst_117 = arith.constant dense<0.000000e+00> : vector<8x384xf32>
    %394 = tpu.matmul %393, %267, %cst_117 {dimension_numbers = #tpu.dot_dimension_numbers<[1], [0], [0], [1], [0, 0, 1, 1], [], []>} : vector<8x128xbf16>, vector<128x384xbf16>, vector<8x384xf32> -> vector<8x384xf32>
    %395 = arith.index_cast %392 : i32 to index
    %c0_118 = arith.constant 0 : index
    %396 = vector.load %arg11[%395, %c0_118] : memref<64x384xf32, #tpu.memory_space<vmem>>, vector<8x384xf32>
    %397 = vector.extract_strided_slice %396 {offsets = [0, 0], sizes = [8, 256], strides = [1, 1]} : vector<8x384xf32> to vector<8x256xf32>
    %398 = vector.extract_strided_slice %394 {offsets = [0, 0], sizes = [8, 256], strides = [1, 1]} : vector<8x384xf32> to vector<8x256xf32>
    %399 = arith.addf %397, %398 : vector<8x256xf32>
    %400 = arith.negf %399 : vector<8x256xf32>
    %401 = math.exp %400 : vector<8x256xf32>
    %cst_119 = arith.constant 1.000000e+00 : f32
    %402 = vector.broadcast %cst_119 : f32 to vector<8x256xf32>
    %403 = arith.addf %402, %401 : vector<8x256xf32>
    %404 = arith.divf %402, %403 : vector<8x256xf32>
    %405 = vector.extract_strided_slice %404 {offsets = [0, 0], sizes = [8, 128], strides = [1, 1]} : vector<8x256xf32> to vector<8x128xf32>
    %406 = vector.extract_strided_slice %404 {offsets = [0, 128], sizes = [8, 128], strides = [1, 1]} : vector<8x256xf32> to vector<8x128xf32>
    %407 = vector.extract_strided_slice %396 {offsets = [0, 256], sizes = [8, 128], strides = [1, 1]} : vector<8x384xf32> to vector<8x128xf32>
    %408 = vector.extract_strided_slice %394 {offsets = [0, 256], sizes = [8, 128], strides = [1, 1]} : vector<8x384xf32> to vector<8x128xf32>
    %409 = vector.broadcast %271 : vector<1x128xf32> to vector<8x128xf32>
    %410 = arith.addf %408, %409 : vector<8x128xf32>
    %411 = arith.mulf %405, %410 : vector<8x128xf32>
    %412 = arith.addf %407, %411 : vector<8x128xf32>
    %413 = math.tanh %412 : vector<8x128xf32>
    %cst_120 = arith.constant 1.000000e+00 : f32
    %414 = vector.broadcast %cst_120 : f32 to vector<8x128xf32>
    %415 = arith.subf %414, %406 : vector<8x128xf32>
    %416 = arith.mulf %415, %413 : vector<8x128xf32>
    %417 = arith.mulf %406, %390 : vector<8x128xf32>
    %418 = arith.addf %416, %417 : vector<8x128xf32>
    %c5_i32_121 = arith.constant 5 : i32
    %c8_i32_122 = arith.constant 8 : i32
    %419 = arith.muli %c5_i32_121, %c8_i32_122 : i32
    %420 = tpu.assume_multiple %419, 8 : i32
    %421 = arith.truncf %418 : vector<8x128xf32> to vector<8x128xbf16>
    %cst_123 = arith.constant dense<0.000000e+00> : vector<8x384xf32>
    %422 = tpu.matmul %421, %267, %cst_123 {dimension_numbers = #tpu.dot_dimension_numbers<[1], [0], [0], [1], [0, 0, 1, 1], [], []>} : vector<8x128xbf16>, vector<128x384xbf16>, vector<8x384xf32> -> vector<8x384xf32>
    %423 = arith.index_cast %420 : i32 to index
    %c0_124 = arith.constant 0 : index
    %424 = vector.load %arg11[%423, %c0_124] : memref<64x384xf32, #tpu.memory_space<vmem>>, vector<8x384xf32>
    %425 = vector.extract_strided_slice %424 {offsets = [0, 0], sizes = [8, 256], strides = [1, 1]} : vector<8x384xf32> to vector<8x256xf32>
    %426 = vector.extract_strided_slice %422 {offsets = [0, 0], sizes = [8, 256], strides = [1, 1]} : vector<8x384xf32> to vector<8x256xf32>
    %427 = arith.addf %425, %426 : vector<8x256xf32>
    %428 = arith.negf %427 : vector<8x256xf32>
    %429 = math.exp %428 : vector<8x256xf32>
    %cst_125 = arith.constant 1.000000e+00 : f32
    %430 = vector.broadcast %cst_125 : f32 to vector<8x256xf32>
    %431 = arith.addf %430, %429 : vector<8x256xf32>
    %432 = arith.divf %430, %431 : vector<8x256xf32>
    %433 = vector.extract_strided_slice %432 {offsets = [0, 0], sizes = [8, 128], strides = [1, 1]} : vector<8x256xf32> to vector<8x128xf32>
    %434 = vector.extract_strided_slice %432 {offsets = [0, 128], sizes = [8, 128], strides = [1, 1]} : vector<8x256xf32> to vector<8x128xf32>
    %435 = vector.extract_strided_slice %424 {offsets = [0, 256], sizes = [8, 128], strides = [1, 1]} : vector<8x384xf32> to vector<8x128xf32>
    %436 = vector.extract_strided_slice %422 {offsets = [0, 256], sizes = [8, 128], strides = [1, 1]} : vector<8x384xf32> to vector<8x128xf32>
    %437 = vector.broadcast %271 : vector<1x128xf32> to vector<8x128xf32>
    %438 = arith.addf %436, %437 : vector<8x128xf32>
    %439 = arith.mulf %433, %438 : vector<8x128xf32>
    %440 = arith.addf %435, %439 : vector<8x128xf32>
    %441 = math.tanh %440 : vector<8x128xf32>
    %cst_126 = arith.constant 1.000000e+00 : f32
    %442 = vector.broadcast %cst_126 : f32 to vector<8x128xf32>
    %443 = arith.subf %442, %434 : vector<8x128xf32>
    %444 = arith.mulf %443, %441 : vector<8x128xf32>
    %445 = arith.mulf %434, %418 : vector<8x128xf32>
    %446 = arith.addf %444, %445 : vector<8x128xf32>
    %c6_i32_127 = arith.constant 6 : i32
    %c8_i32_128 = arith.constant 8 : i32
    %447 = arith.muli %c6_i32_127, %c8_i32_128 : i32
    %448 = tpu.assume_multiple %447, 8 : i32
    %449 = arith.truncf %446 : vector<8x128xf32> to vector<8x128xbf16>
    %cst_129 = arith.constant dense<0.000000e+00> : vector<8x384xf32>
    %450 = tpu.matmul %449, %267, %cst_129 {dimension_numbers = #tpu.dot_dimension_numbers<[1], [0], [0], [1], [0, 0, 1, 1], [], []>} : vector<8x128xbf16>, vector<128x384xbf16>, vector<8x384xf32> -> vector<8x384xf32>
    %451 = arith.index_cast %448 : i32 to index
    %c0_130 = arith.constant 0 : index
    %452 = vector.load %arg11[%451, %c0_130] : memref<64x384xf32, #tpu.memory_space<vmem>>, vector<8x384xf32>
    %453 = vector.extract_strided_slice %452 {offsets = [0, 0], sizes = [8, 256], strides = [1, 1]} : vector<8x384xf32> to vector<8x256xf32>
    %454 = vector.extract_strided_slice %450 {offsets = [0, 0], sizes = [8, 256], strides = [1, 1]} : vector<8x384xf32> to vector<8x256xf32>
    %455 = arith.addf %453, %454 : vector<8x256xf32>
    %456 = arith.negf %455 : vector<8x256xf32>
    %457 = math.exp %456 : vector<8x256xf32>
    %cst_131 = arith.constant 1.000000e+00 : f32
    %458 = vector.broadcast %cst_131 : f32 to vector<8x256xf32>
    %459 = arith.addf %458, %457 : vector<8x256xf32>
    %460 = arith.divf %458, %459 : vector<8x256xf32>
    %461 = vector.extract_strided_slice %460 {offsets = [0, 0], sizes = [8, 128], strides = [1, 1]} : vector<8x256xf32> to vector<8x128xf32>
    %462 = vector.extract_strided_slice %460 {offsets = [0, 128], sizes = [8, 128], strides = [1, 1]} : vector<8x256xf32> to vector<8x128xf32>
    %463 = vector.extract_strided_slice %452 {offsets = [0, 256], sizes = [8, 128], strides = [1, 1]} : vector<8x384xf32> to vector<8x128xf32>
    %464 = vector.extract_strided_slice %450 {offsets = [0, 256], sizes = [8, 128], strides = [1, 1]} : vector<8x384xf32> to vector<8x128xf32>
    %465 = vector.broadcast %271 : vector<1x128xf32> to vector<8x128xf32>
    %466 = arith.addf %464, %465 : vector<8x128xf32>
    %467 = arith.mulf %461, %466 : vector<8x128xf32>
    %468 = arith.addf %463, %467 : vector<8x128xf32>
    %469 = math.tanh %468 : vector<8x128xf32>
    %cst_132 = arith.constant 1.000000e+00 : f32
    %470 = vector.broadcast %cst_132 : f32 to vector<8x128xf32>
    %471 = arith.subf %470, %462 : vector<8x128xf32>
    %472 = arith.mulf %471, %469 : vector<8x128xf32>
    %473 = arith.mulf %462, %446 : vector<8x128xf32>
    %474 = arith.addf %472, %473 : vector<8x128xf32>
    %c7_i32_133 = arith.constant 7 : i32
    %c8_i32_134 = arith.constant 8 : i32
    %475 = arith.muli %c7_i32_133, %c8_i32_134 : i32
    %476 = tpu.assume_multiple %475, 8 : i32
    %477 = arith.truncf %474 : vector<8x128xf32> to vector<8x128xbf16>
    %cst_135 = arith.constant dense<0.000000e+00> : vector<8x384xf32>
    %478 = tpu.matmul %477, %267, %cst_135 {dimension_numbers = #tpu.dot_dimension_numbers<[1], [0], [0], [1], [0, 0, 1, 1], [], []>} : vector<8x128xbf16>, vector<128x384xbf16>, vector<8x384xf32> -> vector<8x384xf32>
    %479 = arith.index_cast %476 : i32 to index
    %c0_136 = arith.constant 0 : index
    %480 = vector.load %arg11[%479, %c0_136] : memref<64x384xf32, #tpu.memory_space<vmem>>, vector<8x384xf32>
    %481 = vector.extract_strided_slice %480 {offsets = [0, 0], sizes = [8, 256], strides = [1, 1]} : vector<8x384xf32> to vector<8x256xf32>
    %482 = vector.extract_strided_slice %478 {offsets = [0, 0], sizes = [8, 256], strides = [1, 1]} : vector<8x384xf32> to vector<8x256xf32>
    %483 = arith.addf %481, %482 : vector<8x256xf32>
    %484 = arith.negf %483 : vector<8x256xf32>
    %485 = math.exp %484 : vector<8x256xf32>
    %cst_137 = arith.constant 1.000000e+00 : f32
    %486 = vector.broadcast %cst_137 : f32 to vector<8x256xf32>
    %487 = arith.addf %486, %485 : vector<8x256xf32>
    %488 = arith.divf %486, %487 : vector<8x256xf32>
    %489 = vector.extract_strided_slice %488 {offsets = [0, 0], sizes = [8, 128], strides = [1, 1]} : vector<8x256xf32> to vector<8x128xf32>
    %490 = vector.extract_strided_slice %488 {offsets = [0, 128], sizes = [8, 128], strides = [1, 1]} : vector<8x256xf32> to vector<8x128xf32>
    %491 = vector.extract_strided_slice %480 {offsets = [0, 256], sizes = [8, 128], strides = [1, 1]} : vector<8x384xf32> to vector<8x128xf32>
    %492 = vector.extract_strided_slice %478 {offsets = [0, 256], sizes = [8, 128], strides = [1, 1]} : vector<8x384xf32> to vector<8x128xf32>
    %493 = vector.broadcast %271 : vector<1x128xf32> to vector<8x128xf32>
    %494 = arith.addf %492, %493 : vector<8x128xf32>
    %495 = arith.mulf %489, %494 : vector<8x128xf32>
    %496 = arith.addf %491, %495 : vector<8x128xf32>
    %497 = math.tanh %496 : vector<8x128xf32>
    %cst_138 = arith.constant 1.000000e+00 : f32
    %498 = vector.broadcast %cst_138 : f32 to vector<8x128xf32>
    %499 = arith.subf %498, %490 : vector<8x128xf32>
    %500 = arith.mulf %499, %497 : vector<8x128xf32>
    %501 = arith.mulf %490, %474 : vector<8x128xf32>
    %502 = arith.addf %500, %501 : vector<8x128xf32>
    %c8_i32_139 = arith.constant 8 : i32
    %c1_140 = arith.constant 1 : index
    %c0_141 = arith.constant 0 : index
    %c0_142 = arith.constant 0 : index
    %503 = vector.load %arg10[%c1_140, %c0_141, %c0_142] : memref<2x8x128xf32, #tpu.memory_space<vmem>>, vector<1x8x128xf32>
    %504 = vector.shape_cast %503 : vector<1x8x128xf32> to vector<8x128xf32>
    %505 = vector.shape_cast %502 : vector<8x128xf32> to vector<1x8x128xf32>
    tpu.vector_store %arg10[%c1_140, %c0_141, %c0_142], %505 {strides = array<i32>} : memref<2x8x128xf32, #tpu.memory_space<vmem>>, vector<1x8x128xf32>,
    %c0_i32_143 = arith.constant 0 : i32
    %506 = arith.cmpi eq, %arg0, %c0_i32_143 : i32
    %507 = arith.extui %506 : i1 to i32
    %c0_i32_144 = arith.constant 0 : i32
    %508 = arith.cmpi ne, %507, %c0_i32_144 : i32
    scf.if %508 {
      %c1_145 = arith.constant 1 : index
      %c0_146 = arith.constant 0 : index
      %c0_147 = arith.constant 0 : index
      %509 = vector.load %arg10[%c1_145, %c0_146, %c0_147] : memref<2x8x128xf32, #tpu.memory_space<vmem>>, vector<1x8x128xf32>
      %510 = vector.shape_cast %509 : vector<1x8x128xf32> to vector<8x128xf32>
      %511 = arith.truncf %510 : vector<8x128xf32> to vector<8x128xbf16>
      %c0_148 = arith.constant 0 : index
      %c0_149 = arith.constant 0 : index
      %512 = vector.load %arg7[%c0_148, %c0_149] : memref<128x128xbf16, #tpu.memory_space<vmem>>, vector<128x128xbf16>
      %cst_150 = arith.constant dense<0.000000e+00> : vector<8x128xf32>
      %513 = tpu.matmul %511, %512, %cst_150 {dimension_numbers = #tpu.dot_dimension_numbers<[1], [0], [0], [1], [0, 0, 1, 1], [], []>} : vector<8x128xbf16>, vector<128x128xbf16>, vector<8x128xf32> -> vector<8x128xf32>
      %c0_151 = arith.constant 0 : index
      %c0_152 = arith.constant 0 : index
      %514 = vector.load %arg8[%c0_151, %c0_152] : memref<1x128xf32, #tpu.memory_space<vmem>>, vector<1x128xf32>
      %515 = vector.broadcast %514 : vector<1x128xf32> to vector<8x128xf32>
      %516 = arith.addf %513, %515 : vector<8x128xf32>
      %c0_153 = arith.constant 0 : index
      %c0_154 = arith.constant 0 : index
      %517 = vector.load %arg9[%c0_153, %c0_154] : memref<8x128xf32, #tpu.memory_space<vmem>>, vector<8x128xf32>
      tpu.vector_store %arg9[%c0_153, %c0_154], %516 {strides = array<i32>} : memref<8x128xf32, #tpu.memory_space<vmem>>, vector<8x128xf32>,
    } else {
    }
    return
  }
  func.func @transform_0(%arg0: i32) -> (i32, i32) {
    %c0_i32 = arith.constant 0 : i32
    %c0_i32_0 = arith.constant 0 : i32
    return %arg0, %c0_i32 : i32, i32
  }
  func.func @transform_1(%arg0: i32) -> (i32, i32) {
    %c0_i32 = arith.constant 0 : i32
    %c0_i32_0 = arith.constant 0 : i32
    %c0_i32_1 = arith.constant 0 : i32
    return %c0_i32, %c0_i32_0 : i32, i32
  }
  func.func @transform_2(%arg0: i32) -> (i32, i32, i32) {
    %c0_i32 = arith.constant 0 : i32
    %c0_i32_0 = arith.constant 0 : i32
    %c0_i32_1 = arith.constant 0 : i32
    %c0_i32_2 = arith.constant 0 : i32
    return %c0_i32, %c0_i32_0, %c0_i32_1 : i32, i32, i32
  }
  func.func @transform_3(%arg0: i32) -> (i32, i32, i32) {
    %c0_i32 = arith.constant 0 : i32
    %c0_i32_0 = arith.constant 0 : i32
    %c0_i32_1 = arith.constant 0 : i32
    %c0_i32_2 = arith.constant 0 : i32
    return %c0_i32, %c0_i32_0, %c0_i32_1 : i32, i32, i32
  }
  func.func @transform_4(%arg0: i32) -> (i32, i32, i32) {
    %c0_i32 = arith.constant 0 : i32
    %c0_i32_0 = arith.constant 0 : i32
    %c0_i32_1 = arith.constant 0 : i32
    %c0_i32_2 = arith.constant 0 : i32
    return %c0_i32, %c0_i32_0, %c0_i32_1 : i32, i32, i32
  }
  func.func @transform_5(%arg0: i32) -> (i32, i32, i32) {
    %c0_i32 = arith.constant 0 : i32
    %c0_i32_0 = arith.constant 0 : i32
    %c0_i32_1 = arith.constant 0 : i32
    %c0_i32_2 = arith.constant 0 : i32
    return %c0_i32, %c0_i32_0, %c0_i32_1 : i32, i32, i32
  }
  func.func @transform_6(%arg0: i32) -> (i32, i32) {
    %c0_i32 = arith.constant 0 : i32
    %c0_i32_0 = arith.constant 0 : i32
    %c0_i32_1 = arith.constant 0 : i32
    return %c0_i32, %c0_i32_0 : i32, i32
  }
  func.func @transform_7(%arg0: i32) -> (i32, i32) {
    %c0_i32 = arith.constant 0 : i32
    %c0_i32_0 = arith.constant 0 : i32
    %c0_i32_1 = arith.constant 0 : i32
    return %c0_i32, %c0_i32_0 : i32, i32
  }
  func.func @transform_8(%arg0: i32) -> (i32, i32) {
    %c0_i32 = arith.constant 0 : i32
    %c0_i32_0 = arith.constant 0 : i32
    %c0_i32_1 = arith.constant 0 : i32
    return %c0_i32, %c0_i32_0 : i32, i32
  }
}

</mosaic_0001>

<bundles_post_ra>
// kernel: _lambda_.1
= control target key start
LH: loop header
LB: loop body
LE: loop exit
PB: predicated region body
PF: predicated region fallthrough
CT: control target
= control target key end

     0   :  { %13 = vsyncpa [#allocation6], 0  ;;  %s4412_s0 = inlined_call_operand.vmem [shape: bf16[64,128], index: 0, kind: input, shape index: {}]   ;;  %s4413_s1 = inlined_call_operand.hbm [shape: bf16[128,384], index: 1, kind: input, shape index: {}]   ;;  %s4414_s2 = inlined_call_operand.hbm [shape: bf16[1,128,384], index: 2, kind: input, shape index: {}]   ;;  %s4415_s3 = inlined_call_operand.hbm [shape: bf16[2,128,384], index: 3, kind: input, shape index: {}]   ;;  %s4416_s4 = inlined_call_operand.hbm [shape: f32[2,1,384], index: 4, kind: input, shape index: {}]   ;;  %s4417_s5 = inlined_call_operand.vmem [shape: f32[2,1,128], index: 5, kind: input, shape index: {}]   ;;  %s4418_s6 = inlined_call_operand.vmem [shape: bf16[128,128], index: 6, kind: input, shape index: {}]   ;;  %s4419_s7 = inlined_call_operand.vmem [shape: f32[1,128], index: 7, kind: input, shape index: {}]   ;;  %s4420_s8 = inlined_call_operand.vmem [shape: f32[8,128], index: 8, kind: output, shape index: {}]  }
   0x1   :  { %14 = vsyncpa [#allocation8], 0 }
   0x2   :  { %15 = vsyncpa [#allocation11], 0  ;;  %s35_s29 = sshll.u32 %s4414_s2, 4  ;;  %s3483_s30 = smov [#allocation7]   ;;  %s36_s29 = int_to_ptr.hbm [resolvable:$true] %s35_s29 }
   0x3   :  { %s37_s9 = sshll.u32 %s3483_s30, 4  ;;  %s22_s12 = sshll.u32 %s4413_s1, 4  ;;  %s38_s9 = int_to_ptr.vmem [resolvable:$true] %s37_s9  ;;  %s23_s12 = int_to_ptr.hbm [resolvable:$true] %s22_s12 }
   0x4   :  { %s3484_s13 = smov 192   ;;  %s3485_s14 = smov 12  }
   0x5   :  { %43 = dma.hbm_to_vmem [thread:$0]  %s36_s29, 3072, %s38_s9, [#allocation8], %s3484_s13, %s3484_s13, %s3485_s14  }
   0x6   :  { %s3486_s15 = smov [#allocation5]   ;;  %s48_s19 = sshll.u32 %s4415_s3, 4  ;;  %s49_s19 = int_to_ptr.hbm [resolvable:$true] %s48_s19 }
   0x7   :  { %s24_s16 = sshll.u32 %s3486_s15, 4  ;;  %s61_s21 = sshll.u32 %s4416_s4, 4  ;;  %s25_s16 = int_to_ptr.vmem [resolvable:$true] %s24_s16  ;;  %s62_s21 = int_to_ptr.hbm [resolvable:$true] %s61_s21 }
   0x8   :  { %30 = dma.hbm_to_vmem [thread:$0]  %s23_s12, 3072, %s25_s16, [#allocation6], %s3484_s13, %s3484_s13, %s3485_s14  }
   0x9   :  { %s3487_s22 = smov [#allocation9]   ;;  %s3488_s1 = smov [#allocation10]  }
   0xa   :  { %s50_s23 = sshll.u32 %s3487_s22, 4  ;;  %s63_s24 = sshll.u32 %s3488_s1, 4  ;;  %s51_s23 = int_to_ptr.vmem [resolvable:$true] %s50_s23  ;;  %s64_s24 = int_to_ptr.vmem [resolvable:$true] %s63_s24 }
   0xb   :  { %56 = dma.hbm_to_vmem [thread:$0]  %s49_s19, 6144, %s51_s23, [#allocation8], %s3484_s13, %s3484_s13, %s3485_s14  }
   0xc   :  { %s3489_s25 = smov 48   ;;  %s3490_s26 = smov 3  }
   0xd   :  { %69 = dma.hbm_to_vmem [thread:$0]  %s62_s21, 96, %s64_s24, [#allocation11], %s3489_s25, %s3489_s25, %s3490_s26  }
   0xe   :  { %3477 = dma.done.wait [#allocation6], 3072  }
   0xf   :  { %3478 = vsyncadd [#allocation6], 4294964224 }
  0x10   :  { %3479 = dma.done.wait [#allocation8], 9216  }
  0x11   :  { %3480 = vsyncadd [#allocation8], 4294958080 }
  0x12   :  { %3481 = dma.done.wait [#allocation11], 96  }
  0x13   :  { %3482 = vsyncadd [#allocation11], 4294967200  ;;  %v2735_v0 = vld [vmem:[#allocation5 + $0xa8] sm:$0xf]  ;;  %v3124_v1 = vld [vmem:[#allocation5 + $0xb0] sm:$0xf0] }
  0x14   :  { %v2831_v2 = vld [vmem:[#allocation9 + $0xa8] sm:$0xf]  ;;  %v2736_v3 = vor.u32 %v3124_v1, %v2735_v0  ;;  %v3148_v4 = vld [vmem:[#allocation9 + $0xb0] sm:$0xf0]  ;;  %v2723_v5 = vld [vmem:[#allocation5 + $0x90] sm:$0xf] }
  0x15   :  { %v3121_v6 = vld [vmem:[#allocation5 + $0x98] sm:$0xf0]  ;;  %v3549_v7 = vor.u32 %v3148_v4, %v2831_v2  ;;  %v2819_v8 = vld [vmem:[#allocation9 + $0x90] sm:$0xf]  ;;  %v2711_v12 = vld [vmem:[#allocation5 + $0x78] sm:$0xf] }
  0x16   :  { %v3145_v9 = vld [vmem:[#allocation9 + $0x98] sm:$0xf0]  ;;  %333 = vmatpush.bf16.msra.mxu0 %v2736_v3  ;;  %v2724_v10 = vor.u32 %v3121_v6, %v2723_v5  ;;  %v3118_v13 = vld [vmem:[#allocation5 + $0x80] sm:$0xf0]  ;;  %v2807_v14 = vld [vmem:[#allocation9 + $0x78] sm:$0xf] }
  0x17   :  { %573 = vmatpush.bf16.msra.mxu3 %v3549_v7  ;;  %v3552_v11 = vor.u32 %v3145_v9, %v2819_v8  ;;  %v3142_v15 = vld [vmem:[#allocation9 + $0x80] sm:$0xf0]  ;;  %v2712_v16 = vor.u32 %v3118_v13, %v2711_v12  ;;  %v2699_v18 = vld [vmem:[#allocation5 + $0x60] sm:$0xf]  ;;  %v3115_v19 = vld [vmem:[#allocation5 + $0x68] sm:$0xf0] }
  0x18   :  { %v3555_v17 = vor.u32 %v3142_v15, %v2807_v14  ;;  %v2795_v20 = vld [vmem:[#allocation9 + $0x60] sm:$0xf]  ;;  %v3139_v21 = vld [vmem:[#allocation9 + $0x68] sm:$0xf0]  ;;  %v2700_v22 = vor.u32 %v3115_v19, %v2699_v18  ;;  %v2687_v23 = vld [vmem:[#allocation5 + $0x48] sm:$0xf] }
  0x19   :  { %v3558_v24 = vor.u32 %v3139_v21, %v2795_v20  ;;  %v3112_v25 = vld [vmem:[#allocation5 + $0x50] sm:$0xf0]  ;;  %v3123_v26 = vld [vmem:[#allocation5 + $0xac] sm:$0xf]  ;;  %v2737_v27 = vld [vmem:[#allocation5 + $0xb4] sm:$0xf0] }
  0x1a   :  { %334 = vmatpush.bf16.msra.mxu0 %v2724_v10  ;;  %v2783_v28 = vld [vmem:[#allocation9 + $0x48] sm:$0xf]  ;;  %v3136_v29 = vld [vmem:[#allocation9 + $0x50] sm:$0xf0]  ;;  %v2740_v30 = vor.u32 %v3123_v26, %v2737_v27  ;;  %v2725_v32 = vld [vmem:[#allocation5 + $0x9c] sm:$0xf0]  ;;  %v2688_v33 = vor.u32 %v3112_v25, %v2687_v23 }
  0x1b   :  { %574 = vmatpush.bf16.msra.mxu3 %v3552_v11  ;;  %v3120_v31 = vld [vmem:[#allocation5 + $0x94] sm:$0xf]  ;;  %v2675_v34 = vld [vmem:[#allocation5 + $0x30] sm:$0xf]  ;;  %v3561_v36 = vor.u32 %v3136_v29, %v2783_v28  ;;  %v3109_v37 = vld [vmem:[#allocation5 + $0x38] sm:$0xf0] }
  0x1c   :  { %362 = vmatpush.bf16.msra.mxu1 %v2740_v30  ;;  %v2728_v35 = vor.u32 %v3120_v31, %v2725_v32  ;;  %v3117_v38 = vld [vmem:[#allocation5 + $0x7c] sm:$0xf]  ;;  %v2713_v39 = vld [vmem:[#allocation5 + $0x84] sm:$0xf0]  ;;  %v2771_v40 = vld [vmem:[#allocation9 + $0x30] sm:$0xf]  ;;  %v2676_v42 = vor.u32 %v3109_v37, %v2675_v34 }
  0x1d   :  { %v3133_v41 = vld [vmem:[#allocation9 + $0x38] sm:$0xf0]  ;;  %v2663_v43 = vld [vmem:[#allocation5 + $0x18] sm:$0xf]  ;;  %v3106_v44 = vld [vmem:[#allocation5 + $0x20] sm:$0xf0]  ;;  %v2716_v46 = vor.u32 %v3117_v38, %v2713_v39 }
  0x1e   :  { %335 = vmatpush.bf16.msra.mxu0 %v2712_v16  ;;  %v2759_v45 = vld [vmem:[#allocation9 + $0x18] sm:$0xf]  ;;  %v3564_v47 = vor.u32 %v3133_v41, %v2771_v40  ;;  %v3114_v48 = vld [vmem:[#allocation5 + $0x64] sm:$0xf]  ;;  %v2701_v49 = vld [vmem:[#allocation5 + $0x6c] sm:$0xf0]  ;;  %v2664_v56 = vor.u32 %v3106_v44, %v2663_v43 }
  0x1f   :  { %575 = vmatpush.bf16.msra.mxu3 %v3555_v17  ;;  %v3130_v50 = vld [vmem:[#allocation9 + $0x20] sm:$0xf0]  ;;  %v2743_v51 = vld [vmem:[#allocation5 + $0xb0] sm:$0xf]  ;;  %v3125_v52 = vld [vmem:[#allocation5 + $0xb8] sm:$0xf0]  ;;  %v2704_v58 = vor.u32 %v3114_v48, %v2701_v49 }
  0x20   :  { %363 = vmatpush.bf16.msra.mxu1 %v2728_v35  ;;  %v2651_v53 = vld [vmem:[#allocation5] sm:$0xf]  ;;  %v3103_v54 = vld [vmem:[#allocation5 + $0x8] sm:$0xf0]  ;;  %v2744_v55 = vor.u32 %v3125_v52, %v2743_v51  ;;  %v3567_v59 = vor.u32 %v3130_v50, %v2759_v45  ;;  %v2689_v62 = vld [vmem:[#allocation5 + $0x54] sm:$0xf0] }
  0x21   :  { %v2747_v57 = vld [vmem:[#allocation9] sm:$0xf]  ;;  %v3127_v60 = vld [vmem:[#allocation9 + $0x8] sm:$0xf0]  ;;  %v2839_v63 = vld [vmem:[#allocation9 + $0xb0] sm:$0xf]  ;;  %v2652_v5 = vor.u32 %v3103_v54, %v2651_v53 }
  0x22   :  { %336 = vmatpush.bf16.msra.mxu0 %v2700_v22  ;;  %v3111_v61 = vld [vmem:[#allocation5 + $0x4c] sm:$0xf]  ;;  %391 = vmatpush.bf16.msra.mxu2 %v2744_v55  ;;  %v3149_v0 = vld [vmem:[#allocation9 + $0xb8] sm:$0xf0]  ;;  %v2731_v1 = vld [vmem:[#allocation5 + $0x98] sm:$0xf]  ;;  %v3570_v9 = vor.u32 %v3127_v60, %v2747_v57 }
  0x23   :  { %576 = vmatpush.bf16.msra.mxu3 %v3558_v24  ;;  %v3147_v2 = vld [vmem:[#allocation9 + $0xac] sm:$0xf]  ;;  %v2833_v3 = vld [vmem:[#allocation9 + $0xb4] sm:$0xf0]  ;;  %v3122_v4 = vld [vmem:[#allocation5 + $0xa0] sm:$0xf0]  ;;  %v2692_v6 = vor.u32 %v3111_v61, %v2689_v62  ;;  %v3572_v10 = vor.u32 %v3149_v0, %v2839_v63 }
  0x24   :  { %364 = vmatpush.bf16.msra.mxu1 %v2716_v46  ;;  %v2732_v8 = vor.u32 %v3122_v4, %v2731_v1  ;;  %v2827_v12 = vld [vmem:[#allocation9 + $0x98] sm:$0xf]  ;;  %v3108_v13 = vld [vmem:[#allocation5 + $0x34] sm:$0xf]  ;;  %v2677_v14 = vld [vmem:[#allocation5 + $0x3c] sm:$0xf0]  ;;  %v3574_v15 = vor.u32 %v3147_v2, %v2833_v3 }
  0x25   :  { %v3146_v16 = vld [vmem:[#allocation9 + $0xa0] sm:$0xf0]  ;;  %v2719_v18 = vld [vmem:[#allocation5 + $0x80] sm:$0xf]  ;;  %v3119_v19 = vld [vmem:[#allocation5 + $0x88] sm:$0xf0]  ;;  %v2680_v25 = vor.u32 %v3108_v13, %v2677_v14 }
  0x26   :  { %337 = vmatpush.bf16.msra.mxu0 %v2688_v33  ;;  %392 = vmatpush.bf16.msra.mxu2 %v2732_v8  ;;  %v3579_v20 = vld [vmem:[%s4412_s0] sm:$0xff]  ;;  %v3144_v21 = vld [vmem:[#allocation9 + $0x94] sm:$0xf]  ;;  %v2720_v23 = vor.u32 %v3119_v19, %v2719_v18  ;;  %v3583_v26 = vor.u32 %v3146_v16, %v2827_v12  ;;  %v3105_v28 = vld [vmem:[#allocation5 + $0x1c] sm:$0xf]  ;;  %v4421_v39 = vmov 0.0|0.0  }
  0x27   :  { %577 = vmatpush.bf16.msra.mxu3 %v3561_v36  ;;  %v2821_v22 = vld [vmem:[#allocation9 + $0x9c] sm:$0xf0]  ;;  %v2665_v29 = vld [vmem:[#allocation5 + $0x24] sm:$0xf0]  ;;  %v3143_v31 = vld [vmem:[#allocation9 + $0x88] sm:$0xf0] }
  0x28   :  { %365 = vmatpush.bf16.msra.mxu1 %v2704_v58  ;;  %v2815_v27 = vld [vmem:[#allocation9 + $0x80] sm:$0xf]  ;;  %v3586_v30 = vor.u32 %v3144_v21, %v2821_v22  ;;  %v2707_v32 = vld [vmem:[#allocation5 + $0x68] sm:$0xf]  ;;  %v3116_v33 = vld [vmem:[#allocation5 + $0x70] sm:$0xf0]  ;;  %v2668_v40 = vor.u32 %v3105_v28, %v2665_v29 }
  0x29   :  { %v3141_v34 = vld [vmem:[#allocation9 + $0x7c] sm:$0xf]  ;;  %v2809_v35 = vld [vmem:[#allocation9 + $0x84] sm:$0xf0]  ;;  %v2708_v37 = vor.u32 %v3116_v33, %v2707_v32  ;;  %v2695_v38 = vld [vmem:[#allocation5 + $0x50] sm:$0xf] }
  0x2a   :  { %338 = vmatpush.bf16.msra.mxu0 %v2676_v42  ;;  %393 = vmatpush.bf16.msra.mxu2 %v2720_v23  ;;  %v3113_v41 = vld [vmem:[#allocation5 + $0x58] sm:$0xf0]  ;;  %v3591_v42 = vor.u32 %v3143_v31, %v2815_v27  ;;  %v3102_v43 = vld [vmem:[#allocation5 + $0x4] sm:$0xf]  ;;  %v2653_v44 = vld [vmem:[#allocation5 + $0xc] sm:$0xf0]  ;;  %v3594_v45 = vor.u32 %v3141_v34, %v2809_v35 }
  0x2b   :  { %578 = vmatpush.bf16.msra.mxu3 %v3564_v47  ;;  %v3138_v46 = vld [vmem:[#allocation9 + $0x64] sm:$0xf]  ;;  %v2803_v48 = vld [vmem:[#allocation9 + $0x68] sm:$0xf]  ;;  %v3140_v49 = vld [vmem:[#allocation9 + $0x70] sm:$0xf0]  ;;  %v2696_v50 = vor.u32 %v3113_v41, %v2695_v38  ;;  %v2656_v54 = vor.u32 %v3102_v43, %v2653_v44 }
  0x2c   :  { %366 = vmatpush.bf16.msra.mxu1 %v2692_v6  ;;  %v2797_v51 = vld [vmem:[#allocation9 + $0x6c] sm:$0xf0]  ;;  %v2683_v52 = vld [vmem:[#allocation5 + $0x38] sm:$0xf]  ;;  %v3110_v53 = vld [vmem:[#allocation5 + $0x40] sm:$0xf0]  ;;  %v3597_v55 = vor.u32 %v3140_v49, %v2803_v48 }
  0x2d   :  { %v3135_v57 = vld [vmem:[#allocation9 + $0x4c] sm:$0xf]  ;;  %v2791_v58 = vld [vmem:[#allocation9 + $0x50] sm:$0xf]  ;;  %v3137_v60 = vld [vmem:[#allocation9 + $0x58] sm:$0xf0]  ;;  %v2684_v61 = vor.u32 %v3110_v53, %v2683_v52 }
  0x2e   :  { %339 = vmatpush.bf16.msra.mxu0 %v2664_v56  ;;  %394 = vmatpush.bf16.msra.mxu2 %v2708_v37  ;;  %v3600_v56 = vor.u32 %v3138_v46, %v2797_v51  ;;  %v2785_v62 = vld [vmem:[#allocation9 + $0x54] sm:$0xf0]  ;;  %v2671_v63 = vld [vmem:[#allocation5 + $0x20] sm:$0xf]  ;;  %v3107_v0 = vld [vmem:[#allocation5 + $0x28] sm:$0xf0]  ;;  %v3603_v1 = vor.u32 %v3137_v60, %v2791_v58 }
  0x2f   :  { %579 = vmatpush.bf16.msra.mxu3 %v3567_v59  ;;  %v3607_v2 = vor.u32 %v3135_v57, %v2785_v62  ;;  %v2779_v3 = vld [vmem:[#allocation9 + $0x38] sm:$0xf]  ;;  %v3134_v4 = vld [vmem:[#allocation9 + $0x40] sm:$0xf0]  ;;  %v3099_v6 = vld [vmem:[%s4412_s0 + $0x8] sm:$0xff] }
  0x30   :  { %367 = vmatpush.bf16.msra.mxu1 %v2680_v25  ;;  %v3132_v8 = vld [vmem:[#allocation9 + $0x34] sm:$0xf]  ;;  %v2773_v12 = vld [vmem:[#allocation9 + $0x3c] sm:$0xf0]  ;;  %v3614_v13 = vor.u32 %v3134_v4, %v2779_v3  ;;  %v3129_v16 = vld [vmem:[#allocation9 + $0x1c] sm:$0xf] }
  0x31   :  { %v3618_v14 = vor.u32 %v3132_v8, %v2773_v12  ;;  %v2659_v18 = vld [vmem:[#allocation5 + $0x8] sm:$0xf]  ;;  %v3104_v19 = vld [vmem:[#allocation5 + $0x10] sm:$0xf0]  ;;  %v2767_v22 = vld [vmem:[#allocation9 + $0x20] sm:$0xf] }
  0x32   :  { %340 = vmatpush.bf16.msra.mxu0 %v2652_v5  ;;  %395 = vmatpush.bf16.msra.mxu2 %v2696_v50  ;;  %v2672_v5 = vor.u32 %v3107_v0, %v2671_v63  ;;  %v2761_v21 = vld [vmem:[#allocation9 + $0x24] sm:$0xf0]  ;;  %v3131_v23 = vld [vmem:[#allocation9 + $0x28] sm:$0xf0]  ;;  %v2660_v25 = vor.u32 %v3104_v19, %v2659_v18  ;;  %v3128_v31 = vld [vmem:[#allocation9 + $0x10] sm:$0xf0] }
  0x33   :  { %580 = vmatpush.bf16.msra.mxu3 %v3570_v9  ;;  %v3621_v27 = vor.u32 %v3131_v23, %v2767_v22  ;;  %v3625_v28 = vor.u32 %v3129_v16, %v2761_v21  ;;  %v2755_v29 = vld [vmem:[#allocation9 + $0x8] sm:$0xf]  ;;  %v3126_v32 = vld [vmem:[#allocation9 + $0x4] sm:$0xf]  ;;  %v2749_v33 = vld [vmem:[#allocation9 + $0xc] sm:$0xf0] }
  0x34   :  { %368 = vmatpush.bf16.msra.mxu1 %v2668_v40  ;;  %v3630_v34 = vor.u32 %v3128_v31, %v2755_v29  ;;  %v3633_v35 = vor.u32 %v3126_v32, %v2749_v33  ;;  %v3101_v37 = vld [vmem:[%s4412_s0 + $0x18] sm:$0xff]  ;;  %v171_v41 = vld [vmem:[#allocation10] sm:$0x7] }
  0x35   :  { %341 = vmatmul.bf16.vlgmr.msra.gmra.mxu0 %v3579_v20  ;;  %v3707_v44 = vperm.slane %v171_v41, 0  ;;  %v3728_v29 = vperm.slane %v171_v41, 2 }
  0x36   :  { %599 = vmatpush.bf16.msrb.mxu0 %v3572_v10  ;;  %581 = vmatmul.bf16.vlgmr.msra.gmra.mxu3 %v4421_v39 }
  0x37   :  { %586 = vmatpush.bf16.msrb.mxu3 %v3574_v15  ;;  %396 = vmatpush.bf16.msra.mxu2 %v2684_v61 }
  0x38   :  { %369 = vmatpush.bf16.msra.mxu1 %v2656_v54  ;;  %v3715_v54 = vperm.slane %v171_v41, 1  ;;  %v3738_v41 = vld [vmem:[%s4417_s5] ss:$0 sm:$0xff] }
  0x3a   :  { %600 = vmatpush.bf16.msrb.mxu0 %v3583_v26 }
  0x3b   :  { %587 = vmatpush.bf16.msrb.mxu3 %v3586_v30  ;;  %370 = vmatmul.bf16.vlgmr.msra.gmra.mxu1 %v3579_v20 }
  0x3c   :  { %671 = vmatpush.bf16.msrb.mxu1 %v3549_v7  ;;  %397 = vmatpush.bf16.msra.mxu2 %v2672_v5 }
  0x3e   :  { %601 = vmatpush.bf16.msrb.mxu0 %v3591_v42 }
  0x3f   :  { %588 = vmatpush.bf16.msrb.mxu3 %v3594_v45 }
  0x40   :  { %672 = vmatpush.bf16.msrb.mxu1 %v3552_v11  ;;  %398 = vmatpush.bf16.msra.mxu2 %v2660_v25 }
  0x42   :  { %602 = vmatpush.bf16.msrb.mxu0 %v3597_v55 }
  0x43   :  { %589 = vmatpush.bf16.msrb.mxu3 %v3600_v56  ;;  %399 = vmatmul.bf16.vlgmr.msra.gmra.mxu2 %v3579_v20  ;;  %v3100_v20 = vld [vmem:[%s4412_s0 + $0x10] sm:$0xff] }
  0x44   :  { %673 = vmatpush.bf16.msrb.mxu1 %v3555_v17  ;;  %684 = vmatpush.bf16.msrb.mxu2 %v3574_v15 }
  0x45   :  { %346 = vmatmul.bf16.gmra.mxu0 %v3099_v6 }
  0x46   :  { %603 = vmatpush.bf16.msrb.mxu0 %v3603_v1 }
  0x47   :  { %590 = vmatpush.bf16.msrb.mxu3 %v3607_v2 }
  0x48   :  { %674 = vmatpush.bf16.msrb.mxu1 %v3558_v24  ;;  %685 = vmatpush.bf16.msrb.mxu2 %v3586_v30 }
  0x4a   :  { %604 = vmatpush.bf16.msrb.mxu0 %v3614_v13 }
  0x4b   :  { %591 = vmatpush.bf16.msrb.mxu3 %v3618_v14  ;;  %375 = vmatmul.bf16.gmra.mxu1 %v3099_v6 }
  0x4c   :  { %675 = vmatpush.bf16.msrb.mxu1 %v3561_v36  ;;  %686 = vmatpush.bf16.msrb.mxu2 %v3594_v45 }
  0x4e   :  { %605 = vmatpush.bf16.msrb.mxu0 %v3621_v27 }
  0x4f   :  { %592 = vmatpush.bf16.msrb.mxu3 %v3625_v28 }
  0x50   :  { %676 = vmatpush.bf16.msrb.mxu1 %v3564_v47  ;;  %687 = vmatpush.bf16.msrb.mxu2 %v3600_v56 }
  0x52   :  { %606 = vmatpush.bf16.msrb.mxu0 %v3630_v34 }
  0x53   :  { %593 = vmatpush.bf16.msrb.mxu3 %v3633_v35  ;;  %404 = vmatmul.bf16.gmra.mxu2 %v3099_v6 }
  0x54   :  { %677 = vmatpush.bf16.msrb.mxu1 %v3567_v59  ;;  %688 = vmatpush.bf16.msrb.mxu2 %v3607_v2 }
  0x55   :  { %351 = vmatmul.bf16.gmra.mxu0 %v3100_v20 }
  0x56   :  { %767 = vmatpush.bf16.msra.mxu0 %v3549_v7  ;;  %594 = vmatmul.bf16.vlgmr.msrb.gmra.mxu3 %v4421_v39 }
  0x57   :  { %697 = vmatpush.bf16.msra.mxu3 %v3572_v10 }
  0x58   :  { %678 = vmatpush.bf16.msrb.mxu1 %v3570_v9  ;;  %689 = vmatpush.bf16.msrb.mxu2 %v3618_v14 }
  0x5a   :  { %768 = vmatpush.bf16.msra.mxu0 %v3552_v11 }
  0x5b   :  { %698 = vmatpush.bf16.msra.mxu3 %v3583_v26  ;;  %380 = vmatmul.bf16.gmra.mxu1 %v3100_v20 }
  0x5c   :  { %780 = vmatpush.bf16.msra.mxu1 %v3574_v15  ;;  %690 = vmatpush.bf16.msrb.mxu2 %v3625_v28 }
  0x5e   :  { %769 = vmatpush.bf16.msra.mxu0 %v3555_v17 }
  0x5f   :  { %699 = vmatpush.bf16.msra.mxu3 %v3591_v42 }
  0x60   :  { %781 = vmatpush.bf16.msra.mxu1 %v3586_v30  ;;  %691 = vmatpush.bf16.msrb.mxu2 %v3633_v35 }
  0x62   :  { %770 = vmatpush.bf16.msra.mxu0 %v3558_v24 }
  0x63   :  { %700 = vmatpush.bf16.msra.mxu3 %v3597_v55  ;;  %409 = vmatmul.bf16.gmra.mxu2 %v3100_v20 }
  0x64   :  { %793 = vmatpush.bf16.msra.mxu2 %v3572_v10  ;;  %782 = vmatpush.bf16.msra.mxu1 %v3594_v45 }
  0x65   :  { %356 = vmatmul.bf16.gmra.mxu0 %v3101_v37 }
  0x66   :  { %771 = vmatpush.bf16.msra.mxu0 %v3561_v36 }
  0x67   :  { %701 = vmatpush.bf16.msra.mxu3 %v3603_v1 }
  0x68   :  { %794 = vmatpush.bf16.msra.mxu2 %v3583_v26  ;;  %783 = vmatpush.bf16.msra.mxu1 %v3600_v56 }
  0x6a   :  { %772 = vmatpush.bf16.msra.mxu0 %v3564_v47 }
  0x6b   :  { %702 = vmatpush.bf16.msra.mxu3 %v3614_v13  ;;  %385 = vmatmul.bf16.gmra.mxu1 %v3101_v37 }
  0x6c   :  { %795 = vmatpush.bf16.msra.mxu2 %v3591_v42  ;;  %784 = vmatpush.bf16.msra.mxu1 %v3607_v2 }
  0x6e   :  { %773 = vmatpush.bf16.msra.mxu0 %v3567_v59 }
  0x6f   :  { %703 = vmatpush.bf16.msra.mxu3 %v3621_v27 }
  0x70   :  { %796 = vmatpush.bf16.msra.mxu2 %v3597_v55  ;;  %785 = vmatpush.bf16.msra.mxu1 %v3618_v14 }
  0x72   :  { %774 = vmatpush.bf16.msra.mxu0 %v3570_v9 }
  0x73   :  { %704 = vmatpush.bf16.msra.mxu3 %v3630_v34  ;;  %414 = vmatmul.bf16.gmra.mxu2 %v3101_v37 }
  0x74   :  { %797 = vmatpush.bf16.msra.mxu2 %v3603_v1  ;;  %786 = vmatpush.bf16.msra.mxu1 %v3625_v28 }
  0x75   :  { %607 = vmatmul.bf16.vlgmr.msrb.gmra.mxu0 %v4421_v39 }
  0x76   :  { %876 = vmatpush.bf16.msrb.mxu0 %v3574_v15 }
  0x77   :  { %863 = vmatpush.bf16.msrb.mxu3 %v3549_v7 }
  0x78   :  { %798 = vmatpush.bf16.msra.mxu2 %v3614_v13  ;;  %787 = vmatpush.bf16.msra.mxu1 %v3633_v35 }
  0x7a   :  { %877 = vmatpush.bf16.msrb.mxu0 %v3586_v30 }
  0x7b   :  { %864 = vmatpush.bf16.msrb.mxu3 %v3552_v11 }
  0x7c   :  { %799 = vmatpush.bf16.msra.mxu2 %v3621_v27 }
  0x7e   :  { %878 = vmatpush.bf16.msrb.mxu0 %v3594_v45 }
  0x7f   :  { %865 = vmatpush.bf16.msrb.mxu3 %v3555_v17 }
  0x80   :  { %800 = vmatpush.bf16.msra.mxu2 %v3630_v34 }
  0x82   :  { %879 = vmatpush.bf16.msrb.mxu0 %v3600_v56 }
  0x83   :  { %866 = vmatpush.bf16.msrb.mxu3 %v3558_v24 }
  0x86   :  { %880 = vmatpush.bf16.msrb.mxu0 %v3607_v2 }
  0x87   :  { %867 = vmatpush.bf16.msrb.mxu3 %v3561_v36 }
  0x8a   :  { %881 = vmatpush.bf16.msrb.mxu0 %v3618_v14 }
  0x8b   :  { %868 = vmatpush.bf16.msrb.mxu3 %v3564_v47 }
  0x8e   :  { %882 = vmatpush.bf16.msrb.mxu0 %v3625_v28 }
  0x8f   :  { %869 = vmatpush.bf16.msrb.mxu3 %v3567_v59 }
  0x92   :  { %883 = vmatpush.bf16.msrb.mxu0 %v3633_v35 }
  0x93   :  { %870 = vmatpush.bf16.msrb.mxu3 %v3570_v9 }
  0xb2   :  { %v342_v38 = vpop.f32.mrf.mxu0 }
  0xb3   :  { %v343_v46 = vadd.f32 %v342_v38, %v3707_v44 }
  0xb8   :  { %v371_v57 = vpop.f32.mrf.mxu1 }
  0xb9   :  { %v582_v40 = vpop.f32.mrf.mxu3  ;;  %v372_v62 = vadd.f32 %v371_v57, %v3715_v54 }
  0xba   :  { %v3705_v43 = vpop.f32.mrf.mxu0  ;;  %v618_v50 = vadd.f32 %v582_v40, %v343_v46 }
  0xbc   :  { %v2841_v52 = vmul.f32 -1.442695, %v618_v50 }
  0xbe   :  { %3219 = vpow2.f32 %v2841_v52 }
  0xc1   :  { %v584_v48 = vpop.f32.mrf.mxu3 }
  0xc2   :  { %v347_v49 = vpop.f32.mrf.mxu0 }
  0xc3   :  { %v3711_v51 = vadd.f32 %v347_v49, %v3707_v44 }
  0xc4   :  { %v3220_v58 = vpop.eup %3219 }
  0xc5   :  { %v626_v63 = vadd.f32 1.0, %v3220_v58 }
  0xc6   :  { %v400_v0 = vpop.f32.mrf.mxu2 }
  0xc7   :  { %3221 = vrcp.f32 %v626_v63  ;;  %v639_v48 = vand.u32 2147483648, %v626_v63  ;;  %vm633_vm1 = vweird.f32 %v626_v63  ;;  %v637_v49 = vand.u32 2147483647, %v626_v63 }
  0xc9   :  { %vm638_vm3 = vcmp.eq.f32.partialorder %v637_v49, 8.507059e+37 }
  0xca   :  { %v3713_v53 = vpop.f32.mrf.mxu0 }
  0xcd   :  { %v3222_v8 = vpop.eup %3221 }
  0xce   :  { %v3723_v16 = vpop.f32.mrf.mxu2  ;;  %v629_v19 = vmul.f32 %v3222_v8, %v626_v63  ;;  %vm634_vm0 = vweird.f32 %v3222_v8 }
  0xcf   :  { %vm635_vm2 = vmor %vm633_vm1, %vm634_vm0 }
  0xd0   :  { %v630_v25 = vsub.f32 1.0, %v629_v19 }
  0xd2   :  { %v352_v60 = vpop.f32.mrf.mxu0  ;;  %v631_v33 = vmul.f32 %v3222_v8, %v630_v25 }
  0xd3   :  { %v3718_v61 = vadd.f32 %v352_v60, %v3707_v44  ;;  %v640_v60 = vor.u32 1.1754944e-38, %v639_v48 }
  0xd4   :  { %v632_v46 = vadd.f32 %v3222_v8, %v631_v33 }
  0xd6   :  { %v405_v31 = vpop.f32.mrf.mxu2  ;;  %v636_v57 = vsel %vm635_vm2, %v3222_v8, %v632_v46 }
  0xd7   :  { %v3731_v32 = vadd.f32 %v405_v31, %v3728_v29 }
  0xd9   :  { %v595_v3 = vpop.f32.mrf.mxu3 }
  0xda   :  { %v619_v4 = vadd.f32 %v595_v3, %v372_v62  ;;  %v3721_v6 = vpop.f32.mrf.mxu0  ;;  %v401_v62 = vadd.f32 %v400_v0, %v3728_v29 }
  0xdc   :  { %v2842_v5 = vmul.f32 -1.442695, %v619_v4  ;;  %v641_v4 = vsel %vm638_vm3, %v640_v60, %v636_v57 }
  0xde   :  { %3223 = vpow2.f32 %v2842_v5  ;;  %v3740_v50 = vpop.f32.mrf.mxu2 }
  0xe1   :  { %v597_v12 = vpop.f32.mrf.mxu3 }
  0xe2   :  { %v357_v22 = vpop.f32.mrf.mxu0 }
  0xe3   :  { %v3726_v23 = vadd.f32 %v357_v22, %v3707_v44 }
  0xe4   :  { %v3224_v18 = vpop.eup %3223 }
  0xe5   :  { %v627_v21 = vadd.f32 1.0, %v3224_v18  ;;  %4423 = vst [vmem:[#allocation15_spill] sm:$0xff] %v3726_v23 }
  0xe6   :  { %v410_v22 = vpop.f32.mrf.mxu2 }
  0xe7   :  { %3225 = vrcp.f32 %v627_v21  ;;  %vm648_vm4 = vweird.f32 %v627_v21  ;;  %v654_v5 = vand.u32 2147483648, %v627_v21  ;;  %v652_v18 = vand.u32 2147483647, %v627_v21 }
  0xe8   :  { %v3745_v8 = vadd.f32 %v410_v22, %v3728_v29 }
  0xe9   :  { %v655_v31 = vor.u32 1.1754944e-38, %v654_v5  ;;  %vm653_vm7 = vcmp.eq.f32.partialorder %v652_v18, 8.507059e+37  ;;  %v345_v18 = vadd.f32 %v3705_v43, %v3707_v44 }
  0xea   :  { %v3733_v37 = vpop.f32.mrf.mxu0 }
  0xeb   :  { %4424 = vst [vmem:[#allocation16_spill] sm:$0xff] %v3733_v37 }
  0xed   :  { %v3226_v20 = vpop.eup %3225 }
  0xee   :  { %v644_v38 = vmul.f32 %v3226_v20, %v627_v21  ;;  %vm649_vm5 = vweird.f32 %v3226_v20  ;;  %v3747_v46 = vpop.f32.mrf.mxu2 }
  0xef   :  { %vm650_vm6 = vmor %vm648_vm4, %vm649_vm5 }
  0xf0   :  { %v645_v40 = vsub.f32 1.0, %v644_v38 }
  0xf2   :  { %v646_v52 = vmul.f32 %v3226_v20, %v645_v40  ;;  %v608_v58 = vpop.f32.mrf.mxu0 }
  0xf3   :  { %v661_v3 = vadd.f32 %v3738_v41, %v608_v58  ;;  %v373_v58 = vpop.f32.mrf.mxu1 }
  0xf4   :  { %v647_v63 = vadd.f32 %v3226_v20, %v646_v52 }
  0xf5   :  { %v662_v12 = vmul.f32 %v661_v3, %v641_v4 }
  0xf6   :  { %v651_v25 = vsel %vm650_vm6, %v3226_v20, %v647_v63  ;;  %v415_v20 = vpop.f32.mrf.mxu2 }
  0xf7   :  { %v663_v19 = vadd.f32 %v662_v12, %v401_v62  ;;  %v656_v33 = vsel %vm653_vm7, %v655_v31, %v651_v25  ;;  %v3755_v57 = vadd.f32 %v415_v20, %v3728_v29  ;;  %v374_v31 = vadd.f32 %v373_v58, %v3715_v54 }
  0xf8   :  { %v665_v38 = vsub.f32 1.0, %v656_v33  ;;  %v667_v49 = vmul.f32 0.0, %v656_v33 }
  0xf9   :  { %3227 = vtanh.f32 %v663_v19  ;;  %4425 = vst [vmem:[#allocation17_spill] sm:$0xff] %v3755_v57 }
  0xfa   :  { %v610_v0 = vpop.f32.mrf.mxu0 }
  0xfb   :  { %v3780_v60 = vpop.f32.mrf.mxu1 }
  0xfe   :  { %v3792_v12 = vpop.f32.mrf.mxu2 }
  0xff   :  { %v3228_v40 = vpop.eup %3227  ;;  %4427 = vst [vmem:[#allocation19_spill] sm:$0xff] %v3792_v12 }
 0x100   :  { %v666_v48 = vmul.f32 %v3228_v40, %v665_v38 }
 0x102   :  { %v3749_v52 = vadd.f32 %v667_v49, %v666_v48 }
 0x103   :  { %v3782_v62 = vpop.f32.mrf.mxu1 }
 0x104   :  { %v670_v21 = vpack.c.bf16 %v3749_v52, %v3749_v52 }
 0x106   :  { %679 = vmatmul.bf16.vlgmr.msrb.gmra.mxu1 %v670_v21  ;;  %692 = vmatmul.bf16.vlgmr.msrb.gmra.mxu2 %v670_v21 }
 0x107   :  { %705 = vmatmul.bf16.vlgmr.msra.gmra.mxu3 %v670_v21  ;;  %889 = vmatpush.bf16.msrb.mxu1 %v3572_v10 }
 0x108   :  { %959 = vmatpush.bf16.msrb.mxu2 %v3549_v7  ;;  %972 = vmatpush.bf16.msra.mxu3 %v3574_v15 }
 0x10b   :  { %890 = vmatpush.bf16.msrb.mxu1 %v3583_v26  ;;  %v3784_v3 = vpop.f32.mrf.mxu1 }
 0x10c   :  { %960 = vmatpush.bf16.msrb.mxu2 %v3552_v11  ;;  %973 = vmatpush.bf16.msra.mxu3 %v3586_v30 }
 0x10f   :  { %891 = vmatpush.bf16.msrb.mxu1 %v3591_v42 }
 0x110   :  { %961 = vmatpush.bf16.msrb.mxu2 %v3555_v17  ;;  %974 = vmatpush.bf16.msra.mxu3 %v3594_v45 }
 0x113   :  { %892 = vmatpush.bf16.msrb.mxu1 %v3597_v55  ;;  %v3786_v4 = vpop.f32.mrf.mxu1 }
 0x114   :  { %962 = vmatpush.bf16.msrb.mxu2 %v3558_v24  ;;  %975 = vmatpush.bf16.msra.mxu3 %v3600_v56 }
 0x117   :  { %893 = vmatpush.bf16.msrb.mxu1 %v3603_v1 }
 0x118   :  { %963 = vmatpush.bf16.msrb.mxu2 %v3561_v36  ;;  %976 = vmatpush.bf16.msra.mxu3 %v3607_v2 }
 0x11b   :  { %894 = vmatpush.bf16.msrb.mxu1 %v3614_v13  ;;  %v3788_v63 = vpop.f32.mrf.mxu1 }
 0x11c   :  { %964 = vmatpush.bf16.msrb.mxu2 %v3564_v47  ;;  %977 = vmatpush.bf16.msra.mxu3 %v3618_v14 }
 0x11f   :  { %895 = vmatpush.bf16.msrb.mxu1 %v3621_v27 }
 0x120   :  { %965 = vmatpush.bf16.msrb.mxu2 %v3567_v59  ;;  %978 = vmatpush.bf16.msra.mxu3 %v3625_v28 }
 0x123   :  { %896 = vmatpush.bf16.msrb.mxu1 %v3630_v34  ;;  %v3790_v5 = vpop.f32.mrf.mxu1 }
 0x124   :  { %966 = vmatpush.bf16.msrb.mxu2 %v3570_v9  ;;  %979 = vmatpush.bf16.msra.mxu3 %v3633_v35  ;;  %4426 = vst [vmem:[#allocation18_spill] sm:$0xff] %v3790_v5 }
 0x183   :  { %v680_v19 = vpop.f32.mrf.mxu1 }
 0x184   :  { %v716_v22 = vadd.f32 %v680_v19, %v345_v18 }
 0x186   :  { %v2843_v25 = vmul.f32 -1.442695, %v716_v22 }
 0x188   :  { %3229 = vpow2.f32 %v2843_v25 }
 0x189   :  { %v693_v0 = vpop.f32.mrf.mxu2 }
 0x18a   :  { %v717_v33 = vadd.f32 %v693_v0, %v374_v31  ;;  %v706_v38 = vpop.f32.mrf.mxu3 }
 0x18b   :  { %v682_v40 = vpop.f32.mrf.mxu1 }
 0x18c   :  { %v2844_v48 = vmul.f32 -1.442695, %v717_v33 }
 0x18e   :  { %v3230_v49 = vpop.eup %3229  ;;  %3231 = vpow2.f32 %v2844_v48 }
 0x18f   :  { %v724_v21 = vadd.f32 1.0, %v3230_v49 }
 0x191   :  { %3233 = vrcp.f32 %v724_v21  ;;  %v695_v20 = vpop.f32.mrf.mxu2  ;;  %v737_v22 = vand.u32 2147483648, %v724_v21  ;;  %v735_v25 = vand.u32 2147483647, %v724_v21  ;;  %vm731_vm9 = vweird.f32 %v724_v21 }
 0x192   :  { %v708_v39 = vpop.f32.mrf.mxu3 }
 0x193   :  { %v738_v33 = vor.u32 1.1754944e-38, %v737_v22  ;;  %vm736_vm11 = vcmp.eq.f32.partialorder %v735_v25, 8.507059e+37  ;;  %v756_v39 = vadd.f32 %v3738_v41, %v706_v38 }
 0x194   :  { %v3232_v12 = vpop.eup %3231 }
 0x195   :  { %v725_v37 = vadd.f32 1.0, %v3232_v12  ;;  %v403_v12 = vadd.f32 %v3723_v16, %v3728_v29 }
 0x197   :  { %v3234_v43 = vpop.eup %3233  ;;  %3235 = vrcp.f32 %v725_v37  ;;  %v750_v57 = vand.u32 2147483647, %v725_v37  ;;  %vm746_vm13 = vweird.f32 %v725_v37 }
 0x198   :  { %v727_v18 = vmul.f32 %v3234_v43, %v724_v21  ;;  %vm732_vm8 = vweird.f32 %v3234_v43 }
 0x199   :  { %vm733_vm10 = vmor %vm731_vm9, %vm732_vm8  ;;  %vm751_vm15 = vcmp.eq.f32.partialorder %v750_v57, 8.507059e+37 }
 0x19a   :  { %v728_v19 = vsub.f32 1.0, %v727_v18 }
 0x19c   :  { %v729_v58 = vmul.f32 %v3234_v43, %v728_v19  ;;  %v752_v19 = vand.u32 2147483648, %v725_v37 }
 0x19d   :  { %v3236_v31 = vpop.eup %3235 }
 0x19e   :  { %v742_v0 = vmul.f32 %v3236_v31, %v725_v37  ;;  %v730_v40 = vadd.f32 %v3234_v43, %v729_v58  ;;  %vm747_vm12 = vweird.f32 %v3236_v31  ;;  %v753_v21 = vor.u32 1.1754944e-38, %v752_v19 }
 0x19f   :  { %vm748_vm14 = vmor %vm746_vm13, %vm747_vm12 }
 0x1a0   :  { %v743_v48 = vsub.f32 1.0, %v742_v0  ;;  %v734_v49 = vsel %vm733_vm10, %v3234_v43, %v730_v40 }
 0x1a1   :  { %v739_v20 = vsel %vm736_vm11, %v738_v33, %v734_v49 }
 0x1a2   :  { %v744_v18 = vmul.f32 %v3236_v31, %v743_v48  ;;  %v757_v5 = vmul.f32 %v756_v39, %v739_v20 }
 0x1a4   :  { %v745_v23 = vadd.f32 %v3236_v31, %v744_v18  ;;  %v758_v58 = vadd.f32 %v757_v5, %v403_v12 }
 0x1a6   :  { %v749_v22 = vsel %vm748_vm14, %v3236_v31, %v745_v23  ;;  %3237 = vtanh.f32 %v758_v58  ;;  %v377_v23 = vadd.f32 %v3780_v60, %v3715_v54 }
 0x1a7   :  { %v754_v43 = vsel %vm751_vm15, %v753_v21, %v749_v22 }
 0x1a8   :  { %v760_v25 = vsub.f32 1.0, %v754_v43  ;;  %v762_v16 = vmul.f32 %v754_v43, %v3749_v52 }
 0x1ac   :  { %v3238_v38 = vpop.eup %3237 }
 0x1ad   :  { %v761_v0 = vmul.f32 %v3238_v38, %v760_v25 }
 0x1af   :  { %v3801_v40 = vadd.f32 %v762_v16, %v761_v0 }
 0x1b1   :  { %v766_v33 = vpack.c.bf16 %v3801_v40, %v3801_v40 }
 0x1b3   :  { %775 = vmatmul.bf16.vlgmr.msra.gmra.mxu0 %v766_v33  ;;  %788 = vmatmul.bf16.vlgmr.msra.gmra.mxu1 %v766_v33 }
 0x1b4   :  { %801 = vmatmul.bf16.vlgmr.msra.gmra.mxu2 %v766_v33  ;;  %985 = vmatpush.bf16.msra.mxu0 %v3572_v10 }
 0x1b5   :  { %1055 = vmatpush.bf16.msra.mxu1 %v3549_v7  ;;  %1068 = vmatpush.bf16.msra.mxu2 %v3574_v15 }
 0x1b8   :  { %986 = vmatpush.bf16.msra.mxu0 %v3583_v26 }
 0x1b9   :  { %1056 = vmatpush.bf16.msra.mxu1 %v3552_v11  ;;  %1069 = vmatpush.bf16.msra.mxu2 %v3586_v30 }
 0x1bc   :  { %987 = vmatpush.bf16.msra.mxu0 %v3591_v42 }
 0x1bd   :  { %1057 = vmatpush.bf16.msra.mxu1 %v3555_v17  ;;  %1070 = vmatpush.bf16.msra.mxu2 %v3594_v45 }
 0x1c0   :  { %988 = vmatpush.bf16.msra.mxu0 %v3597_v55 }
 0x1c1   :  { %1058 = vmatpush.bf16.msra.mxu1 %v3558_v24  ;;  %1071 = vmatpush.bf16.msra.mxu2 %v3600_v56 }
 0x1c4   :  { %989 = vmatpush.bf16.msra.mxu0 %v3603_v1 }
 0x1c5   :  { %1059 = vmatpush.bf16.msra.mxu1 %v3561_v36  ;;  %1072 = vmatpush.bf16.msra.mxu2 %v3607_v2 }
 0x1c8   :  { %990 = vmatpush.bf16.msra.mxu0 %v3614_v13 }
 0x1c9   :  { %1060 = vmatpush.bf16.msra.mxu1 %v3564_v47  ;;  %1073 = vmatpush.bf16.msra.mxu2 %v3618_v14 }
 0x1cc   :  { %991 = vmatpush.bf16.msra.mxu0 %v3621_v27 }
 0x1cd   :  { %1061 = vmatpush.bf16.msra.mxu1 %v3567_v59  ;;  %1074 = vmatpush.bf16.msra.mxu2 %v3625_v28 }
 0x1d0   :  { %992 = vmatpush.bf16.msra.mxu0 %v3630_v34 }
 0x1d1   :  { %1062 = vmatpush.bf16.msra.mxu1 %v3570_v9  ;;  %1075 = vmatpush.bf16.msra.mxu2 %v3633_v35 }
 0x230   :  { %v776_v37 = vpop.f32.mrf.mxu0  ;;  %v789_v57 = vpop.f32.mrf.mxu1 }
 0x231   :  { %v812_v5 = vadd.f32 %v776_v37, %v3711_v51  ;;  %v813_v31 = vadd.f32 %v789_v57, %v377_v23 }
 0x233   :  { %v2845_v48 = vmul.f32 -1.442695, %v812_v5  ;;  %v2846_v49 = vmul.f32 -1.442695, %v813_v31 }
 0x235   :  { %3239 = vpow2.f32 %v2845_v48 }
 0x236   :  { %3241 = vpow2.f32 %v2846_v49 }
 0x237   :  { %v802_v39 = vpop.f32.mrf.mxu2 }
 0x238   :  { %v778_v12 = vpop.f32.mrf.mxu0  ;;  %v791_v20 = vpop.f32.mrf.mxu1  ;;  %v852_v48 = vadd.f32 %v3738_v41, %v802_v39 }
 0x23b   :  { %v3240_v18 = vpop.eup %3239 }
 0x23c   :  { %v3242_v19 = vpop.eup %3241  ;;  %v820_v58 = vadd.f32 1.0, %v3240_v18 }
 0x23d   :  { %v821_v21 = vadd.f32 1.0, %v3242_v19 }
 0x23e   :  { %3243 = vrcp.f32 %v820_v58  ;;  %v833_v16 = vand.u32 2147483648, %v820_v58  ;;  %v831_v23 = vand.u32 2147483647, %v820_v58  ;;  %vm827_vm1 = vweird.f32 %v820_v58 }
 0x23f   :  { %3245 = vrcp.f32 %v821_v21  ;;  %v804_v22 = vpop.f32.mrf.mxu2  ;;  %v848_v20 = vand.u32 2147483648, %v821_v21  ;;  %vm842_vm5 = vweird.f32 %v821_v21  ;;  %v846_v19 = vand.u32 2147483647, %v821_v21 }
 0x240   :  { %v834_v5 = vor.u32 1.1754944e-38, %v833_v16  ;;  %vm832_vm3 = vcmp.eq.f32.partialorder %v831_v23, 8.507059e+37 }
 0x241   :  { %vm847_vm7 = vcmp.eq.f32.partialorder %v846_v19, 8.507059e+37 }
 0x244   :  { %v3244_v60 = vpop.eup %3243 }
 0x245   :  { %v3246_v43 = vpop.eup %3245  ;;  %v823_v25 = vmul.f32 %v3244_v60, %v820_v58  ;;  %vm828_vm0 = vweird.f32 %v3244_v60 }
 0x246   :  { %v838_v38 = vmul.f32 %v3246_v43, %v821_v21  ;;  %vm829_vm2 = vmor %vm827_vm1, %vm828_vm0  ;;  %vm843_vm4 = vweird.f32 %v3246_v43 }
 0x247   :  { %v824_v51 = vsub.f32 1.0, %v823_v25  ;;  %vm844_vm6 = vmor %vm842_vm5, %vm843_vm4 }
 0x248   :  { %v839_v0 = vsub.f32 1.0, %v838_v38  ;;  %v849_v38 = vor.u32 1.1754944e-38, %v848_v20 }
 0x249   :  { %v825_v33 = vmul.f32 %v3244_v60, %v824_v51 }
 0x24a   :  { %v840_v37 = vmul.f32 %v3246_v43, %v839_v0 }
 0x24b   :  { %v826_v57 = vadd.f32 %v3244_v60, %v825_v33 }
 0x24c   :  { %v841_v49 = vadd.f32 %v3246_v43, %v840_v37 }
 0x24d   :  { %v830_v31 = vsel %vm829_vm2, %v3244_v60, %v826_v57  ;;  %v350_v57 = vadd.f32 %v3713_v53, %v3707_v44 }
 0x24e   :  { %v835_v12 = vsel %vm832_vm3, %v834_v5, %v830_v31  ;;  %v845_v25 = vsel %vm844_vm6, %v3246_v43, %v841_v49 }
 0x24f   :  { %v853_v18 = vmul.f32 %v852_v48, %v835_v12  ;;  %v850_v58 = vsel %vm847_vm7, %v849_v38, %v845_v25 }
 0x250   :  { %v856_v51 = vsub.f32 1.0, %v850_v58  ;;  %v858_v39 = vmul.f32 %v850_v58, %v3801_v40 }
 0x251   :  { %v854_v22 = vadd.f32 %v853_v18, %v3731_v32  ;;  %v379_v32 = vadd.f32 %v3782_v62, %v3715_v54 }
 0x253   :  { %3247 = vtanh.f32 %v854_v22 }
 0x259   :  { %v3248_v60 = vpop.eup %3247 }
 0x25a   :  { %v857_v0 = vmul.f32 %v3248_v60, %v856_v51 }
 0x25c   :  { %v3835_v16 = vadd.f32 %v858_v39, %v857_v0 }
 0x25e   :  { %v862_v33 = vpack.c.bf16 %v3835_v16, %v3835_v16 }
 0x260   :  { %871 = vmatmul.bf16.vlgmr.msrb.gmra.mxu3 %v862_v33  ;;  %884 = vmatmul.bf16.vlgmr.msrb.gmra.mxu0 %v862_v33 }
 0x261   :  { %897 = vmatmul.bf16.vlgmr.msrb.gmra.mxu1 %v862_v33  ;;  %1081 = vmatpush.bf16.msrb.mxu3 %v3572_v10 }
 0x262   :  { %1151 = vmatpush.bf16.msrb.mxu0 %v3549_v7  ;;  %1164 = vmatpush.bf16.msrb.mxu1 %v3574_v15 }
 0x265   :  { %1082 = vmatpush.bf16.msrb.mxu3 %v3583_v26 }
 0x266   :  { %1152 = vmatpush.bf16.msrb.mxu0 %v3552_v11  ;;  %1165 = vmatpush.bf16.msrb.mxu1 %v3586_v30 }
 0x269   :  { %1083 = vmatpush.bf16.msrb.mxu3 %v3591_v42 }
 0x26a   :  { %1153 = vmatpush.bf16.msrb.mxu0 %v3555_v17  ;;  %1166 = vmatpush.bf16.msrb.mxu1 %v3594_v45 }
 0x26d   :  { %1084 = vmatpush.bf16.msrb.mxu3 %v3597_v55 }
 0x26e   :  { %1154 = vmatpush.bf16.msrb.mxu0 %v3558_v24  ;;  %1167 = vmatpush.bf16.msrb.mxu1 %v3600_v56 }
 0x271   :  { %1085 = vmatpush.bf16.msrb.mxu3 %v3603_v1 }
 0x272   :  { %1155 = vmatpush.bf16.msrb.mxu0 %v3561_v36  ;;  %1168 = vmatpush.bf16.msrb.mxu1 %v3607_v2 }
 0x275   :  { %1086 = vmatpush.bf16.msrb.mxu3 %v3614_v13 }
 0x276   :  { %1156 = vmatpush.bf16.msrb.mxu0 %v3564_v47  ;;  %1169 = vmatpush.bf16.msrb.mxu1 %v3618_v14 }
 0x279   :  { %1087 = vmatpush.bf16.msrb.mxu3 %v3621_v27 }
 0x27a   :  { %1157 = vmatpush.bf16.msrb.mxu0 %v3567_v59  ;;  %1170 = vmatpush.bf16.msrb.mxu1 %v3625_v28 }
 0x27d   :  { %1088 = vmatpush.bf16.msrb.mxu3 %v3630_v34 }
 0x27e   :  { %1158 = vmatpush.bf16.msrb.mxu0 %v3570_v9  ;;  %1171 = vmatpush.bf16.msrb.mxu1 %v3633_v35 }
 0x2dd   :  { %v885_v21 = vpop.f32.mrf.mxu0 }
 0x2de   :  { %v909_v43 = vadd.f32 %v885_v21, %v379_v32  ;;  %v898_v23 = vpop.f32.mrf.mxu1 }
 0x2e0   :  { %v2848_v37 = vmul.f32 -1.442695, %v909_v43 }
 0x2e2   :  { %3249 = vpow2.f32 %v2848_v37  ;;  %v948_v37 = vadd.f32 %v3738_v41, %v898_v23 }
 0x2e3   :  { %v872_v5 = vpop.f32.mrf.mxu3 }
 0x2e4   :  { %v908_v31 = vadd.f32 %v872_v5, %v350_v57 }
 0x2e5   :  { %v887_v48 = vpop.f32.mrf.mxu0 }
 0x2e6   :  { %v2847_v49 = vmul.f32 -1.442695, %v908_v31  ;;  %v900_v12 = vpop.f32.mrf.mxu1  ;;  %v408_v48 = vadd.f32 %v3740_v50, %v3728_v29 }
 0x2e8   :  { %v3250_v20 = vpop.eup %3249  ;;  %3251 = vpow2.f32 %v2847_v49 }
 0x2e9   :  { %v917_v18 = vadd.f32 1.0, %v3250_v20 }
 0x2eb   :  { %v874_v19 = vpop.f32.mrf.mxu3  ;;  %3253 = vrcp.f32 %v917_v18  ;;  %v944_v49 = vand.u32 2147483648, %v917_v18  ;;  %vm938_vm13 = vweird.f32 %v917_v18  ;;  %v942_v20 = vand.u32 2147483647, %v917_v18 }
 0x2ed   :  { %vm943_vm15 = vcmp.eq.f32.partialorder %v942_v20, 8.507059e+37 }
 0x2ee   :  { %v3252_v22 = vpop.eup %3251 }
 0x2ef   :  { %v916_v62 = vadd.f32 1.0, %v3252_v22 }
 0x2f1   :  { %3255 = vrcp.f32 %v916_v62  ;;  %v3254_v25 = vpop.eup %3253  ;;  %v929_v0 = vand.u32 2147483648, %v916_v62  ;;  %v927_v33 = vand.u32 2147483647, %v916_v62  ;;  %vm923_vm9 = vweird.f32 %v916_v62 }
 0x2f2   :  { %v934_v38 = vmul.f32 %v3254_v25, %v917_v18  ;;  %vm939_vm12 = vweird.f32 %v3254_v25 }
 0x2f3   :  { %v930_v43 = vor.u32 1.1754944e-38, %v929_v0  ;;  %vm928_vm11 = vcmp.eq.f32.partialorder %v927_v33, 8.507059e+37  ;;  %vm940_vm14 = vmor %vm938_vm13, %vm939_vm12 }
 0x2f4   :  { %v935_v60 = vsub.f32 1.0, %v934_v38 }
 0x2f6   :  { %v936_v32 = vmul.f32 %v3254_v25, %v935_v60 }
 0x2f7   :  { %v3256_v58 = vpop.eup %3255 }
 0x2f8   :  { %v919_v51 = vmul.f32 %v3256_v58, %v916_v62  ;;  %vm924_vm8 = vweird.f32 %v3256_v58  ;;  %v937_v5 = vadd.f32 %v3254_v25, %v936_v32  ;;  %v945_v62 = vor.u32 1.1754944e-38, %v944_v49 }
 0x2f9   :  { %vm925_vm10 = vmor %vm923_vm9, %vm924_vm8 }
 0x2fa   :  { %v920_v53 = vsub.f32 1.0, %v919_v51  ;;  %v941_v22 = vsel %vm940_vm14, %v3254_v25, %v937_v5 }
 0x2fb   :  { %v946_v38 = vsel %vm943_vm15, %v945_v62, %v941_v22 }
 0x2fc   :  { %v921_v39 = vmul.f32 %v3256_v58, %v920_v53  ;;  %v952_v23 = vsub.f32 1.0, %v946_v38  ;;  %v954_v60 = vmul.f32 %v946_v38, %v3835_v16 }
 0x2fe   :  { %v922_v21 = vadd.f32 %v3256_v58, %v921_v39 }
 0x300   :  { %v926_v57 = vsel %vm925_vm10, %v3256_v58, %v922_v21 }
 0x301   :  { %v931_v31 = vsel %vm928_vm11, %v930_v43, %v926_v57 }
 0x302   :  { %v949_v12 = vmul.f32 %v948_v37, %v931_v31 }
 0x304   :  { %v950_v19 = vadd.f32 %v949_v12, %v408_v48 }
 0x306   :  { %3257 = vtanh.f32 %v950_v19 }
 0x30c   :  { %v3258_v58 = vpop.eup %3257 }
 0x30d   :  { %v953_v51 = vmul.f32 %v3258_v58, %v952_v23 }
 0x30f   :  { %v3871_v53 = vadd.f32 %v954_v60, %v953_v51 }
 0x311   :  { %v958_v50 = vpack.c.bf16 %v3871_v53, %v3871_v53 }
 0x313   :  { %967 = vmatmul.bf16.vlgmr.msrb.gmra.mxu2 %v958_v50  ;;  %980 = vmatmul.bf16.vlgmr.msra.gmra.mxu3 %v958_v50 }
 0x314   :  { %993 = vmatmul.bf16.vlgmr.msra.gmra.mxu0 %v958_v50  ;;  %1177 = vmatpush.bf16.msrb.mxu2 %v3572_v10 }
 0x315   :  { %1247 = vmatpush.bf16.msra.mxu3 %v3549_v7  ;;  %1260 = vmatpush.bf16.msra.mxu0 %v3574_v15 }
 0x318   :  { %1178 = vmatpush.bf16.msrb.mxu2 %v3583_v26 }
 0x319   :  { %1248 = vmatpush.bf16.msra.mxu3 %v3552_v11  ;;  %1261 = vmatpush.bf16.msra.mxu0 %v3586_v30  ;;  %v382_v11 = vadd.f32 %v3784_v3, %v3715_v54 }
 0x31c   :  { %1179 = vmatpush.bf16.msrb.mxu2 %v3591_v42 }
 0x31d   :  { %1249 = vmatpush.bf16.msra.mxu3 %v3555_v17  ;;  %1262 = vmatpush.bf16.msra.mxu0 %v3594_v45 }
 0x320   :  { %1180 = vmatpush.bf16.msrb.mxu2 %v3597_v55 }
 0x321   :  { %1250 = vmatpush.bf16.msra.mxu3 %v3558_v24  ;;  %1263 = vmatpush.bf16.msra.mxu0 %v3600_v56 }
 0x324   :  { %1181 = vmatpush.bf16.msrb.mxu2 %v3603_v1 }
 0x325   :  { %1251 = vmatpush.bf16.msra.mxu3 %v3561_v36  ;;  %1264 = vmatpush.bf16.msra.mxu0 %v3607_v2 }
 0x328   :  { %1182 = vmatpush.bf16.msrb.mxu2 %v3614_v13 }
 0x329   :  { %1252 = vmatpush.bf16.msra.mxu3 %v3564_v47  ;;  %1265 = vmatpush.bf16.msra.mxu0 %v3618_v14 }
 0x32c   :  { %1183 = vmatpush.bf16.msrb.mxu2 %v3621_v27 }
 0x32d   :  { %1253 = vmatpush.bf16.msra.mxu3 %v3567_v59  ;;  %1266 = vmatpush.bf16.msra.mxu0 %v3625_v28 }
 0x330   :  { %1184 = vmatpush.bf16.msrb.mxu2 %v3630_v34 }
 0x331   :  { %1254 = vmatpush.bf16.msra.mxu3 %v3570_v9  ;;  %1267 = vmatpush.bf16.msra.mxu0 %v3633_v35 }
 0x391   :  { %v994_v7 = vpop.f32.mrf.mxu0 }
 0x392   :  { %v1044_v57 = vadd.f32 %v3738_v41, %v994_v7 }
 0x396   :  { %v968_v17 = vpop.f32.mrf.mxu2  ;;  %v981_v24 = vpop.f32.mrf.mxu3 }
 0x397   :  { %v1004_v36 = vadd.f32 %v968_v17, %v3718_v61  ;;  %v1005_v47 = vadd.f32 %v981_v24, %v382_v11  ;;  %v2944_v17 = vld [vmem:[#allocation7 + $0xa8] sm:$0xf] }
 0x399   :  { %v2849_v15 = vmul.f32 -1.442695, %v1004_v36  ;;  %v2850_v30 = vmul.f32 -1.442695, %v1005_v47  ;;  %v996_v59 = vpop.f32.mrf.mxu0 }
 0x39b   :  { %3259 = vpow2.f32 %v2849_v15 }
 0x39c   :  { %3261 = vpow2.f32 %v2850_v30  ;;  %v3166_v30 = vld [vmem:[#allocation7 + $0x80] sm:$0xf0] }
 0x39e   :  { %v970_v45 = vpop.f32.mrf.mxu2  ;;  %v983_v56 = vpop.f32.mrf.mxu3 }
 0x39f   :  { %v2908_v56 = vld [vmem:[#allocation7 + $0x60] sm:$0xf] }
 0x3a1   :  { %v3260_v2 = vpop.eup %3259 }
 0x3a2   :  { %v3262_v9 = vpop.eup %3261  ;;  %v1012_v14 = vadd.f32 1.0, %v3260_v2  ;;  %v3163_v2 = vld [vmem:[#allocation7 + $0x68] sm:$0xf0] }
 0x3a3   :  { %v1013_v28 = vadd.f32 1.0, %v3262_v9 }
 0x3a4   :  { %3263 = vrcp.f32 %v1012_v14  ;;  %v1025_v61 = vand.u32 2147483648, %v1012_v14  ;;  %v1023_v32 = vand.u32 2147483647, %v1012_v14  ;;  %vm1019_vm1 = vweird.f32 %v1012_v14 }
 0x3a5   :  { %3265 = vrcp.f32 %v1013_v28  ;;  %v1040_v12 = vand.u32 2147483648, %v1013_v28  ;;  %vm1034_vm5 = vweird.f32 %v1013_v28  ;;  %v1038_v20 = vand.u32 2147483647, %v1013_v28 }
 0x3a6   :  { %v1026_v37 = vor.u32 1.1754944e-38, %v1025_v61  ;;  %vm1024_vm3 = vcmp.eq.f32.partialorder %v1023_v32, 8.507059e+37  ;;  %v2884_v61 = vld [vmem:[#allocation7 + $0x30] sm:$0xf] }
 0x3a7   :  { %v1041_v62 = vor.u32 1.1754944e-38, %v1040_v12  ;;  %vm1039_vm7 = vcmp.eq.f32.partialorder %v1038_v20, 8.507059e+37  ;;  %v3151_v12 = vld [vmem:[#allocation7 + $0x8] sm:$0xf0] }
 0x3aa   :  { %v3264_v35 = vpop.eup %3263 }
 0x3ab   :  { %v3266_v3 = vpop.eup %3265  ;;  %v1015_v18 = vmul.f32 %v3264_v35, %v1012_v14  ;;  %vm1020_vm0 = vweird.f32 %v3264_v35  ;;  %v2909_v14 = vor.u32 %v3163_v2, %v2908_v56  ;;  %v3196_v56 = vld [vmem:[#allocation9 + $0x170] sm:$0xf0] }
 0x3ac   :  { %v1030_v25 = vmul.f32 %v3266_v3, %v1013_v28  ;;  %vm1021_vm2 = vmor %vm1019_vm1, %vm1020_vm0  ;;  %vm1035_vm4 = vweird.f32 %v3266_v3 }
 0x3ad   :  { %v1016_v0 = vsub.f32 1.0, %v1015_v18  ;;  %vm1036_vm6 = vmor %vm1034_vm5, %vm1035_vm4  ;;  %v3160_v18 = vld [vmem:[#allocation7 + $0x50] sm:$0xf0] }
 0x3ae   :  { %v1031_v39 = vsub.f32 1.0, %v1030_v25 }
 0x3af   :  { %v1017_v33 = vmul.f32 %v3264_v35, %v1016_v0 }
 0x3b0   :  { %v1032_v21 = vmul.f32 %v3266_v3, %v1031_v39  ;;  %v3157_v39 = vld [vmem:[#allocation7 + $0x38] sm:$0xf0] }
 0x3b1   :  { %v1018_v43 = vadd.f32 %v3264_v35, %v1017_v33  ;;  %v2885_v32 = vor.u32 %v3157_v39, %v2884_v61  ;;  %v2952_v61 = vld [vmem:[#allocation7 + $0xb0] sm:$0xf]  ;;  %v4428_v39 = vld [vmem:[#allocation15_spill] sm:$0xff] }
 0x3b2   :  { %v1033_v48 = vadd.f32 %v3266_v3, %v1032_v21 }
 0x3b3   :  { %v1022_v5 = vsel %vm1021_vm2, %v3264_v35, %v1018_v43  ;;  %v2872_v43 = vld [vmem:[#allocation7 + $0x18] sm:$0xf] }
 0x3b4   :  { %v1027_v31 = vsel %vm1024_vm3, %v1026_v37, %v1022_v5  ;;  %v1037_v22 = vsel %vm1036_vm6, %v3266_v3, %v1033_v48  ;;  %v2896_v3 = vld [vmem:[#allocation7 + $0x48] sm:$0xf]  ;;  %v3154_v37 = vld [vmem:[#allocation7 + $0x20] sm:$0xf0] }
 0x3b5   :  { %v1045_v49 = vmul.f32 %v1044_v57, %v1027_v31  ;;  %v1042_v38 = vsel %vm1039_vm7, %v1041_v62, %v1037_v22  ;;  %v2897_v0 = vor.u32 %v3160_v18, %v2896_v3  ;;  %v2873_v31 = vor.u32 %v3154_v37, %v2872_v43  ;;  %v3173_v43 = vld [vmem:[#allocation7 + $0xb8] sm:$0xf0] }
 0x3b6   :  { %v1048_v23 = vsub.f32 1.0, %v1042_v38  ;;  %v1050_v60 = vmul.f32 %v1042_v38, %v3871_v53  ;;  %v2953_v37 = vor.u32 %v3173_v43, %v2952_v61  ;;  %v3156_v61 = vld [vmem:[#allocation7 + $0x34] sm:$0xf]  ;;  %v3158_v43 = vld [vmem:[#allocation7 + $0x40] sm:$0xf0] }
 0x3b7   :  { %v1046_v19 = vadd.f32 %v1045_v49, %v3745_v8  ;;  %v355_v8 = vadd.f32 %v3721_v6, %v3707_v44  ;;  %v2920_v6 = vld [vmem:[#allocation7 + $0x78] sm:$0xf]  ;;  %v2860_v49 = vld [vmem:[#allocation7] sm:$0xf] }
 0x3b8   :  { %v2921_v45 = vor.u32 %v3166_v30, %v2920_v6  ;;  %v3931_v6 = vpack.c.bf16 %v3801_v40, %v3749_v52  ;;  %v3936_v30 = vpack.c.bf16 %v3871_v53, %v3835_v16  ;;  %v3028_v52 = vld [vmem:[#allocation9 + $0x150] sm:$0xf]  ;;  %v3193_v40 = vld [vmem:[#allocation9 + $0x158] sm:$0xf0]  ;;  %v3016_v16 = vld [vmem:[#allocation9 + $0x138] sm:$0xf] }
 0x3b9   :  { %3267 = vtanh.f32 %v1046_v19  ;;  %v3190_v53 = vld [vmem:[#allocation9 + $0x140] sm:$0xf0] }
 0x3bf   :  { %v3268_v58 = vpop.eup %3267 }
 0x3c0   :  { %v1049_v51 = vmul.f32 %v3268_v58, %v1048_v23  ;;  %v2861_v23 = vor.u32 %v3151_v12, %v2860_v49  ;;  %v2934_v49 = vld [vmem:[#allocation7 + $0x9c] sm:$0xf0] }
 0x3c2   :  { %v3905_v50 = vadd.f32 %v1050_v60, %v1049_v51 }
 0x3c4   :  { %v1054_v7 = vpack.c.bf16 %v3905_v50, %v3905_v50 }
 0x3c6   :  { %1063 = vmatmul.bf16.vlgmr.msra.gmra.mxu1 %v1054_v7  ;;  %1076 = vmatmul.bf16.vlgmr.msra.gmra.mxu2 %v1054_v7 }
 0x3c7   :  { %1089 = vmatmul.bf16.vlgmr.msrb.gmra.mxu3 %v1054_v7  ;;  %1273 = vmatpush.bf16.msra.mxu1 %v3572_v10  ;;  %v3172_v10 = vld [vmem:[#allocation7 + $0xb0] sm:$0xf0] }
 0x3cb   :  { %1274 = vmatpush.bf16.msra.mxu1 %v3583_v26  ;;  %v2945_v26 = vor.u32 %v3172_v10, %v2944_v17 }
 0x3cd   :  { %1561 = vmatpush.bf16.msra.mxu2 %v2945_v26 }
 0x3cf   :  { %1275 = vmatpush.bf16.msra.mxu1 %v3591_v42  ;;  %v2932_v42 = vld [vmem:[#allocation7 + $0x90] sm:$0xf] }
 0x3d3   :  { %1276 = vmatpush.bf16.msra.mxu1 %v3597_v55  ;;  %v3169_v55 = vld [vmem:[#allocation7 + $0x98] sm:$0xf0] }
 0x3d7   :  { %1277 = vmatpush.bf16.msra.mxu1 %v3603_v1  ;;  %v384_v1 = vadd.f32 %v3786_v4, %v3715_v54 }
 0x3db   :  { %1278 = vmatpush.bf16.msra.mxu1 %v3614_v13  ;;  %v2933_v13 = vor.u32 %v3169_v55, %v2932_v42 }
 0x3dd   :  { %1562 = vmatpush.bf16.msra.mxu2 %v2933_v13 }
 0x3df   :  { %1279 = vmatpush.bf16.msra.mxu1 %v3621_v27 }
 0x3e1   :  { %1563 = vmatpush.bf16.msra.mxu2 %v2921_v45  ;;  %v3040_v45 = vld [vmem:[#allocation9 + $0x168] sm:$0xf] }
 0x3e2   :  { %v3944_v2 = vor.u32 %v3196_v56, %v3040_v45 }
 0x3e3   :  { %1280 = vmatpush.bf16.msra.mxu1 %v3630_v34 }
 0x3e5   :  { %1564 = vmatpush.bf16.msra.mxu2 %v2909_v14  ;;  %v3950_v14 = vor.u32 %v3190_v53, %v3016_v16  ;;  %v2956_v16 = vld [vmem:[#allocation9 + $0xc0] sm:$0xf]  ;;  %v3175_v53 = vld [vmem:[#allocation9 + $0xc8] sm:$0xf0] }
 0x3e9   :  { %1565 = vmatpush.bf16.msra.mxu2 %v2897_v0  ;;  %v2946_v0 = vld [vmem:[#allocation7 + $0xb4] sm:$0xf0] }
 0x3ed   :  { %1566 = vmatpush.bf16.msra.mxu2 %v2885_v32 }
 0x3f1   :  { %1567 = vmatpush.bf16.msra.mxu2 %v2873_v31  ;;  %v3184_v31 = vld [vmem:[#allocation9 + $0x110] sm:$0xf0] }
 0x3f5   :  { %1568 = vmatpush.bf16.msra.mxu2 %v2861_v23  ;;  %v2980_v23 = vld [vmem:[#allocation9 + $0xf0] sm:$0xf] }
 0x443   :  { %v1064_v11 = vpop.f32.mrf.mxu1 }
 0x444   :  { %v1100_v24 = vadd.f32 %v1064_v11, %v355_v8  ;;  %v413_v8 = vadd.f32 %v3747_v46, %v3728_v29 }
 0x446   :  { %v2851_v36 = vmul.f32 -1.442695, %v1100_v24 }
 0x448   :  { %3269 = vpow2.f32 %v2851_v36 }
 0x449   :  { %v1077_v27 = vpop.f32.mrf.mxu2 }
 0x44a   :  { %v1101_v47 = vadd.f32 %v1077_v27, %v384_v1  ;;  %v1090_v34 = vpop.f32.mrf.mxu3 }
 0x44b   :  { %v1066_v15 = vpop.f32.mrf.mxu1  ;;  %v1140_v7 = vadd.f32 %v3738_v41, %v1090_v34 }
 0x44c   :  { %v2852_v59 = vmul.f32 -1.442695, %v1101_v47 }
 0x44e   :  { %v3270_v9 = vpop.eup %3269  ;;  %3271 = vpow2.f32 %v2852_v59 }
 0x44f   :  { %v1108_v28 = vadd.f32 1.0, %v3270_v9  ;;  %v3947_v9 = vor.u32 %v3193_v40, %v3028_v52 }
 0x451   :  { %3273 = vrcp.f32 %v1108_v28  ;;  %v1079_v4 = vpop.f32.mrf.mxu2  ;;  %v1121_v48 = vand.u32 2147483648, %v1108_v28  ;;  %v1119_v19 = vand.u32 2147483647, %v1108_v28  ;;  %vm1115_vm9 = vweird.f32 %v1108_v28 }
 0x452   :  { %v1092_v35 = vpop.f32.mrf.mxu3  ;;  %v3187_v4 = vld [vmem:[#allocation9 + $0x128] sm:$0xf0] }
 0x453   :  { %v1122_v58 = vor.u32 1.1754944e-38, %v1121_v48  ;;  %vm1120_vm11 = vcmp.eq.f32.partialorder %v1119_v19, 8.507059e+37  ;;  %v3168_v48 = vld [vmem:[#allocation7 + $0x94] sm:$0xf]  ;;  %v2940_v19 = vld [vmem:[#allocation7 + $0x98] sm:$0xf] }
 0x454   :  { %v3272_v25 = vpop.eup %3271 }
 0x455   :  { %v1109_v33 = vadd.f32 1.0, %v3272_v25  ;;  %v3171_v25 = vld [vmem:[#allocation7 + $0xac] sm:$0xf] }
 0x457   :  { %v3274_v21 = vpop.eup %3273  ;;  %3275 = vrcp.f32 %v1109_v33  ;;  %v1136_v10 = vand.u32 2147483648, %v1109_v33  ;;  %v1134_v26 = vand.u32 2147483647, %v1109_v33  ;;  %vm1130_vm13 = vweird.f32 %v1109_v33 }
 0x458   :  { %v1111_v57 = vmul.f32 %v3274_v21, %v1108_v28  ;;  %vm1116_vm8 = vweird.f32 %v3274_v21  ;;  %v3004_v28 = vld [vmem:[#allocation9 + $0x120] sm:$0xf] }
 0x459   :  { %vm1117_vm10 = vmor %vm1115_vm9, %vm1116_vm8  ;;  %v1137_v55 = vor.u32 1.1754944e-38, %v1136_v10  ;;  %vm1135_vm15 = vcmp.eq.f32.partialorder %v1134_v26, 8.507059e+37  ;;  %v3955_v18 = vor.u32 %v3187_v4, %v3004_v28  ;;  %v3973_v28 = vor.u32 %v3175_v53, %v2956_v16  ;;  %v2898_v4 = vld [vmem:[#allocation7 + $0x54] sm:$0xf0] }
 0x45a   :  { %v1112_v5 = vsub.f32 1.0, %v1111_v57 }
 0x45c   :  { %v1113_v20 = vmul.f32 %v3274_v21, %v1112_v5 }
 0x45d   :  { %v3276_v22 = vpop.eup %3275 }
 0x45e   :  { %v1126_v62 = vmul.f32 %v3276_v22, %v1109_v33  ;;  %v1114_v38 = vadd.f32 %v3274_v21, %v1113_v20  ;;  %vm1131_vm12 = vweird.f32 %v3276_v22  ;;  %v2937_v20 = vor.u32 %v3168_v48, %v2934_v49 }
 0x45f   :  { %vm1132_vm14 = vmor %vm1130_vm13, %vm1131_vm12 }
 0x460   :  { %v1127_v51 = vsub.f32 1.0, %v1126_v62  ;;  %v1118_v60 = vsel %vm1117_vm10, %v3274_v21, %v1114_v38  ;;  %v2949_v21 = vor.u32 %v3171_v25, %v2946_v0  ;;  %v3161_v25 = vld [vmem:[#allocation7 + $0x58] sm:$0xf0] }
 0x461   :  { %v1123_v11 = vsel %vm1120_vm11, %v1122_v58, %v1118_v60  ;;  %v3181_v58 = vld [vmem:[#allocation9 + $0xf8] sm:$0xf0] }
 0x462   :  { %v1128_v17 = vmul.f32 %v3276_v22, %v1127_v51  ;;  %v1141_v24 = vmul.f32 %v1140_v7, %v1123_v11  ;;  %1590 = vmatpush.bf16.msrb.mxu3 %v2949_v21  ;;  %v3964_v7 = vor.u32 %v3181_v58, %v2980_v23  ;;  %v2922_v11 = vld [vmem:[#allocation7 + $0x84] sm:$0xf0]  ;;  %v2880_v58 = vld [vmem:[#allocation7 + $0x20] sm:$0xf] }
 0x464   :  { %v1129_v36 = vadd.f32 %v3276_v22, %v1128_v17  ;;  %v1142_v42 = vadd.f32 %v1141_v24, %v413_v8  ;;  %v3165_v8 = vld [vmem:[#allocation7 + $0x7c] sm:$0xf]  ;;  %v2928_v17 = vld [vmem:[#allocation7 + $0x80] sm:$0xf]  ;;  %v3167_v24 = vld [vmem:[#allocation7 + $0x88] sm:$0xf0] }
 0x465   :  { %v2925_v10 = vor.u32 %v3165_v8, %v2922_v11  ;;  %v2929_v26 = vor.u32 %v3167_v24, %v2928_v17  ;;  %v3150_v11 = vld [vmem:[#allocation7 + $0x4] sm:$0xf]  ;;  %v2862_v17 = vld [vmem:[#allocation7 + $0xc] sm:$0xf0]  ;;  %v2868_v24 = vld [vmem:[#allocation7 + $0x8] sm:$0xf] }
 0x466   :  { %v1133_v1 = vsel %vm1132_vm14, %v3276_v22, %v1129_v36  ;;  %3277 = vtanh.f32 %v1142_v42  ;;  %v3170_v22 = vld [vmem:[#allocation7 + $0xa0] sm:$0xf0]  ;;  %1591 = vmatpush.bf16.msrb.mxu3 %v2937_v20  ;;  %v2968_v36 = vld [vmem:[#allocation9 + $0xd8] sm:$0xf]  ;;  %v3153_v20 = vld [vmem:[#allocation7 + $0x1c] sm:$0xf] }
 0x467   :  { %v1138_v13 = vsel %vm1135_vm15, %v1137_v55, %v1133_v1  ;;  %v2941_v62 = vor.u32 %v3170_v22, %v2940_v19  ;;  %v3178_v42 = vld [vmem:[#allocation9 + $0xe0] sm:$0xf0]  ;;  %v2874_v19 = vld [vmem:[#allocation7 + $0x24] sm:$0xf0] }
 0x468   :  { %v1144_v41 = vsub.f32 1.0, %v1138_v13  ;;  %v1146_v46 = vmul.f32 %v1138_v13, %v3905_v50  ;;  %v3162_v55 = vld [vmem:[#allocation7 + $0x64] sm:$0xf]  ;;  %v3967_v13 = vor.u32 %v3178_v42, %v2968_v36  ;;  %v2877_v23 = vor.u32 %v3153_v20, %v2874_v19  ;;  %v3180_v19 = vld [vmem:[#allocation9 + $0xf4] sm:$0xf] }
 0x469   :  { %v2865_v42 = vor.u32 %v3150_v11, %v2862_v17 }
 0x46a   :  { %1592 = vmatpush.bf16.msrb.mxu3 %v2925_v10 }
 0x46c   :  { %v3278_v27 = vpop.eup %3277 }
 0x46d   :  { %v1145_v47 = vmul.f32 %v3278_v27, %v1144_v41  ;;  %v2910_v41 = vld [vmem:[#allocation7 + $0x6c] sm:$0xf0]  ;;  %v2916_v27 = vld [vmem:[#allocation7 + $0x68] sm:$0xf] }
 0x46e   :  { %v2913_v45 = vor.u32 %v3162_v55, %v2910_v41 }
 0x46f   :  { %v3925_v34 = vadd.f32 %v1146_v46, %v1145_v47  ;;  %v3164_v47 = vld [vmem:[#allocation7 + $0x70] sm:$0xf0] }
 0x470   :  { %v2917_v56 = vor.u32 %v3164_v47, %v2916_v27  ;;  %1593 = vmatpush.bf16.msrb.mxu3 %v2913_v45 }
 0x471   :  { %v1150_v15 = vpack.c.bf16 %v3925_v34, %v3925_v34  ;;  %v3941_v59 = vpack.c.bf16 %v3925_v34, %v3905_v50  ;;  %v387_v50 = vadd.f32 %v3788_v63, %v3715_v54  ;;  %v2992_v63 = vld [vmem:[#allocation9 + $0x108] sm:$0xf] }
 0x472   :  { %v3959_v12 = vor.u32 %v3184_v31, %v2992_v63 }
 0x473   :  { %1159 = vmatmul.bf16.vlgmr.msrb.gmra.mxu0 %v1150_v15  ;;  %1172 = vmatmul.bf16.vlgmr.msrb.gmra.mxu1 %v1150_v15 }
 0x474   :  { %1185 = vmatmul.bf16.vlgmr.msrb.gmra.mxu2 %v1150_v15  ;;  %1801 = vmatpush.bf16.msrb.mxu1 %v3944_v2 }
 0x475   :  { %1619 = vmatpush.bf16.msrb.mxu0 %v2953_v37 }
 0x478   :  { %1802 = vmatpush.bf16.msrb.mxu1 %v3947_v9 }
 0x479   :  { %1620 = vmatpush.bf16.msrb.mxu0 %v2941_v62 }
 0x47c   :  { %1803 = vmatpush.bf16.msrb.mxu1 %v3950_v14 }
 0x47d   :  { %1621 = vmatpush.bf16.msrb.mxu0 %v2929_v26  ;;  %v3152_v26 = vld [vmem:[#allocation7 + $0x10] sm:$0xf0] }
 0x47e   :  { %v2869_v27 = vor.u32 %v3152_v26, %v2868_v24 }
 0x480   :  { %1804 = vmatpush.bf16.msrb.mxu1 %v3955_v18 }
 0x481   :  { %1622 = vmatpush.bf16.msrb.mxu0 %v2917_v56 }
 0x484   :  { %1569 = vmatmul.bf16.vlgmr.msra.gmra.mxu2 %v3931_v6  ;;  %1805 = vmatpush.bf16.msrb.mxu1 %v3959_v12 }
 0x488   :  { %1806 = vmatpush.bf16.msrb.mxu1 %v3964_v7 }
 0x48c   :  { %1807 = vmatpush.bf16.msrb.mxu1 %v3967_v13 }
 0x490   :  { %1808 = vmatpush.bf16.msrb.mxu1 %v3973_v28 }
 0x494   :  { %1574 = vmatmul.bf16.gmra.mxu2 %v3936_v30 }
 0x4a4   :  { %1579 = vmatmul.bf16.gmra.mxu2 %v3941_v59 }
 0x4f0   :  { %v1160_v35 = vpop.f32.mrf.mxu0  ;;  %v1173_v3 = vpop.f32.mrf.mxu1 }
 0x4f1   :  { %v1196_v33 = vadd.f32 %v1160_v35, %v4428_v39  ;;  %v1197_v32 = vadd.f32 %v1173_v3, %v387_v50  ;;  %v3159_v50 = vld [vmem:[#allocation7 + $0x4c] sm:$0xf]  ;;  %v2904_v35 = vld [vmem:[#allocation7 + $0x50] sm:$0xf]  ;;  %v2886_v39 = vld [vmem:[#allocation7 + $0x3c] sm:$0xf0] }
 0x4f2   :  { %v2901_v3 = vor.u32 %v3159_v50, %v2898_v4  ;;  %v2905_v0 = vor.u32 %v3161_v25, %v2904_v35  ;;  %v2889_v21 = vor.u32 %v3156_v61, %v2886_v39  ;;  %v3042_v61 = vld [vmem:[#allocation9 + $0x174] sm:$0xf0] }
 0x4f3   :  { %v2853_v57 = vmul.f32 -1.442695, %v1196_v33  ;;  %v2854_v5 = vmul.f32 -1.442695, %v1197_v32  ;;  %v2892_v33 = vld [vmem:[#allocation7 + $0x38] sm:$0xf] }
 0x4f4   :  { %1594 = vmatpush.bf16.msrb.mxu3 %v2901_v3  ;;  %1623 = vmatpush.bf16.msrb.mxu0 %v2905_v0  ;;  %v3195_v0 = vld [vmem:[#allocation9 + $0x16c] sm:$0xf] }
 0x4f5   :  { %3279 = vpow2.f32 %v2853_v57 }
 0x4f6   :  { %3281 = vpow2.f32 %v2854_v5  ;;  %v2893_v5 = vor.u32 %v3158_v43, %v2892_v33  ;;  %v3993_v33 = vor.u32 %v3195_v0, %v3042_v61 }
 0x4f7   :  { %v3961_v38 = vpop.f32.mrf.mxu2 }
 0x4f8   :  { %v1162_v51 = vpop.f32.mrf.mxu0  ;;  %v1175_v60 = vpop.f32.mrf.mxu1  ;;  %1595 = vmatpush.bf16.msrb.mxu3 %v2889_v21  ;;  %1624 = vmatpush.bf16.msrb.mxu0 %v2893_v5  ;;  %v3030_v21 = vld [vmem:[#allocation9 + $0x15c] sm:$0xf0]  ;;  %v3186_v5 = vld [vmem:[#allocation9 + $0x124] sm:$0xf] }
 0x4f9   :  { %v3155_v51 = vld [vmem:[#allocation7 + $0x28] sm:$0xf0] }
 0x4fa   :  { %v2881_v8 = vor.u32 %v3155_v51, %v2880_v58  ;;  %v3177_v58 = vld [vmem:[#allocation9 + $0xdc] sm:$0xf]  ;;  %v2970_v51 = vld [vmem:[#allocation9 + $0xe4] sm:$0xf0] }
 0x4fb   :  { %v3280_v1 = vpop.eup %3279 }
 0x4fc   :  { %v3282_v46 = vpop.eup %3281  ;;  %v1204_v15 = vadd.f32 1.0, %v3280_v1  ;;  %1596 = vmatpush.bf16.msrb.mxu3 %v2877_v23  ;;  %v3980_v1 = vld [vmem:[%s4417_s5] ss:$0 sm:$0xff]  ;;  %1625 = vmatpush.bf16.msrb.mxu0 %v2881_v8  ;;  %v2958_v8 = vld [vmem:[#allocation9 + $0xcc] sm:$0xf0] }
 0x4fd   :  { %v3969_v52 = vadd.f32 1.0, %v3282_v46  ;;  %v1236_v41 = vadd.f32 %v3980_v1, %v3961_v38 }
 0x4fe   :  { %3283 = vrcp.f32 %v1204_v15  ;;  %v1217_v49 = vand.u32 2147483648, %v1204_v15  ;;  %v1215_v62 = vand.u32 2147483647, %v1204_v15  ;;  %vm1211_vm1 = vweird.f32 %v1204_v15 }
 0x4ff   :  { %3285 = vrcp.f32 %v3969_v52  ;;  %v1188_v40 = vpop.f32.mrf.mxu2  ;;  %vm1226_vm5 = vweird.f32 %v3969_v52  ;;  %v1230_v56 = vand.u32 2147483647, %v3969_v52 }
 0x500   :  { %v1218_v36 = vor.u32 1.1754944e-38, %v1217_v49  ;;  %vm1216_vm3 = vcmp.eq.f32.partialorder %v1215_v62, 8.507059e+37  ;;  %1597 = vmatpush.bf16.msrb.mxu3 %v2865_v42  ;;  %v4429_v40 = vld [vmem:[#allocation17_spill] sm:$0xff]  ;;  %1626 = vmatpush.bf16.msrb.mxu0 %v2869_v27  ;;  %v4430_v62 = vmov 0.0|0.0   ;;  %v3048_v42 = vld [vmem:[#allocation9 + $0x170] sm:$0xf] }
 0x501   :  { %vm1231_vm7 = vcmp.eq.f32.partialorder %v1230_v56, 8.507059e+37  ;;  %v2994_v49 = vld [vmem:[#allocation9 + $0x114] sm:$0xf0]  ;;  %v3024_v56 = vld [vmem:[#allocation9 + $0x140] sm:$0xf] }
 0x502   :  { %v3036_v27 = vld [vmem:[#allocation9 + $0x158] sm:$0xf] }
 0x504   :  { %v3284_v32 = vpop.eup %3283 }
 0x505   :  { %v3286_v37 = vpop.eup %3285  ;;  %v1207_v57 = vmul.f32 %v3284_v32, %v1204_v15  ;;  %vm1212_vm0 = vweird.f32 %v3284_v32  ;;  %v1232_v15 = vand.u32 2147483648, %v3969_v52 }
 0x506   :  { %v1222_v63 = vmul.f32 %v3286_v37, %v3969_v52  ;;  %vm1213_vm2 = vmor %vm1211_vm1, %vm1212_vm0  ;;  %vm1227_vm4 = vweird.f32 %v3286_v37 }
 0x507   :  { %v1208_v31 = vsub.f32 1.0, %v1207_v57  ;;  %vm1228_vm6 = vmor %vm1226_vm5, %vm1227_vm4  ;;  %v1233_v50 = vor.u32 1.1754944e-38, %v1232_v15 }
 0x508   :  { %v1223_v48 = vsub.f32 1.0, %v1222_v63  ;;  %v3006_v63 = vld [vmem:[#allocation9 + $0x12c] sm:$0xf0] }
 0x509   :  { %v1209_v22 = vmul.f32 %v3284_v32, %v1208_v31  ;;  %v4007_v31 = vor.u32 %v3186_v5, %v3006_v63 }
 0x50a   :  { %v1224_v60 = vmul.f32 %v3286_v37, %v1223_v48  ;;  %v3183_v48 = vld [vmem:[#allocation9 + $0x10c] sm:$0xf] }
 0x50b   :  { %v1210_v10 = vadd.f32 %v3284_v32, %v1209_v22  ;;  %v4012_v20 = vor.u32 %v3183_v48, %v2994_v49  ;;  %v2982_v22 = vld [vmem:[#allocation9 + $0xfc] sm:$0xf0] }
 0x50c   :  { %v1225_v47 = vadd.f32 %v3286_v37, %v1224_v60  ;;  %v4020_v23 = vor.u32 %v3180_v19, %v2982_v22  ;;  %v4025_v60 = vor.u32 %v3177_v58, %v2970_v51  ;;  %v2988_v19 = vld [vmem:[#allocation9 + $0xf8] sm:$0xf]  ;;  %v3182_v22 = vld [vmem:[#allocation9 + $0x100] sm:$0xf0]  ;;  %v2976_v58 = vld [vmem:[#allocation9 + $0xe0] sm:$0xf] }
 0x50d   :  { %v1214_v55 = vsel %vm1213_vm2, %v3284_v32, %v1210_v10  ;;  %v3192_v32 = vld [vmem:[#allocation9 + $0x154] sm:$0xf] }
 0x50e   :  { %v1219_v46 = vsel %vm1216_vm3, %v1218_v36, %v1214_v55  ;;  %v1229_v53 = vsel %vm1228_vm6, %v3286_v37, %v1225_v47  ;;  %v3997_v43 = vor.u32 %v3192_v32, %v3030_v21  ;;  %v3018_v37 = vld [vmem:[#allocation9 + $0x144] sm:$0xf0]  ;;  %v3197_v55 = vld [vmem:[#allocation9 + $0x178] sm:$0xf0]  ;;  %v4432_v47 = vld [vmem:[#allocation16_spill] sm:$0xff] }
 0x50f   :  { %v1237_v45 = vmul.f32 %v1236_v41, %v1219_v46  ;;  %v1234_v38 = vsel %vm1231_vm7, %v1233_v50, %v1229_v53  ;;  %v4053_v41 = vor.u32 %v3197_v55, %v3048_v42  ;;  %v360_v46 = vadd.f32 %v4432_v47, %v3707_v44  ;;  %v2964_v55 = vld [vmem:[#allocation9 + $0xc8] sm:$0xf] }
 0x510   :  { %v1240_v4 = vsub.f32 1.0, %v1234_v38  ;;  %v1242_v25 = vmul.f32 %v1234_v38, %v3925_v34  ;;  %v3189_v34 = vld [vmem:[#allocation9 + $0x13c] sm:$0xf] }
 0x511   :  { %v1238_v16 = vadd.f32 %v1237_v45, %v4429_v40  ;;  %v4002_v57 = vor.u32 %v3189_v34, %v3018_v37  ;;  %1827 = vmatpush.bf16.msrb.mxu2 %v4053_v41  ;;  %v3191_v40 = vld [vmem:[#allocation9 + $0x148] sm:$0xf0]  ;;  %v3000_v34 = vld [vmem:[#allocation9 + $0x110] sm:$0xf]  ;;  %v3185_v37 = vld [vmem:[#allocation9 + $0x118] sm:$0xf0] }
 0x512   :  { %v4063_v38 = vor.u32 %v3191_v40, %v3024_v56  ;;  %v4082_v5 = vor.u32 %v3185_v37, %v3000_v34 }
 0x513   :  { %3287 = vtanh.f32 %v1238_v16 }
 0x519   :  { %v3288_v35 = vpop.eup %3287 }
 0x51a   :  { %v1241_v3 = vmul.f32 %v3288_v35, %v1240_v4  ;;  %v3012_v4 = vld [vmem:[#allocation9 + $0x128] sm:$0xf]  ;;  %v3188_v35 = vld [vmem:[#allocation9 + $0x130] sm:$0xf0] }
 0x51b   :  { %v4070_v0 = vor.u32 %v3188_v35, %v3012_v4 }
 0x51c   :  { %v3989_v39 = vadd.f32 %v1242_v25, %v1241_v3 }
 0x51e   :  { %v1246_v52 = vpack.c.bf16 %v3989_v39, %v3989_v39 }
 0x520   :  { %1255 = vmatmul.bf16.vlgmr.msra.gmra.mxu3 %v1246_v52  ;;  %1268 = vmatmul.bf16.vlgmr.msra.gmra.mxu0 %v1246_v52 }
 0x521   :  { %1281 = vmatmul.bf16.vlgmr.msra.gmra.mxu1 %v1246_v52  ;;  %1895 = vmatpush.bf16.msra.mxu3 %v3944_v2 }
 0x522   :  { %1814 = vmatpush.bf16.msra.mxu1 %v3993_v33  ;;  %1908 = vmatpush.bf16.msra.mxu0 %v3993_v33 }
 0x525   :  { %1896 = vmatpush.bf16.msra.mxu3 %v3947_v9 }
 0x526   :  { %1815 = vmatpush.bf16.msra.mxu1 %v3997_v43  ;;  %1909 = vmatpush.bf16.msra.mxu0 %v3997_v43 }
 0x529   :  { %1897 = vmatpush.bf16.msra.mxu3 %v3950_v14 }
 0x52a   :  { %1816 = vmatpush.bf16.msra.mxu1 %v4002_v57  ;;  %1910 = vmatpush.bf16.msra.mxu0 %v4002_v57 }
 0x52d   :  { %1898 = vmatpush.bf16.msra.mxu3 %v3955_v18 }
 0x52e   :  { %1817 = vmatpush.bf16.msra.mxu1 %v4007_v31  ;;  %1911 = vmatpush.bf16.msra.mxu0 %v4007_v31 }
 0x530   :  { %1598 = vmatmul.bf16.vlgmr.msrb.gmra.mxu3 %v3931_v6  ;;  %1627 = vmatmul.bf16.vlgmr.msrb.gmra.mxu0 %v3931_v6  ;;  %v3174_v6 = vld [vmem:[#allocation9 + $0xc4] sm:$0xf] }
 0x531   :  { %1809 = vmatmul.bf16.vlgmr.msrb.gmra.mxu1 %v4430_v62  ;;  %1899 = vmatpush.bf16.msra.mxu3 %v3959_v12  ;;  %v4030_v11 = vor.u32 %v3174_v6, %v2958_v8  ;;  %v4089_v6 = vor.u32 %v3182_v22, %v2988_v19  ;;  %v3179_v8 = vld [vmem:[#allocation9 + $0xe8] sm:$0xf0] }
 0x532   :  { %1818 = vmatpush.bf16.msra.mxu1 %v4012_v20  ;;  %1912 = vmatpush.bf16.msra.mxu0 %v4012_v20 }
 0x535   :  { %1900 = vmatpush.bf16.msra.mxu3 %v3964_v7 }
 0x536   :  { %1819 = vmatpush.bf16.msra.mxu1 %v4020_v23  ;;  %1913 = vmatpush.bf16.msra.mxu0 %v4020_v23 }
 0x539   :  { %1901 = vmatpush.bf16.msra.mxu3 %v3967_v13 }
 0x53a   :  { %1820 = vmatpush.bf16.msra.mxu1 %v4025_v60  ;;  %1914 = vmatpush.bf16.msra.mxu0 %v4025_v60 }
 0x53d   :  { %1902 = vmatpush.bf16.msra.mxu3 %v3973_v28 }
 0x53e   :  { %1821 = vmatpush.bf16.msra.mxu1 %v4030_v11  ;;  %1915 = vmatpush.bf16.msra.mxu0 %v4030_v11 }
 0x540   :  { %1603 = vmatmul.bf16.gmra.mxu3 %v3936_v30  ;;  %1632 = vmatmul.bf16.gmra.mxu0 %v3936_v30  ;;  %v4431_v30 = vld [vmem:[#allocation18_spill] sm:$0xff] }
 0x541   :  { %1999 = vmatpush.bf16.msrb.mxu3 %v3993_v33  ;;  %1822 = vmatmul.bf16.vlgmr.msra.gmra.mxu1 %v4430_v62  ;;  %v389_v17 = vadd.f32 %v4431_v30, %v3715_v54 }
 0x542   :  { %1921 = vmatpush.bf16.msrb.mxu1 %v4053_v41  ;;  %2012 = vmatpush.bf16.msrb.mxu0 %v4053_v41 }
 0x545   :  { %2000 = vmatpush.bf16.msrb.mxu3 %v3997_v43 }
 0x549   :  { %2001 = vmatpush.bf16.msrb.mxu3 %v4002_v57 }
 0x54d   :  { %2002 = vmatpush.bf16.msrb.mxu3 %v4007_v31 }
 0x550   :  { %1608 = vmatmul.bf16.gmra.mxu3 %v3941_v59  ;;  %1637 = vmatmul.bf16.gmra.mxu0 %v3941_v59  ;;  %v3194_v59 = vld [vmem:[#allocation9 + $0x160] sm:$0xf0] }
 0x551   :  { %2003 = vmatpush.bf16.msrb.mxu3 %v4012_v20  ;;  %v4058_v45 = vor.u32 %v3194_v59, %v3036_v27  ;;  %v3176_v27 = vld [vmem:[#allocation9 + $0xd0] sm:$0xf0] }
 0x553   :  { %1828 = vmatpush.bf16.msrb.mxu2 %v4058_v45  ;;  %1922 = vmatpush.bf16.msrb.mxu1 %v4058_v45 }
 0x554   :  { %2013 = vmatpush.bf16.msrb.mxu0 %v4058_v45 }
 0x555   :  { %2004 = vmatpush.bf16.msrb.mxu3 %v4020_v23 }
 0x557   :  { %1829 = vmatpush.bf16.msrb.mxu2 %v4063_v38  ;;  %1923 = vmatpush.bf16.msrb.mxu1 %v4063_v38 }
 0x558   :  { %2014 = vmatpush.bf16.msrb.mxu0 %v4063_v38 }
 0x559   :  { %2005 = vmatpush.bf16.msrb.mxu3 %v4025_v60 }
 0x55b   :  { %1830 = vmatpush.bf16.msrb.mxu2 %v4070_v0  ;;  %1924 = vmatpush.bf16.msrb.mxu1 %v4070_v0 }
 0x55c   :  { %2015 = vmatpush.bf16.msrb.mxu0 %v4070_v0 }
 0x55d   :  { %2006 = vmatpush.bf16.msrb.mxu3 %v4030_v11 }
 0x55f   :  { %1831 = vmatpush.bf16.msrb.mxu2 %v4082_v5  ;;  %1925 = vmatpush.bf16.msrb.mxu1 %v4082_v5 }
 0x560   :  { %2016 = vmatpush.bf16.msrb.mxu0 %v4082_v5 }
 0x563   :  { %1832 = vmatpush.bf16.msrb.mxu2 %v4089_v6  ;;  %1926 = vmatpush.bf16.msrb.mxu1 %v4089_v6 }
 0x564   :  { %2017 = vmatpush.bf16.msrb.mxu0 %v4089_v6 }
 0x59d   :  { %v1269_v10 = vpop.f32.mrf.mxu0 }
 0x59e   :  { %v1293_v24 = vadd.f32 %v1269_v10, %v389_v17  ;;  %v4051_v26 = vpop.f32.mrf.mxu1  ;;  %v4092_v10 = vor.u32 %v3179_v8, %v2976_v58 }
 0x59f   :  { %v1332_v56 = vadd.f32 %v3980_v1, %v4051_v26 }
 0x5a0   :  { %v2856_v36 = vmul.f32 -1.442695, %v1293_v24  ;;  %1833 = vmatpush.bf16.msrb.mxu2 %v4092_v10  ;;  %1927 = vmatpush.bf16.msrb.mxu1 %v4092_v10 }
 0x5a1   :  { %2018 = vmatpush.bf16.msrb.mxu0 %v4092_v10 }
 0x5a2   :  { %3289 = vpow2.f32 %v2856_v36 }
 0x5a3   :  { %v1256_v15 = vpop.f32.mrf.mxu3 }
 0x5a4   :  { %v1292_v54 = vadd.f32 %v1256_v15, %v360_v46  ;;  %v4100_v15 = vor.u32 %v3176_v27, %v2964_v55 }
 0x5a5   :  { %v1271_v16 = vpop.f32.mrf.mxu0 }
 0x5a6   :  { %v2855_v53 = vmul.f32 -1.442695, %v1292_v54  ;;  %v1284_v50 = vpop.f32.mrf.mxu1  ;;  %1834 = vmatpush.bf16.msrb.mxu2 %v4100_v15  ;;  %1928 = vmatpush.bf16.msrb.mxu1 %v4100_v15 }
 0x5a7   :  { %v4433_v50 = vld [vmem:[#allocation19_spill] sm:$0xff]  ;;  %2019 = vmatpush.bf16.msrb.mxu0 %v4100_v15 }
 0x5a8   :  { %v3290_v44 = vpop.eup %3289  ;;  %3291 = vpow2.f32 %v2855_v53 }
 0x5a9   :  { %v4067_v3 = vadd.f32 1.0, %v3290_v44  ;;  %v418_v44 = vadd.f32 %v4433_v50, %v3728_v29 }
 0x5aa   :  { %1986 = vmatpush.bf16.msra.mxu2 %v3944_v2  ;;  %2077 = vmatpush.bf16.msra.mxu1 %v3944_v2 }
 0x5ab   :  { %v1258_v25 = vpop.f32.mrf.mxu3  ;;  %3293 = vrcp.f32 %v4067_v3  ;;  %v1328_v4 = vand.u32 2147483648, %v4067_v3  ;;  %vm1322_vm13 = vweird.f32 %v4067_v3  ;;  %v1326_v1 = vand.u32 2147483647, %v4067_v3 }
 0x5ad   :  { %v1329_v25 = vor.u32 1.1754944e-38, %v1328_v4  ;;  %vm1327_vm15 = vcmp.eq.f32.partialorder %v1326_v1, 8.507059e+37 }
 0x5ae   :  { %v3292_v61 = vpop.eup %3291  ;;  %v4075_v52 = vpop.f32.mrf.mxu1  ;;  %1987 = vmatpush.bf16.msra.mxu2 %v3947_v9  ;;  %2078 = vmatpush.bf16.msra.mxu1 %v3947_v9 }
 0x5af   :  { %v1300_v32 = vadd.f32 1.0, %v3292_v61 }
 0x5b1   :  { %3295 = vrcp.f32 %v1300_v32  ;;  %v4080_v21 = vpop.eup %3293  ;;  %v1313_v24 = vand.u32 2147483648, %v1300_v32  ;;  %v1311_v42 = vand.u32 2147483647, %v1300_v32  ;;  %vm1307_vm9 = vweird.f32 %v1300_v32 }
 0x5b2   :  { %v1318_v63 = vmul.f32 %v4080_v21, %v4067_v3  ;;  %vm1323_vm12 = vweird.f32 %v4080_v21  ;;  %1988 = vmatpush.bf16.msra.mxu2 %v3950_v14  ;;  %2079 = vmatpush.bf16.msra.mxu1 %v3950_v14 }
 0x5b3   :  { %v1314_v54 = vor.u32 1.1754944e-38, %v1313_v24  ;;  %vm1312_vm11 = vcmp.eq.f32.partialorder %v1311_v42, 8.507059e+37  ;;  %vm1324_vm14 = vmor %vm1322_vm13, %vm1323_vm12 }
 0x5b4   :  { %v1319_v30 = vsub.f32 1.0, %v1318_v63 }
 0x5b6   :  { %v1812_v48 = vpop.f32.mrf.mxu1  ;;  %v1320_v59 = vmul.f32 %v4080_v21, %v1319_v30  ;;  %1989 = vmatpush.bf16.msra.mxu2 %v3955_v18  ;;  %2080 = vmatpush.bf16.msra.mxu1 %v3955_v18  ;;  %v1599_v30 = vpop.f32.mrf.mxu3 }
 0x5b7   :  { %v3296_v49 = vpop.eup %3295 }
 0x5b8   :  { %v1303_v51 = vmul.f32 %v3296_v49, %v1300_v32  ;;  %vm1308_vm8 = vweird.f32 %v3296_v49  ;;  %v1321_v53 = vadd.f32 %v4080_v21, %v1320_v59 }
 0x5b9   :  { %vm1309_vm10 = vmor %vm1307_vm9, %vm1308_vm8 }
 0x5ba   :  { %v1304_v17 = vsub.f32 1.0, %v1303_v51  ;;  %v1325_v29 = vsel %vm1324_vm14, %v4080_v21, %v1321_v53  ;;  %1990 = vmatpush.bf16.msra.mxu2 %v3959_v12  ;;  %2081 = vmatpush.bf16.msra.mxu1 %v3959_v12 }
 0x5bb   :  { %v1330_v32 = vsel %vm1327_vm15, %v1329_v25, %v1325_v29 }
 0x5bc   :  { %v1305_v36 = vmul.f32 %v3296_v49, %v1304_v17  ;;  %v1336_v3 = vsub.f32 1.0, %v1330_v32  ;;  %v1338_v63 = vmul.f32 %v1330_v32, %v3989_v39 }
 0x5be   :  { %v1306_v47 = vadd.f32 %v3296_v49, %v1305_v36  ;;  %v4097_v46 = vpop.f32.mrf.mxu1  ;;  %1991 = vmatpush.bf16.msra.mxu2 %v3964_v7  ;;  %2082 = vmatpush.bf16.msra.mxu1 %v3964_v7 }
 0x5c0   :  { %v1310_v40 = vsel %vm1309_vm10, %v3296_v49, %v1306_v47 }
 0x5c1   :  { %v1315_v16 = vsel %vm1312_vm11, %v1314_v54, %v1310_v40 }
 0x5c2   :  { %v1333_v35 = vmul.f32 %v1332_v56, %v1315_v16  ;;  %1992 = vmatpush.bf16.msra.mxu2 %v3967_v13  ;;  %2083 = vmatpush.bf16.msra.mxu1 %v3967_v13 }
 0x5c4   :  { %v1334_v26 = vadd.f32 %v1333_v35, %v418_v44 }
 0x5c6   :  { %3297 = vtanh.f32 %v1334_v26  ;;  %v1825_v61 = vpop.f32.mrf.mxu1  ;;  %1993 = vmatpush.bf16.msra.mxu2 %v3973_v28  ;;  %2084 = vmatpush.bf16.msra.mxu1 %v3973_v28 }
 0x5c7   :  { %v4169_v61 = vld [vmem:[%s4417_s5 + $0x1] ss:$0 sm:$0xff] }
 0x5cc   :  { %v3298_v34 = vpop.eup %3297 }
 0x5cd   :  { %v1337_v37 = vmul.f32 %v3298_v34, %v1336_v3 }
 0x5cf   :  { %v1339_v48 = vadd.f32 %v1338_v63, %v1337_v37  ;;  %v1628_v37 = vpop.f32.mrf.mxu0 }
 0x5d1   :  { %v1425_v21 = vpack.c.bf16 %v1339_v48, %v3989_v39  ;;  %v1570_v39 = vpop.f32.mrf.mxu2 }
 0x5d3   :  { %1584 = vmatmul.bf16.gmra.mxu2 %v1425_v21  ;;  %1613 = vmatmul.bf16.gmra.mxu3 %v1425_v21 }
 0x5d4   :  { %1642 = vmatmul.bf16.gmra.mxu0 %v1425_v21 }
 0x5d9   :  { %v4144_v49 = vpop.f32.mrf.mxu2 }
 0x5e1   :  { %v4146_v19 = vpop.f32.mrf.mxu2 }
 0x5e3   :  { %1835 = vmatmul.bf16.vlgmr.msrb.gmra.mxu2 %v4430_v62  ;;  %v1417_v62 = vld [vmem:[#allocation10 + $0x3] sm:$0x7] }
 0x5e4   :  { %2090 = vmatpush.bf16.msrb.mxu2 %v3993_v33  ;;  %v4148_v22 = vperm.slane %v1417_v62, 0  ;;  %v4152_v8 = vperm.slane %v1417_v62, 1  ;;  %v4171_v3 = vperm.slane %v1417_v62, 2 }
 0x5e6   :  { %v1571_v58 = vadd.f32 %v1570_v39, %v4148_v22  ;;  %v1600_v36 = vadd.f32 %v1599_v30, %v4152_v8 }
 0x5e8   :  { %2091 = vmatpush.bf16.msrb.mxu2 %v3997_v43  ;;  %v1843_v51 = vadd.f32 %v4075_v52, %v1571_v58  ;;  %v1844_v42 = vadd.f32 %v4097_v46, %v1600_v36 }
 0x5e9   :  { %v4154_v17 = vpop.f32.mrf.mxu2 }
 0x5ea   :  { %v3050_v24 = vmul.f32 -1.442695, %v1843_v51  ;;  %v3051_v55 = vmul.f32 -1.442695, %v1844_v42  ;;  %v1629_v51 = vadd.f32 %v1628_v37, %v4171_v3 }
 0x5ec   :  { %2092 = vmatpush.bf16.msrb.mxu2 %v4002_v57  ;;  %3299 = vpow2.f32 %v3050_v24 }
 0x5ed   :  { %3301 = vpow2.f32 %v3051_v55 }
 0x5f0   :  { %2093 = vmatpush.bf16.msrb.mxu2 %v4007_v31 }
 0x5f1   :  { %v4158_v27 = vpop.f32.mrf.mxu2 }
 0x5f2   :  { %v3300_v59 = vpop.eup %3299 }
 0x5f3   :  { %v1851_v47 = vadd.f32 1.0, %v3300_v59  ;;  %v3302_v54 = vpop.eup %3301 }
 0x5f4   :  { %2094 = vmatpush.bf16.msrb.mxu2 %v4012_v20  ;;  %v1852_v56 = vadd.f32 1.0, %v3302_v54 }
 0x5f5   :  { %3303 = vrcp.f32 %v1851_v47  ;;  %v1864_v29 = vand.u32 2147483648, %v1851_v47  ;;  %vm1858_vm1 = vweird.f32 %v1851_v47  ;;  %v1862_v25 = vand.u32 2147483647, %v1851_v47 }
 0x5f6   :  { %3305 = vrcp.f32 %v1852_v56  ;;  %v1879_v30 = vand.u32 2147483648, %v1852_v56  ;;  %vm1873_vm5 = vweird.f32 %v1852_v56  ;;  %v1877_v36 = vand.u32 2147483647, %v1852_v56 }
 0x5f7   :  { %v1865_v48 = vor.u32 1.1754944e-38, %v1864_v29  ;;  %vm1863_vm3 = vcmp.eq.f32.partialorder %v1862_v25, 8.507059e+37 }
 0x5f8   :  { %2095 = vmatpush.bf16.msrb.mxu2 %v4020_v23  ;;  %v1880_v55 = vor.u32 1.1754944e-38, %v1879_v30  ;;  %vm1878_vm7 = vcmp.eq.f32.partialorder %v1877_v36, 8.507059e+37 }
 0x5f9   :  { %v4160_v52 = vpop.f32.mrf.mxu2 }
 0x5fb   :  { %v3304_v40 = vpop.eup %3303 }
 0x5fc   :  { %2096 = vmatpush.bf16.msrb.mxu2 %v4025_v60  ;;  %v1854_v16 = vmul.f32 %v3304_v40, %v1851_v47  ;;  %v3306_v50 = vpop.eup %3305  ;;  %vm1859_vm0 = vweird.f32 %v3304_v40 }
 0x5fd   :  { %v1869_v46 = vmul.f32 %v3306_v50, %v1852_v56  ;;  %vm1860_vm2 = vmor %vm1858_vm1, %vm1859_vm0  ;;  %vm1874_vm4 = vweird.f32 %v3306_v50  ;;  %v1630_v56 = vpop.f32.mrf.mxu0 }
 0x5fe   :  { %v1855_v44 = vsub.f32 1.0, %v1854_v16  ;;  %vm1875_vm6 = vmor %vm1873_vm5, %vm1874_vm4 }
 0x5ff   :  { %v1870_v1 = vsub.f32 1.0, %v1869_v46 }
 0x600   :  { %2097 = vmatpush.bf16.msrb.mxu2 %v4030_v11  ;;  %v1856_v4 = vmul.f32 %v3304_v40, %v1855_v44 }
 0x601   :  { %v1871_v32 = vmul.f32 %v3306_v50, %v1870_v1 }
 0x602   :  { %v1857_v26 = vadd.f32 %v3304_v40, %v1856_v4 }
 0x603   :  { %v1872_v58 = vadd.f32 %v3306_v50, %v1871_v32 }
 0x604   :  { %v1861_v34 = vsel %vm1860_vm2, %v3304_v40, %v1857_v26 }
 0x605   :  { %v1866_v39 = vsel %vm1863_vm3, %v1865_v48, %v1861_v34  ;;  %v1876_v62 = vsel %vm1875_vm6, %v3306_v50, %v1872_v58  ;;  %v1601_v50 = vpop.f32.mrf.mxu3  ;;  %v4203_v1 = vpop.f32.mrf.mxu0 }
 0x606   :  { %v1881_v47 = vsel %vm1878_vm7, %v1880_v55, %v1876_v62  ;;  %v1573_v62 = vadd.f32 %v4144_v49, %v4148_v22 }
 0x607   :  { %v1890_v54 = vsub.f32 1.0, %v1881_v47  ;;  %v1892_v44 = vmul.f32 0.0, %v1881_v47 }
 0x60d   :  { %v4205_v26 = vpop.f32.mrf.mxu3  ;;  %v4207_v29 = vpop.f32.mrf.mxu0 }
 0x615   :  { %v4209_v25 = vpop.f32.mrf.mxu3  ;;  %v4211_v32 = vpop.f32.mrf.mxu0 }
 0x61d   :  { %v4213_v34 = vpop.f32.mrf.mxu3  ;;  %v4215_v37 = vpop.f32.mrf.mxu0 }
 0x651   :  { %v4219_v48 = vpop.f32.mrf.mxu0 }
 0x652   :  { %4435 = vst [vmem:[#allocation17_spill] sm:$0xff] %v4219_v48 }
 0x656   :  { %v4162_v53 = vpop.f32.mrf.mxu2 }
 0x65e   :  { %v4164_v35 = vpop.f32.mrf.mxu2 }
 0x65f   :  { %4434 = vst [vmem:[#allocation15_spill] sm:$0xff] %v4164_v35 }
 0x666   :  { %v1836_v63 = vpop.f32.mrf.mxu2 }
 0x667   :  { %v1886_v21 = vadd.f32 %v4169_v61, %v1836_v63  ;;  %v4217_v63 = vpop.f32.mrf.mxu3 }
 0x669   :  { %v1887_v24 = vmul.f32 %v1886_v21, %v1866_v39  ;;  %v4223_v39 = vpop.f32.mrf.mxu0 }
 0x66a   :  { %4437 = vst [vmem:[#allocation16_spill] sm:$0xff] %v4223_v39 }
 0x66b   :  { %v1888_v42 = vadd.f32 %v1887_v24, %v1629_v51  ;;  %v1602_v51 = vadd.f32 %v1601_v50, %v4152_v8 }
 0x66d   :  { %3307 = vtanh.f32 %v1888_v42 }
 0x66e   :  { %v1838_v59 = vpop.f32.mrf.mxu2 }
 0x66f   :  { %v4221_v21 = vpop.f32.mrf.mxu3 }
 0x670   :  { %4436 = vst [vmem:[#allocation18_spill] sm:$0xff] %v4221_v21 }
 0x673   :  { %v3308_v40 = vpop.eup %3307 }
 0x674   :  { %v1891_v16 = vmul.f32 %v3308_v40, %v1890_v54 }
 0x676   :  { %v4175_v46 = vadd.f32 %v1892_v44, %v1891_v16 }
 0x677   :  { %v4225_v58 = vpop.f32.mrf.mxu3 }
 0x678   :  { %v1894_v4 = vpack.c.bf16 %v4175_v46, %v4175_v46  ;;  %4438 = vst [vmem:[#allocation19_spill] sm:$0xff] %v4225_v58 }
 0x67a   :  { %1903 = vmatmul.bf16.vlgmr.msra.gmra.mxu3 %v1894_v4  ;;  %1916 = vmatmul.bf16.vlgmr.msra.gmra.mxu0 %v1894_v4 }
 0x67b   :  { %1929 = vmatmul.bf16.vlgmr.msrb.gmra.mxu1 %v1894_v4  ;;  %2103 = vmatpush.bf16.msra.mxu3 %v4053_v41 }
 0x67c   :  { %2168 = vmatpush.bf16.msra.mxu0 %v3944_v2  ;;  %2181 = vmatpush.bf16.msrb.mxu1 %v3993_v33 }
 0x67f   :  { %2104 = vmatpush.bf16.msra.mxu3 %v4058_v45 }
 0x680   :  { %2169 = vmatpush.bf16.msra.mxu0 %v3947_v9  ;;  %2182 = vmatpush.bf16.msrb.mxu1 %v3997_v43 }
 0x683   :  { %2105 = vmatpush.bf16.msra.mxu3 %v4063_v38 }
 0x684   :  { %2170 = vmatpush.bf16.msra.mxu0 %v3950_v14  ;;  %2183 = vmatpush.bf16.msrb.mxu1 %v4002_v57 }
 0x687   :  { %2106 = vmatpush.bf16.msra.mxu3 %v4070_v0 }
 0x688   :  { %2171 = vmatpush.bf16.msra.mxu0 %v3955_v18  ;;  %2184 = vmatpush.bf16.msrb.mxu1 %v4007_v31 }
 0x68b   :  { %2107 = vmatpush.bf16.msra.mxu3 %v4082_v5 }
 0x68c   :  { %2172 = vmatpush.bf16.msra.mxu0 %v3959_v12  ;;  %2185 = vmatpush.bf16.msrb.mxu1 %v4012_v20 }
 0x68f   :  { %2108 = vmatpush.bf16.msra.mxu3 %v4089_v6 }
 0x690   :  { %2173 = vmatpush.bf16.msra.mxu0 %v3964_v7  ;;  %2186 = vmatpush.bf16.msrb.mxu1 %v4020_v23 }
 0x693   :  { %2109 = vmatpush.bf16.msra.mxu3 %v4092_v10 }
 0x694   :  { %2174 = vmatpush.bf16.msra.mxu0 %v3967_v13  ;;  %2187 = vmatpush.bf16.msrb.mxu1 %v4025_v60 }
 0x697   :  { %2110 = vmatpush.bf16.msra.mxu3 %v4100_v15 }
 0x698   :  { %2175 = vmatpush.bf16.msra.mxu0 %v3973_v28  ;;  %2188 = vmatpush.bf16.msrb.mxu1 %v4030_v11 }
 0x6f7   :  { %v1917_v30 = vpop.f32.mrf.mxu0 }
 0x6f8   :  { %v1938_v24 = vadd.f32 %v1917_v30, %v1602_v51  ;;  %v1930_v36 = vpop.f32.mrf.mxu1 }
 0x6fa   :  { %v3053_v42 = vmul.f32 -1.442695, %v1938_v24 }
 0x6fc   :  { %3309 = vpow2.f32 %v3053_v42 }
 0x6fd   :  { %v1904_v55 = vpop.f32.mrf.mxu3 }
 0x6fe   :  { %v1937_v59 = vadd.f32 %v1904_v55, %v1573_v62 }
 0x6ff   :  { %v1919_v47 = vpop.f32.mrf.mxu0 }
 0x700   :  { %v3052_v54 = vmul.f32 -1.442695, %v1937_v59  ;;  %v1932_v40 = vpop.f32.mrf.mxu1 }
 0x702   :  { %v3310_v16 = vpop.eup %3309  ;;  %3311 = vpow2.f32 %v3052_v54  ;;  %v1977_v54 = vadd.f32 %v4169_v61, %v1930_v36 }
 0x703   :  { %v1946_v44 = vadd.f32 1.0, %v3310_v16 }
 0x705   :  { %v1906_v4 = vpop.f32.mrf.mxu3  ;;  %3313 = vrcp.f32 %v1946_v44  ;;  %vm1967_vm13 = vweird.f32 %v1946_v44 }
 0x706   :  { %v1631_v4 = vadd.f32 %v1630_v56, %v4171_v3 }
 0x708   :  { %v3312_v39 = vpop.eup %3311 }
 0x709   :  { %v1945_v50 = vadd.f32 1.0, %v3312_v39 }
 0x70b   :  { %3315 = vrcp.f32 %v1945_v50  ;;  %v3314_v51 = vpop.eup %3313  ;;  %v1958_v42 = vand.u32 2147483648, %v1945_v50  ;;  %v1956_v62 = vand.u32 2147483647, %v1945_v50  ;;  %vm1952_vm9 = vweird.f32 %v1945_v50 }
 0x70c   :  { %v1963_v30 = vmul.f32 %v3314_v51, %v1946_v44  ;;  %vm1968_vm12 = vweird.f32 %v3314_v51 }
 0x70d   :  { %v1959_v47 = vor.u32 1.1754944e-38, %v1958_v42  ;;  %vm1957_vm11 = vcmp.eq.f32.partialorder %v1956_v62, 8.507059e+37  ;;  %vm1969_vm14 = vmor %vm1967_vm13, %vm1968_vm12 }
 0x70e   :  { %v1964_v35 = vsub.f32 1.0, %v1963_v30  ;;  %v1973_v30 = vand.u32 2147483648, %v1946_v44 }
 0x710   :  { %v1965_v55 = vmul.f32 %v3314_v51, %v1964_v35 }
 0x711   :  { %v3316_v24 = vpop.eup %3315 }
 0x712   :  { %v1948_v58 = vmul.f32 %v3316_v24, %v1945_v50  ;;  %vm1953_vm8 = vweird.f32 %v3316_v24  ;;  %v1966_v39 = vadd.f32 %v3314_v51, %v1965_v55 }
 0x713   :  { %vm1954_vm10 = vmor %vm1952_vm9, %vm1953_vm8 }
 0x714   :  { %v1949_v49 = vsub.f32 1.0, %v1948_v58  ;;  %v1970_v35 = vsel %vm1969_vm14, %v3314_v51, %v1966_v39 }
 0x716   :  { %v1950_v48 = vmul.f32 %v3316_v24, %v1949_v49  ;;  %v1971_v49 = vand.u32 2147483647, %v1946_v44  ;;  %v1605_v44 = vadd.f32 %v4205_v26, %v4152_v8 }
 0x718   :  { %v1951_v59 = vadd.f32 %v3316_v24, %v1950_v48  ;;  %v1974_v48 = vor.u32 1.1754944e-38, %v1973_v30  ;;  %vm1972_vm15 = vcmp.eq.f32.partialorder %v1971_v49, 8.507059e+37 }
 0x71a   :  { %v1955_v40 = vsel %vm1954_vm10, %v3316_v24, %v1951_v59  ;;  %v1975_v50 = vsel %vm1972_vm15, %v1974_v48, %v1970_v35 }
 0x71b   :  { %v1960_v16 = vsel %vm1957_vm11, %v1959_v47, %v1955_v40  ;;  %v1981_v42 = vsub.f32 1.0, %v1975_v50  ;;  %v1983_v62 = vmul.f32 %v1975_v50, %v4175_v46 }
 0x71c   :  { %v1978_v58 = vmul.f32 %v1977_v54, %v1960_v16 }
 0x71e   :  { %v1979_v21 = vadd.f32 %v1978_v58, %v1631_v4 }
 0x720   :  { %3317 = vtanh.f32 %v1979_v21  ;;  %v1576_v21 = vadd.f32 %v4146_v19, %v4148_v22 }
 0x726   :  { %v3318_v36 = vpop.eup %3317 }
 0x727   :  { %v1982_v24 = vmul.f32 %v3318_v36, %v1981_v42 }
 0x729   :  { %v4233_v55 = vadd.f32 %v1983_v62, %v1982_v24 }
 0x72b   :  { %v1985_v56 = vpack.c.bf16 %v4233_v55, %v4233_v55 }
 0x72d   :  { %1994 = vmatmul.bf16.vlgmr.msra.gmra.mxu2 %v1985_v56  ;;  %2007 = vmatmul.bf16.vlgmr.msrb.gmra.mxu3 %v1985_v56 }
 0x72e   :  { %2020 = vmatmul.bf16.vlgmr.msrb.gmra.mxu0 %v1985_v56  ;;  %2194 = vmatpush.bf16.msra.mxu2 %v4053_v41 }
 0x72f   :  { %2259 = vmatpush.bf16.msrb.mxu3 %v3944_v2  ;;  %2272 = vmatpush.bf16.msrb.mxu0 %v3993_v33 }
 0x732   :  { %2195 = vmatpush.bf16.msra.mxu2 %v4058_v45 }
 0x733   :  { %2260 = vmatpush.bf16.msrb.mxu3 %v3947_v9  ;;  %2273 = vmatpush.bf16.msrb.mxu0 %v3997_v43 }
 0x736   :  { %2196 = vmatpush.bf16.msra.mxu2 %v4063_v38 }
 0x737   :  { %2261 = vmatpush.bf16.msrb.mxu3 %v3950_v14  ;;  %2274 = vmatpush.bf16.msrb.mxu0 %v4002_v57 }
 0x73a   :  { %2197 = vmatpush.bf16.msra.mxu2 %v4070_v0 }
 0x73b   :  { %2262 = vmatpush.bf16.msrb.mxu3 %v3955_v18  ;;  %2275 = vmatpush.bf16.msrb.mxu0 %v4007_v31 }
 0x73e   :  { %2198 = vmatpush.bf16.msra.mxu2 %v4082_v5 }
 0x73f   :  { %2263 = vmatpush.bf16.msrb.mxu3 %v3959_v12  ;;  %2276 = vmatpush.bf16.msrb.mxu0 %v4012_v20 }
 0x742   :  { %2199 = vmatpush.bf16.msra.mxu2 %v4089_v6 }
 0x743   :  { %2264 = vmatpush.bf16.msrb.mxu3 %v3964_v7  ;;  %2277 = vmatpush.bf16.msrb.mxu0 %v4020_v23 }
 0x746   :  { %2200 = vmatpush.bf16.msra.mxu2 %v4092_v10 }
 0x747   :  { %2265 = vmatpush.bf16.msrb.mxu3 %v3967_v13  ;;  %2278 = vmatpush.bf16.msrb.mxu0 %v4025_v60 }
 0x74a   :  { %2201 = vmatpush.bf16.msra.mxu2 %v4100_v15 }
 0x74b   :  { %2266 = vmatpush.bf16.msrb.mxu3 %v3973_v28  ;;  %2279 = vmatpush.bf16.msrb.mxu0 %v4030_v11 }
 0x7ab   :  { %v2021_v46 = vpop.f32.mrf.mxu0 }
 0x7b0   :  { %v1995_v51 = vpop.f32.mrf.mxu2  ;;  %v2008_v59 = vpop.f32.mrf.mxu3 }
 0x7b1   :  { %v2028_v47 = vadd.f32 %v1995_v51, %v1576_v21  ;;  %v2029_v54 = vadd.f32 %v2008_v59, %v1605_v44 }
 0x7b3   :  { %v3054_v40 = vmul.f32 -1.442695, %v2028_v47  ;;  %v3055_v39 = vmul.f32 -1.442695, %v2029_v54  ;;  %v2023_v16 = vpop.f32.mrf.mxu0  ;;  %v2068_v47 = vadd.f32 %v4169_v61, %v2021_v46 }
 0x7b4   :  { %v1634_v16 = vadd.f32 %v4203_v1, %v4171_v3 }
 0x7b5   :  { %3319 = vpow2.f32 %v3054_v40 }
 0x7b6   :  { %3321 = vpow2.f32 %v3055_v39 }
 0x7b8   :  { %v1997_v4 = vpop.f32.mrf.mxu2  ;;  %v2010_v30 = vpop.f32.mrf.mxu3 }
 0x7bb   :  { %v3320_v58 = vpop.eup %3319 }
 0x7bc   :  { %v3322_v49 = vpop.eup %3321  ;;  %v2036_v35 = vadd.f32 1.0, %v3320_v58 }
 0x7bd   :  { %v2037_v48 = vadd.f32 1.0, %v3322_v49 }
 0x7be   :  { %3323 = vrcp.f32 %v2036_v35  ;;  %v2049_v24 = vand.u32 2147483648, %v2036_v35  ;;  %v2047_v21 = vand.u32 2147483647, %v2036_v35  ;;  %vm2043_vm1 = vweird.f32 %v2036_v35 }
 0x7bf   :  { %3325 = vrcp.f32 %v2037_v48  ;;  %v2064_v30 = vand.u32 2147483648, %v2037_v48  ;;  %vm2058_vm5 = vweird.f32 %v2037_v48  ;;  %v2062_v58 = vand.u32 2147483647, %v2037_v48 }
 0x7c0   :  { %v2050_v59 = vor.u32 1.1754944e-38, %v2049_v24  ;;  %vm2048_vm3 = vcmp.eq.f32.partialorder %v2047_v21, 8.507059e+37  ;;  %v1607_v21 = vadd.f32 %v4209_v25, %v4152_v8 }
 0x7c1   :  { %vm2063_vm7 = vcmp.eq.f32.partialorder %v2062_v58, 8.507059e+37 }
 0x7c4   :  { %v3324_v19 = vpop.eup %3323 }
 0x7c5   :  { %v3326_v50 = vpop.eup %3325  ;;  %v2039_v26 = vmul.f32 %v3324_v19, %v2036_v35  ;;  %vm2044_vm0 = vweird.f32 %v3324_v19  ;;  %v2065_v35 = vor.u32 1.1754944e-38, %v2064_v30 }
 0x7c6   :  { %v2054_v42 = vmul.f32 %v3326_v50, %v2037_v48  ;;  %vm2045_vm2 = vmor %vm2043_vm1, %vm2044_vm0  ;;  %vm2059_vm4 = vweird.f32 %v3326_v50 }
 0x7c7   :  { %v2040_v36 = vsub.f32 1.0, %v2039_v26  ;;  %vm2060_vm6 = vmor %vm2058_vm5, %vm2059_vm4 }
 0x7c8   :  { %v2055_v62 = vsub.f32 1.0, %v2054_v42 }
 0x7c9   :  { %v2041_v56 = vmul.f32 %v3324_v19, %v2040_v36 }
 0x7ca   :  { %v2056_v44 = vmul.f32 %v3326_v50, %v2055_v62 }
 0x7cb   :  { %v2042_v51 = vadd.f32 %v3324_v19, %v2041_v56 }
 0x7cc   :  { %v2057_v39 = vadd.f32 %v3326_v50, %v2056_v44 }
 0x7cd   :  { %v2046_v54 = vsel %vm2045_vm2, %v3324_v19, %v2042_v51 }
 0x7ce   :  { %v2051_v40 = vsel %vm2048_vm3, %v2050_v59, %v2046_v54  ;;  %v2061_v26 = vsel %vm2060_vm6, %v3326_v50, %v2057_v39 }
 0x7cf   :  { %v2069_v4 = vmul.f32 %v2068_v47, %v2051_v40  ;;  %v2066_v42 = vsel %vm2063_vm7, %v2065_v35, %v2061_v26 }
 0x7d0   :  { %v2072_v46 = vsub.f32 1.0, %v2066_v42  ;;  %v2074_v24 = vmul.f32 %v2066_v42, %v4233_v55  ;;  %v1578_v55 = vadd.f32 %v4154_v17, %v4148_v22 }
 0x7d1   :  { %v2070_v49 = vadd.f32 %v2069_v4, %v1634_v16 }
 0x7d3   :  { %3327 = vtanh.f32 %v2070_v49 }
 0x7d9   :  { %v3328_v19 = vpop.eup %3327 }
 0x7da   :  { %v2073_v36 = vmul.f32 %v3328_v19, %v2072_v46 }
 0x7dc   :  { %v4269_v62 = vadd.f32 %v2074_v24, %v2073_v36 }
 0x7de   :  { %v2076_v1 = vpack.c.bf16 %v4269_v62, %v4269_v62 }
 0x7e0   :  { %2085 = vmatmul.bf16.vlgmr.msra.gmra.mxu1 %v2076_v1  ;;  %2098 = vmatmul.bf16.vlgmr.msrb.gmra.mxu2 %v2076_v1 }
 0x7e1   :  { %2111 = vmatmul.bf16.vlgmr.msra.gmra.mxu3 %v2076_v1  ;;  %2285 = vmatpush.bf16.msra.mxu1 %v4053_v41 }
 0x7e2   :  { %2350 = vmatpush.bf16.msrb.mxu2 %v3944_v2  ;;  %2363 = vmatpush.bf16.msra.mxu3 %v3993_v33 }
 0x7e5   :  { %2286 = vmatpush.bf16.msra.mxu1 %v4058_v45 }
 0x7e6   :  { %2351 = vmatpush.bf16.msrb.mxu2 %v3947_v9  ;;  %2364 = vmatpush.bf16.msra.mxu3 %v3997_v43 }
 0x7e9   :  { %2287 = vmatpush.bf16.msra.mxu1 %v4063_v38 }
 0x7ea   :  { %2352 = vmatpush.bf16.msrb.mxu2 %v3950_v14  ;;  %2365 = vmatpush.bf16.msra.mxu3 %v4002_v57 }
 0x7ed   :  { %2288 = vmatpush.bf16.msra.mxu1 %v4070_v0 }
 0x7ee   :  { %2353 = vmatpush.bf16.msrb.mxu2 %v3955_v18  ;;  %2366 = vmatpush.bf16.msra.mxu3 %v4007_v31 }
 0x7f1   :  { %2289 = vmatpush.bf16.msra.mxu1 %v4082_v5 }
 0x7f2   :  { %2354 = vmatpush.bf16.msrb.mxu2 %v3959_v12  ;;  %2367 = vmatpush.bf16.msra.mxu3 %v4012_v20 }
 0x7f5   :  { %2290 = vmatpush.bf16.msra.mxu1 %v4089_v6 }
 0x7f6   :  { %2355 = vmatpush.bf16.msrb.mxu2 %v3964_v7  ;;  %2368 = vmatpush.bf16.msra.mxu3 %v4020_v23 }
 0x7f9   :  { %2291 = vmatpush.bf16.msra.mxu1 %v4092_v10 }
 0x7fa   :  { %2356 = vmatpush.bf16.msrb.mxu2 %v3967_v13  ;;  %2369 = vmatpush.bf16.msra.mxu3 %v4025_v60 }
 0x7fd   :  { %2292 = vmatpush.bf16.msra.mxu1 %v4100_v15 }
 0x7fe   :  { %2357 = vmatpush.bf16.msrb.mxu2 %v3973_v28  ;;  %2370 = vmatpush.bf16.msra.mxu3 %v4030_v11 }
 0x85d   :  { %v2086_v48 = vpop.f32.mrf.mxu1 }
 0x85e   :  { %v2119_v50 = vadd.f32 %v2086_v48, %v1578_v55 }
 0x860   :  { %v3056_v56 = vmul.f32 -1.442695, %v2119_v50  ;;  %v1636_v50 = vadd.f32 %v4207_v29, %v4171_v3 }
 0x862   :  { %3329 = vpow2.f32 %v3056_v56 }
 0x863   :  { %v2099_v44 = vpop.f32.mrf.mxu2 }
 0x864   :  { %v2120_v51 = vadd.f32 %v2099_v44, %v1607_v21  ;;  %v2112_v59 = vpop.f32.mrf.mxu3 }
 0x865   :  { %v2088_v47 = vpop.f32.mrf.mxu1  ;;  %v2159_v48 = vadd.f32 %v4169_v61, %v2112_v59 }
 0x866   :  { %v3057_v54 = vmul.f32 -1.442695, %v2120_v51 }
 0x868   :  { %v3330_v40 = vpop.eup %3329  ;;  %3331 = vpow2.f32 %v3057_v54 }
 0x869   :  { %v2127_v39 = vadd.f32 1.0, %v3330_v40 }
 0x86b   :  { %3333 = vrcp.f32 %v2127_v39  ;;  %v2101_v16 = vpop.f32.mrf.mxu2  ;;  %v2140_v35 = vand.u32 2147483648, %v2127_v39  ;;  %v2138_v42 = vand.u32 2147483647, %v2127_v39  ;;  %vm2134_vm9 = vweird.f32 %v2127_v39 }
 0x86c   :  { %v2114_v4 = vpop.f32.mrf.mxu3 }
 0x86d   :  { %v2141_v24 = vor.u32 1.1754944e-38, %v2140_v35  ;;  %vm2139_vm11 = vcmp.eq.f32.partialorder %v2138_v42, 8.507059e+37 }
 0x86e   :  { %v3332_v30 = vpop.eup %3331 }
 0x86f   :  { %v2128_v17 = vadd.f32 1.0, %v3332_v30 }
 0x871   :  { %v3334_v58 = vpop.eup %3333  ;;  %3335 = vrcp.f32 %v2128_v17  ;;  %v2155_v44 = vand.u32 2147483648, %v2128_v17  ;;  %v2153_v47 = vand.u32 2147483647, %v2128_v17  ;;  %vm2149_vm13 = vweird.f32 %v2128_v17 }
 0x872   :  { %v2130_v49 = vmul.f32 %v3334_v58, %v2127_v39  ;;  %vm2135_vm8 = vweird.f32 %v3334_v58 }
 0x873   :  { %vm2136_vm10 = vmor %vm2134_vm9, %vm2135_vm8  ;;  %v2156_v39 = vor.u32 1.1754944e-38, %v2155_v44  ;;  %vm2154_vm15 = vcmp.eq.f32.partialorder %v2153_v47, 8.507059e+37 }
 0x874   :  { %v2131_v26 = vsub.f32 1.0, %v2130_v49 }
 0x876   :  { %v2132_v25 = vmul.f32 %v3334_v58, %v2131_v26 }
 0x877   :  { %v3336_v46 = vpop.eup %3335 }
 0x878   :  { %v2145_v19 = vmul.f32 %v3336_v46, %v2128_v17  ;;  %v2133_v36 = vadd.f32 %v3334_v58, %v2132_v25  ;;  %vm2150_vm12 = vweird.f32 %v3336_v46 }
 0x879   :  { %vm2151_vm14 = vmor %vm2149_vm13, %vm2150_vm12 }
 0x87a   :  { %v2146_v1 = vsub.f32 1.0, %v2145_v19  ;;  %v2137_v55 = vsel %vm2136_vm10, %v3334_v58, %v2133_v36 }
 0x87b   :  { %v2142_v56 = vsel %vm2139_vm11, %v2141_v24, %v2137_v55 }
 0x87c   :  { %v2147_v21 = vmul.f32 %v3336_v46, %v2146_v1  ;;  %v2160_v51 = vmul.f32 %v2159_v48, %v2142_v56 }
 0x87e   :  { %v2148_v54 = vadd.f32 %v3336_v46, %v2147_v21  ;;  %v2161_v40 = vadd.f32 %v2160_v51, %v1636_v50  ;;  %v1639_v21 = vadd.f32 %v4211_v32, %v4171_v3 }
 0x880   :  { %v2152_v16 = vsel %vm2151_vm14, %v3336_v46, %v2148_v54  ;;  %3337 = vtanh.f32 %v2161_v40 }
 0x881   :  { %v2157_v4 = vsel %vm2154_vm15, %v2156_v39, %v2152_v16 }
 0x882   :  { %v2163_v30 = vsub.f32 1.0, %v2157_v4  ;;  %v2165_v29 = vmul.f32 %v2157_v4, %v4269_v62 }
 0x886   :  { %v3338_v59 = vpop.eup %3337 }
 0x887   :  { %v2164_v58 = vmul.f32 %v3338_v59, %v2163_v30 }
 0x889   :  { %v4305_v49 = vadd.f32 %v2165_v29, %v2164_v58 }
 0x88b   :  { %v2167_v26 = vpack.c.bf16 %v4305_v49, %v4305_v49 }
 0x88d   :  { %2176 = vmatmul.bf16.vlgmr.msra.gmra.mxu0 %v2167_v26  ;;  %2189 = vmatmul.bf16.vlgmr.msrb.gmra.mxu1 %v2167_v26 }
 0x88e   :  { %2202 = vmatmul.bf16.vlgmr.msra.gmra.mxu2 %v2167_v26  ;;  %2376 = vmatpush.bf16.msra.mxu0 %v4053_v41 }
 0x88f   :  { %2441 = vmatpush.bf16.msrb.mxu1 %v3944_v2  ;;  %2454 = vmatpush.bf16.msra.mxu2 %v3993_v33  ;;  %v1581_v2 = vadd.f32 %v4158_v27, %v4148_v22 }
 0x892   :  { %2377 = vmatpush.bf16.msra.mxu0 %v4058_v45 }
 0x893   :  { %2442 = vmatpush.bf16.msrb.mxu1 %v3947_v9  ;;  %2455 = vmatpush.bf16.msra.mxu2 %v3997_v43  ;;  %v1610_v9 = vadd.f32 %v4213_v34, %v4152_v8 }
 0x896   :  { %2378 = vmatpush.bf16.msra.mxu0 %v4063_v38 }
 0x897   :  { %2443 = vmatpush.bf16.msrb.mxu1 %v3950_v14  ;;  %2456 = vmatpush.bf16.msra.mxu2 %v4002_v57 }
 0x89a   :  { %2379 = vmatpush.bf16.msra.mxu0 %v4070_v0 }
 0x89b   :  { %2444 = vmatpush.bf16.msrb.mxu1 %v3955_v18  ;;  %2457 = vmatpush.bf16.msra.mxu2 %v4007_v31 }
 0x89e   :  { %2380 = vmatpush.bf16.msra.mxu0 %v4082_v5 }
 0x89f   :  { %2445 = vmatpush.bf16.msrb.mxu1 %v3959_v12  ;;  %2458 = vmatpush.bf16.msra.mxu2 %v4012_v20 }
 0x8a2   :  { %2381 = vmatpush.bf16.msra.mxu0 %v4089_v6 }
 0x8a3   :  { %2446 = vmatpush.bf16.msrb.mxu1 %v3964_v7  ;;  %2459 = vmatpush.bf16.msra.mxu2 %v4020_v23 }
 0x8a6   :  { %2382 = vmatpush.bf16.msra.mxu0 %v4092_v10 }
 0x8a7   :  { %2447 = vmatpush.bf16.msrb.mxu1 %v3967_v13  ;;  %2460 = vmatpush.bf16.msra.mxu2 %v4025_v60 }
 0x8aa   :  { %2383 = vmatpush.bf16.msra.mxu0 %v4100_v15 }
 0x8ab   :  { %2448 = vmatpush.bf16.msrb.mxu1 %v3973_v28  ;;  %2461 = vmatpush.bf16.msra.mxu2 %v4030_v11 }
 0x90a   :  { %v2177_v14 = vpop.f32.mrf.mxu0  ;;  %v2190_v18 = vpop.f32.mrf.mxu1 }
 0x90b   :  { %v2210_v12 = vadd.f32 %v2177_v14, %v1581_v2  ;;  %v2211_v7 = vadd.f32 %v2190_v18, %v1610_v9 }
 0x90d   :  { %v3058_v33 = vmul.f32 -1.442695, %v2210_v12  ;;  %v3059_v13 = vmul.f32 -1.442695, %v2211_v7 }
 0x90f   :  { %3339 = vpow2.f32 %v3058_v33 }
 0x910   :  { %3341 = vpow2.f32 %v3059_v13 }
 0x911   :  { %v2203_v43 = vpop.f32.mrf.mxu2 }
 0x912   :  { %v2179_v57 = vpop.f32.mrf.mxu0  ;;  %v2192_v31 = vpop.f32.mrf.mxu1  ;;  %v2250_v48 = vadd.f32 %v4169_v61, %v2203_v43 }
 0x915   :  { %v3340_v28 = vpop.eup %3339 }
 0x916   :  { %v3342_v20 = vpop.eup %3341  ;;  %v2218_v23 = vadd.f32 1.0, %v3340_v28 }
 0x917   :  { %v2219_v60 = vadd.f32 1.0, %v3342_v20 }
 0x918   :  { %3343 = vrcp.f32 %v2218_v23  ;;  %v2231_v42 = vand.u32 2147483648, %v2218_v23  ;;  %v2229_v19 = vand.u32 2147483647, %v2218_v23  ;;  %vm2225_vm1 = vweird.f32 %v2218_v23 }
 0x919   :  { %3345 = vrcp.f32 %v2219_v60  ;;  %v2205_v11 = vpop.f32.mrf.mxu2  ;;  %v2246_v44 = vand.u32 2147483648, %v2219_v60  ;;  %vm2240_vm5 = vweird.f32 %v2219_v60  ;;  %v2244_v47 = vand.u32 2147483647, %v2219_v60 }
 0x91a   :  { %v2232_v1 = vor.u32 1.1754944e-38, %v2231_v42  ;;  %vm2230_vm3 = vcmp.eq.f32.partialorder %v2229_v19, 8.507059e+37 }
 0x91b   :  { %v2247_v39 = vor.u32 1.1754944e-38, %v2246_v44  ;;  %vm2245_vm7 = vcmp.eq.f32.partialorder %v2244_v47, 8.507059e+37  ;;  %v4439_v47 = vld [vmem:[#allocation18_spill] sm:$0xff] }
 0x91e   :  { %v3344_v27 = vpop.eup %3343 }
 0x91f   :  { %v3346_v34 = vpop.eup %3345  ;;  %v2221_v62 = vmul.f32 %v3344_v27, %v2218_v23  ;;  %vm2226_vm0 = vweird.f32 %v3344_v27 }
 0x920   :  { %v2236_v17 = vmul.f32 %v3346_v34, %v2219_v60  ;;  %vm2227_vm2 = vmor %vm2225_vm1, %vm2226_vm0  ;;  %vm2241_vm4 = vweird.f32 %v3346_v34 }
 0x921   :  { %v2222_v35 = vsub.f32 1.0, %v2221_v62  ;;  %vm2242_vm6 = vmor %vm2240_vm5, %vm2241_vm4 }
 0x922   :  { %v2237_v25 = vsub.f32 1.0, %v2236_v17 }
 0x923   :  { %v2223_v46 = vmul.f32 %v3344_v27, %v2222_v35  ;;  %v1641_v35 = vadd.f32 %v4215_v37, %v4171_v3 }
 0x924   :  { %v2238_v36 = vmul.f32 %v3346_v34, %v2237_v25 }
 0x925   :  { %v2224_v24 = vadd.f32 %v3344_v27, %v2223_v46 }
 0x926   :  { %v2239_v50 = vadd.f32 %v3346_v34, %v2238_v36 }
 0x927   :  { %v2228_v55 = vsel %vm2227_vm2, %v3344_v27, %v2224_v24 }
 0x928   :  { %v2233_v56 = vsel %vm2230_vm3, %v2232_v1, %v2228_v55  ;;  %v2243_v40 = vsel %vm2242_vm6, %v3346_v34, %v2239_v50 }
 0x929   :  { %v2251_v51 = vmul.f32 %v2250_v48, %v2233_v56  ;;  %v2248_v16 = vsel %vm2245_vm7, %v2247_v39, %v2243_v40 }
 0x92a   :  { %v2254_v4 = vsub.f32 1.0, %v2248_v16  ;;  %v2256_v58 = vmul.f32 %v2248_v16, %v4305_v49  ;;  %v1612_v49 = vadd.f32 %v4217_v63, %v4152_v8 }
 0x92b   :  { %v2252_v54 = vadd.f32 %v2251_v51, %v1639_v21  ;;  %v1586_v51 = vadd.f32 %v4162_v53, %v4148_v22 }
 0x92d   :  { %3347 = vtanh.f32 %v2252_v54  ;;  %v1615_v54 = vadd.f32 %v4439_v47, %v4152_v8 }
 0x933   :  { %v3348_v30 = vpop.eup %3347 }
 0x934   :  { %v2255_v59 = vmul.f32 %v3348_v30, %v2254_v4 }
 0x936   :  { %v4341_v29 = vadd.f32 %v2256_v58, %v2255_v59 }
 0x938   :  { %v2258_v32 = vpack.c.bf16 %v4341_v29, %v4341_v29 }
 0x93a   :  { %2267 = vmatmul.bf16.vlgmr.msrb.gmra.mxu3 %v2258_v32  ;;  %2280 = vmatmul.bf16.vlgmr.msrb.gmra.mxu0 %v2258_v32 }
 0x93b   :  { %2293 = vmatmul.bf16.vlgmr.msra.gmra.mxu1 %v2258_v32  ;;  %2467 = vmatpush.bf16.msrb.mxu3 %v4053_v41 }
 0x93f   :  { %2468 = vmatpush.bf16.msrb.mxu3 %v4058_v45  ;;  %v1583_v45 = vadd.f32 %v4160_v52, %v4148_v22 }
 0x943   :  { %2469 = vmatpush.bf16.msrb.mxu3 %v4063_v38 }
 0x947   :  { %2470 = vmatpush.bf16.msrb.mxu3 %v4070_v0 }
 0x94b   :  { %2471 = vmatpush.bf16.msrb.mxu3 %v4082_v5 }
 0x94f   :  { %2472 = vmatpush.bf16.msrb.mxu3 %v4089_v6 }
 0x953   :  { %2473 = vmatpush.bf16.msrb.mxu3 %v4092_v10 }
 0x957   :  { %2474 = vmatpush.bf16.msrb.mxu3 %v4100_v15 }
 0x9b7   :  { %v2281_v26 = vpop.f32.mrf.mxu0 }
 0x9b8   :  { %v2302_v2 = vadd.f32 %v2281_v26, %v1612_v49  ;;  %v2294_v41 = vpop.f32.mrf.mxu1 }
 0x9b9   :  { %v2341_v27 = vadd.f32 %v4169_v61, %v2294_v41 }
 0x9ba   :  { %v3061_v9 = vmul.f32 -1.442695, %v2302_v2 }
 0x9bc   :  { %3349 = vpow2.f32 %v3061_v9 }
 0x9bd   :  { %v2268_v38 = vpop.f32.mrf.mxu3 }
 0x9be   :  { %v2301_v0 = vadd.f32 %v2268_v38, %v1583_v45 }
 0x9bf   :  { %v2283_v5 = vpop.f32.mrf.mxu0 }
 0x9c0   :  { %v3060_v14 = vmul.f32 -1.442695, %v2301_v0  ;;  %v2296_v6 = vpop.f32.mrf.mxu1 }
 0x9c2   :  { %v3350_v18 = vpop.eup %3349  ;;  %3351 = vpow2.f32 %v3060_v14 }
 0x9c3   :  { %v2310_v10 = vadd.f32 1.0, %v3350_v18 }
 0x9c5   :  { %v2270_v15 = vpop.f32.mrf.mxu3  ;;  %3353 = vrcp.f32 %v2310_v10  ;;  %v2337_v25 = vand.u32 2147483648, %v2310_v10  ;;  %vm2331_vm13 = vweird.f32 %v2310_v10  ;;  %v2335_v46 = vand.u32 2147483647, %v2310_v10 }
 0x9c7   :  { %v2338_v24 = vor.u32 1.1754944e-38, %v2337_v25  ;;  %vm2336_vm15 = vcmp.eq.f32.partialorder %v2335_v46, 8.507059e+37  ;;  %v3205_v25 = vld [vmem:[%s4418_s6 + $0x38] sm:$0xff]  ;;  %v3203_v46 = vld [vmem:[%s4418_s6 + $0x28] sm:$0xff] }
 0x9c8   :  { %v3352_v12 = vpop.eup %3351  ;;  %2605 = vmatpush.bf16.msrb.mxu0 %v3205_v25 }
 0x9c9   :  { %v2309_v63 = vadd.f32 1.0, %v3352_v12 }
 0x9cb   :  { %3355 = vrcp.f32 %v2309_v63  ;;  %v3354_v7 = vpop.eup %3353  ;;  %v2322_v31 = vand.u32 2147483648, %v2309_v63  ;;  %v2320_v20 = vand.u32 2147483647, %v2309_v63  ;;  %vm2316_vm9 = vweird.f32 %v2309_v63 }
 0x9cc   :  { %v2327_v33 = vmul.f32 %v3354_v7, %v2310_v10  ;;  %vm2332_vm12 = vweird.f32 %v3354_v7 }
 0x9cd   :  { %v2323_v11 = vor.u32 1.1754944e-38, %v2322_v31  ;;  %vm2321_vm11 = vcmp.eq.f32.partialorder %v2320_v20, 8.507059e+37  ;;  %vm2333_vm14 = vmor %vm2331_vm13, %vm2332_vm12 }
 0x9ce   :  { %v2328_v57 = vsub.f32 1.0, %v2327_v33 }
 0x9d0   :  { %v2329_v23 = vmul.f32 %v3354_v7, %v2328_v57 }
 0x9d1   :  { %v3356_v13 = vpop.eup %3355 }
 0x9d2   :  { %v2312_v43 = vmul.f32 %v3356_v13, %v2309_v63  ;;  %vm2317_vm8 = vweird.f32 %v3356_v13  ;;  %v2330_v62 = vadd.f32 %v3354_v7, %v2329_v23 }
 0x9d3   :  { %vm2318_vm10 = vmor %vm2316_vm9, %vm2317_vm8 }
 0x9d4   :  { %v2313_v52 = vsub.f32 1.0, %v2312_v43  ;;  %v2334_v36 = vsel %vm2333_vm14, %v3354_v7, %v2330_v62  ;;  %v4440_v43 = vld [vmem:[#allocation17_spill] sm:$0xff] }
 0x9d5   :  { %v2339_v1 = vsel %vm2336_vm15, %v2338_v24, %v2334_v36  ;;  %v1644_v57 = vadd.f32 %v4440_v43, %v4171_v3  ;;  %v4441_v36 = vld [vmem:[#allocation15_spill] sm:$0xff] }
 0x9d6   :  { %v2314_v28 = vmul.f32 %v3356_v13, %v2313_v52  ;;  %v2345_v55 = vsub.f32 1.0, %v2339_v1  ;;  %v2347_v56 = vmul.f32 %v2339_v1, %v4341_v29  ;;  %v1588_v24 = vadd.f32 %v4441_v36, %v4148_v22 }
 0x9d8   :  { %v2315_v60 = vadd.f32 %v3356_v13, %v2314_v28 }
 0x9da   :  { %v2319_v34 = vsel %vm2318_vm10, %v3356_v13, %v2315_v60 }
 0x9db   :  { %v2324_v17 = vsel %vm2321_vm11, %v2323_v11, %v2319_v34 }
 0x9dc   :  { %v2342_v42 = vmul.f32 %v2341_v27, %v2324_v17 }
 0x9de   :  { %v2343_v19 = vadd.f32 %v2342_v42, %v1641_v35  ;;  %v3204_v42 = vld [vmem:[%s4418_s6 + $0x30] sm:$0xff] }
 0x9df   :  { %2606 = vmatpush.bf16.msrb.mxu0 %v3204_v42 }
 0x9e0   :  { %3357 = vtanh.f32 %v2343_v19  ;;  %v3202_v19 = vld [vmem:[%s4418_s6 + $0x20] sm:$0xff] }
 0x9e3   :  { %2607 = vmatpush.bf16.msrb.mxu0 %v3203_v46 }
 0x9e6   :  { %v3358_v48 = vpop.eup %3357 }
 0x9e7   :  { %v2346_v50 = vmul.f32 %v3358_v48, %v2345_v55  ;;  %2608 = vmatpush.bf16.msrb.mxu0 %v3202_v19  ;;  %v3201_v48 = vld [vmem:[%s4418_s6 + $0x18] sm:$0xff] }
 0x9e9   :  { %v2348_v21 = vadd.f32 %v2347_v56, %v2346_v50  ;;  %v4442_v56 = vld [vmem:[#allocation19_spill] sm:$0xff] }
 0x9eb   :  { %v2349_v44 = vpack.c.bf16 %v2348_v21, %v2348_v21  ;;  %2609 = vmatpush.bf16.msrb.mxu0 %v3201_v48 }
 0x9ed   :  { %2358 = vmatmul.bf16.vlgmr.msrb.gmra.mxu2 %v2349_v44  ;;  %2371 = vmatmul.bf16.vlgmr.msra.gmra.mxu3 %v2349_v44 }
 0x9ee   :  { %2384 = vmatmul.bf16.vlgmr.msra.gmra.mxu0 %v2349_v44 }
 0xa6b   :  { %v2385_v37 = vpop.f32.mrf.mxu0 }
 0xa6c   :  { %v2432_v63 = vadd.f32 %v4169_v61, %v2385_v37  ;;  %v3200_v37 = vld [vmem:[%s4418_s6 + $0x10] sm:$0xff] }
 0xa6d   :  { %2610 = vmatpush.bf16.msrb.mxu0 %v3200_v37 }
 0xa70   :  { %v2359_v40 = vpop.f32.mrf.mxu2  ;;  %v2372_v39 = vpop.f32.mrf.mxu3 }
 0xa71   :  { %v2392_v16 = vadd.f32 %v2359_v40, %v1586_v51  ;;  %v2393_v4 = vadd.f32 %v2372_v39, %v1615_v54  ;;  %v3199_v40 = vld [vmem:[%s4418_s6 + $0x8] sm:$0xff] }
 0xa72   :  { %2611 = vmatpush.bf16.msrb.mxu0 %v3199_v40 }
 0xa73   :  { %v3062_v30 = vmul.f32 -1.442695, %v2392_v16  ;;  %v3063_v59 = vmul.f32 -1.442695, %v2393_v4  ;;  %v2387_v58 = vpop.f32.mrf.mxu0 }
 0xa75   :  { %3359 = vpow2.f32 %v3062_v30 }
 0xa76   :  { %3361 = vpow2.f32 %v3063_v59 }
 0xa78   :  { %v2361_v29 = vpop.f32.mrf.mxu2  ;;  %v2374_v32 = vpop.f32.mrf.mxu3 }
 0xa7b   :  { %v3360_v49 = vpop.eup %3359 }
 0xa7c   :  { %v3362_v26 = vpop.eup %3361  ;;  %v2400_v2 = vadd.f32 1.0, %v3360_v49 }
 0xa7d   :  { %v2401_v41 = vadd.f32 1.0, %v3362_v26 }
 0xa7e   :  { %3363 = vrcp.f32 %v2400_v2  ;;  %v2413_v5 = vand.u32 2147483648, %v2400_v2  ;;  %v2411_v18 = vand.u32 2147483647, %v2400_v2  ;;  %vm2407_vm1 = vweird.f32 %v2400_v2 }
 0xa7f   :  { %3365 = vrcp.f32 %v2401_v41  ;;  %v2428_v31 = vand.u32 2147483648, %v2401_v41  ;;  %vm2422_vm5 = vweird.f32 %v2401_v41  ;;  %v2426_v28 = vand.u32 2147483647, %v2401_v41 }
 0xa80   :  { %v2414_v12 = vor.u32 1.1754944e-38, %v2413_v5  ;;  %vm2412_vm3 = vcmp.eq.f32.partialorder %v2411_v18, 8.507059e+37  ;;  %v4443_v18 = vld [vmem:[#allocation16_spill] sm:$0xff] }
 0xa81   :  { %v2429_v60 = vor.u32 1.1754944e-38, %v2428_v31  ;;  %vm2427_vm7 = vcmp.eq.f32.partialorder %v2426_v28, 8.507059e+37 }
 0xa84   :  { %v3364_v53 = vpop.eup %3363 }
 0xa85   :  { %v3366_v9 = vpop.eup %3365  ;;  %v2403_v45 = vmul.f32 %v3364_v53, %v2400_v2  ;;  %vm2408_vm0 = vweird.f32 %v3364_v53 }
 0xa86   :  { %v2418_v38 = vmul.f32 %v3366_v9, %v2401_v41  ;;  %vm2409_vm2 = vmor %vm2407_vm1, %vm2408_vm0  ;;  %vm2423_vm4 = vweird.f32 %v3366_v9 }
 0xa87   :  { %v2404_v0 = vsub.f32 1.0, %v2403_v45  ;;  %vm2424_vm6 = vmor %vm2422_vm5, %vm2423_vm4 }
 0xa88   :  { %v2419_v14 = vsub.f32 1.0, %v2418_v38 }
 0xa89   :  { %v2405_v6 = vmul.f32 %v3364_v53, %v2404_v0 }
 0xa8a   :  { %v2420_v10 = vmul.f32 %v3366_v9, %v2419_v14  ;;  %v3380_v14 = vld [vmem:[%s4417_s5 + $0x1] ss:$0 sm:$0xff] }
 0xa8b   :  { %v2406_v15 = vadd.f32 %v3364_v53, %v2405_v6 }
 0xa8c   :  { %v2421_v13 = vadd.f32 %v3366_v9, %v2420_v10  ;;  %v1646_v10 = vadd.f32 %v4443_v18, %v4171_v3 }
 0xa8d   :  { %v2410_v7 = vsel %vm2409_vm2, %v3364_v53, %v2406_v15 }
 0xa8e   :  { %v2415_v33 = vsel %vm2412_vm3, %v2414_v12, %v2410_v7  ;;  %v2425_v23 = vsel %vm2424_vm6, %v3366_v9, %v2421_v13 }
 0xa8f   :  { %v2433_v52 = vmul.f32 %v2432_v63, %v2415_v33  ;;  %v2430_v11 = vsel %vm2427_vm7, %v2429_v60, %v2425_v23 }
 0xa90   :  { %v2436_v61 = vsub.f32 1.0, %v2430_v11  ;;  %v2438_v62 = vmul.f32 %v2430_v11, %v2348_v21  ;;  %v1617_v21 = vadd.f32 %v4442_v56, %v4152_v8  ;;  %v3198_v8 = vld [vmem:[%s4418_s6] sm:$0xff] }
 0xa91   :  { %v2434_v20 = vadd.f32 %v2433_v52, %v1644_v57  ;;  %2612 = vmatpush.bf16.msrb.mxu0 %v3198_v8 }
 0xa93   :  { %3367 = vtanh.f32 %v2434_v20 }
 0xa99   :  { %v3368_v27 = vpop.eup %3367 }
 0xa9a   :  { %v2437_v34 = vmul.f32 %v3368_v27, %v2436_v61  ;;  %v3218_v61 = vld [vmem:[%s4419_s7] ss:$0 sm:$0xff] }
 0xa9c   :  { %v4368_v17 = vadd.f32 %v2438_v62, %v2437_v34 }
 0xa9e   :  { %v2440_v35 = vpack.c.bf16 %v4368_v17, %v4368_v17 }
 0xaa0   :  { %2449 = vmatmul.bf16.vlgmr.msrb.gmra.mxu1 %v2440_v35  ;;  %2462 = vmatmul.bf16.vlgmr.msra.gmra.mxu2 %v2440_v35 }
 0xaa1   :  { %2475 = vmatmul.bf16.vlgmr.msrb.gmra.mxu3 %v2440_v35 }
 0xb1d   :  { %v2450_v1 = vpop.f32.mrf.mxu1 }
 0xb1e   :  { %v2483_v55 = vadd.f32 %v2450_v1, %v1588_v24 }
 0xb20   :  { %v3064_v50 = vmul.f32 -1.442695, %v2483_v55 }
 0xb22   :  { %3369 = vpow2.f32 %v3064_v50 }
 0xb23   :  { %v2463_v44 = vpop.f32.mrf.mxu2 }
 0xb24   :  { %v2484_v51 = vadd.f32 %v2463_v44, %v1617_v21  ;;  %v2476_v22 = vpop.f32.mrf.mxu3 }
 0xb25   :  { %v2452_v47 = vpop.f32.mrf.mxu1  ;;  %v2523_v6 = vadd.f32 %v3380_v14, %v2476_v22 }
 0xb26   :  { %v3065_v54 = vmul.f32 -1.442695, %v2484_v51 }
 0xb28   :  { %v3370_v39 = vpop.eup %3369  ;;  %3371 = vpow2.f32 %v3065_v54 }
 0xb29   :  { %v2491_v16 = vadd.f32 1.0, %v3370_v39 }
 0xb2b   :  { %3373 = vrcp.f32 %v2491_v16  ;;  %v2465_v4 = vpop.f32.mrf.mxu2  ;;  %v2504_v26 = vand.u32 2147483648, %v2491_v16  ;;  %v2502_v41 = vand.u32 2147483647, %v2491_v16  ;;  %vm2498_vm9 = vweird.f32 %v2491_v16 }
 0xb2c   :  { %v2478_v30 = vpop.f32.mrf.mxu3 }
 0xb2d   :  { %v2505_v38 = vor.u32 1.1754944e-38, %v2504_v26  ;;  %vm2503_vm11 = vcmp.eq.f32.partialorder %v2502_v41, 8.507059e+37 }
 0xb2e   :  { %v3372_v59 = vpop.eup %3371 }
 0xb2f   :  { %v2492_v58 = vadd.f32 1.0, %v3372_v59 }
 0xb31   :  { %v3374_v29 = vpop.eup %3373  ;;  %3375 = vrcp.f32 %v2492_v58  ;;  %v2519_v63 = vand.u32 2147483648, %v2492_v58  ;;  %v2517_v33 = vand.u32 2147483647, %v2492_v58  ;;  %vm2513_vm13 = vweird.f32 %v2492_v58 }
 0xb32   :  { %v2494_v32 = vmul.f32 %v3374_v29, %v2491_v16  ;;  %vm2499_vm8 = vweird.f32 %v3374_v29 }
 0xb33   :  { %vm2500_vm10 = vmor %vm2498_vm9, %vm2499_vm8  ;;  %v2520_v57 = vor.u32 1.1754944e-38, %v2519_v63  ;;  %vm2518_vm15 = vcmp.eq.f32.partialorder %v2517_v33, 8.507059e+37 }
 0xb34   :  { %v2495_v49 = vsub.f32 1.0, %v2494_v32 }
 0xb36   :  { %v2496_v2 = vmul.f32 %v3374_v29, %v2495_v49 }
 0xb37   :  { %v3376_v53 = vpop.eup %3375 }
 0xb38   :  { %v2509_v9 = vmul.f32 %v3376_v53, %v2492_v58  ;;  %v2497_v45 = vadd.f32 %v3374_v29, %v2496_v2  ;;  %vm2514_vm12 = vweird.f32 %v3376_v53 }
 0xb39   :  { %vm2515_vm14 = vmor %vm2513_vm13, %vm2514_vm12 }
 0xb3a   :  { %v2510_v0 = vsub.f32 1.0, %v2509_v9  ;;  %v2501_v5 = vsel %vm2500_vm10, %v3374_v29, %v2497_v45 }
 0xb3b   :  { %v2506_v15 = vsel %vm2503_vm11, %v2505_v38, %v2501_v5 }
 0xb3c   :  { %v2511_v12 = vmul.f32 %v3376_v53, %v2510_v0  ;;  %v2524_v7 = vmul.f32 %v2523_v6, %v2506_v15 }
 0xb3e   :  { %v2512_v13 = vadd.f32 %v3376_v53, %v2511_v12  ;;  %v2525_v43 = vadd.f32 %v2524_v7, %v1646_v10 }
 0xb40   :  { %v2516_v52 = vsel %vm2515_vm14, %v3376_v53, %v2512_v13  ;;  %3377 = vtanh.f32 %v2525_v43 }
 0xb41   :  { %v2521_v31 = vsel %vm2518_vm15, %v2520_v57, %v2516_v52 }
 0xb42   :  { %v2527_v28 = vsub.f32 1.0, %v2521_v31  ;;  %v2529_v3 = vmul.f32 %v2521_v31, %v4368_v17 }
 0xb46   :  { %v3378_v20 = vpop.eup %3377 }
 0xb47   :  { %v2528_v23 = vmul.f32 %v3378_v20, %v2527_v28 }
 0xb49   :  { %v2530_v60 = vadd.f32 %v2529_v3, %v2528_v23 }
 0xb4b   :  { %v2536_v11 = vpack.c.bf16 %v2530_v60, %v2530_v60 }
 0xb4d   :  { %2613 = vmatmul.bf16.vlgmr.msrb.gmra.mxu0 %v2536_v11 }
 0xbca   :  { %v2614_v27 = vpop.f32.mrf.mxu0 }
 0xbcb   :  { %v2615_v34 = vadd.f32 %v3218_v61, %v2614_v27 }
 0xbcd   :  { %2618 = vst [vmem:[%s4420_s8] sm:$0xff] %v2615_v34 }
 0xbd2   :  { %v2616_v62 = vpop.f32.mrf.mxu0 }
 0xbd3   :  { %2623 = vsyncpa [#allocation6], 1 }
 0xbd4   :  { %2624 = vsyncpa [#allocation8], 1 }
 0xbd5   :  { %2625 = vsyncpa [#allocation11], 1 }

</bundles_post_ra>
